<compile_context>
chip_gen: v7x
topology: tpu7x:2x2x1
jax: 0.10.0
libtpu: 0.0.40
codegen_flags: <defaults>
</compile_context>

<pallas_src>
import functools
import math

import jax
import jax.numpy as jnp
from jax.experimental import pallas as pl
from jax.experimental.pallas import tpu as pltpu


# ----------------------------- Pallas kernel ------------------------------- #

def _layer_norm(v, w, b, eps=1e-5):
    # v: (L, D) float32, w/b: (D,)
    mu = jnp.mean(v, axis=-1, keepdims=True)
    var = jnp.mean((v - mu) ** 2, axis=-1, keepdims=True)
    return (v - mu) * jax.lax.rsqrt(var + eps) * w + b


def resblock_kernel(x_ref, mask_ref,
                    ln1_w_ref, ln1_b_ref,
                    in_w_ref, in_b_ref,
                    out_w_ref, out_b_ref,
                    ln2_w_ref, ln2_b_ref,
                    fc_w_ref, fc_b_ref,
                    pr_w_ref, pr_b_ref,
                    o_ref, *, n_head):
    """One ResidualAttentionBlock for one batch element: x block is (1, L, D)."""
    x = x_ref[0].astype(jnp.float32)                  # (L, D) f32
    L, D = x.shape
    hd = D // n_head
    scale = 1.0 / math.sqrt(hd)

    mask = mask_ref[...].astype(jnp.float32)          # (L, L) additive mask (loaded once)

    # ---- attention branch: x + out_proj(MHA(ln_1(x))) ----
    h = _layer_norm(x, ln1_w_ref[0], ln1_b_ref[0]).astype(jnp.bfloat16)
    # in_w is stored pre-transposed as (D, 3D): plain dot, no in-kernel .T
    qkv = jnp.dot(h, in_w_ref[...],
                  preferred_element_type=jnp.float32) + in_b_ref[0]     # (L, 3D) f32

    def heads(z):                                     # (L, D) -> (H, L, hd) bf16
        return z.reshape(L, n_head, hd).transpose(1, 0, 2).astype(jnp.bfloat16)

    q = heads(qkv[:, 0 * D:1 * D])
    k = heads(qkv[:, 1 * D:2 * D])
    v = heads(qkv[:, 2 * D:3 * D])

    # all heads in one batched contraction (MXU), f32 accumulation
    s = jnp.einsum("hqd,hkd->hqk", q, k,
                   preferred_element_type=jnp.float32) * scale          # (H, L, L)
    s = s + mask[None]                                # broadcast mask over heads (once)
    s = s - jnp.max(s, axis=-1, keepdims=True)        # f32 softmax
    e = jnp.exp(s)
    p = e * pl.reciprocal(jnp.sum(e, axis=-1, keepdims=True), approx=True)

    ctx = jnp.einsum("hqk,hkd->qhd", p.astype(jnp.bfloat16), v,
                     preferred_element_type=jnp.float32).reshape(L, D)  # (L, D)
    attn = jnp.dot(ctx.astype(jnp.bfloat16), out_w_ref[...],
                   preferred_element_type=jnp.float32) + out_b_ref[0]
    y = x + attn

    # ---- MLP branch: y + c_proj(QuickGELU(c_fc(ln_2(y)))) ----
    h2 = _layer_norm(y, ln2_w_ref[0], ln2_b_ref[0]).astype(jnp.bfloat16)
    m = jnp.dot(h2, fc_w_ref[...],
                preferred_element_type=jnp.float32) + fc_b_ref[0]       # (L, 4D) f32
    m = m * jax.nn.sigmoid(1.702 * m)                 # QuickGELU in f32
    mlp = jnp.dot(m.astype(jnp.bfloat16), pr_w_ref[...],
                  preferred_element_type=jnp.float32) + pr_b_ref[0]

    o_ref[0] = (y + mlp).astype(o_ref.dtype)


def residual_attention_block(x_bld, params, attn_mask, n_head):
    """x_bld: (N, L, D). One fused pallas_call, grid over the batch."""
    N, L, D = x_bld.shape

    def full(shape):
        return pl.BlockSpec(shape, lambda b: tuple(0 for _ in shape))

    in_specs = [
        pl.BlockSpec((1, L, D), lambda b: (b, 0, 0)),   # x
        full((L, L)),                                   # attn_mask
        full((1, D)), full((1, D)),                     # ln_1 w, b
        full((D, 3 * D)), full((1, 3 * D)),             # attn.in_proj  (pre-transposed, bf16)
        full((D, D)), full((1, D)),                     # attn.out_proj (pre-transposed, bf16)
        full((1, D)), full((1, D)),                     # ln_2 w, b
        full((D, 4 * D)), full((1, 4 * D)),             # mlp.c_fc     (pre-transposed, bf16)
        full((4 * D, D)), full((1, D)),                 # mlp.c_proj   (pre-transposed, bf16)
    ]

    # Scoped-VMEM budget: double-buffered bf16 weights + IO tiles + headroom.
    w_bytes = 12 * D * D * 2                            # bf16 weights per layer
    io_bytes = 2 * L * D * 4 + L * L * 4 + 16 * D * 4   # x/out tiles, mask, biases/LN
    vmem_limit = int(min(max(2 * (w_bytes + io_bytes) + (8 << 20), 32 << 20),
                         100 << 20))

    return pl.pallas_call(
        functools.partial(resblock_kernel, n_head=n_head),
        out_shape=jax.ShapeDtypeStruct((N, L, D), x_bld.dtype),
        grid=(N,),
        in_specs=in_specs,
        out_specs=pl.BlockSpec((1, L, D), lambda b: (b, 0, 0)),
        input_output_aliases={0: 0},                    # reuse x's HBM buffer for the output
        compiler_params=pltpu.CompilerParams(
            dimension_semantics=("parallel",),
            vmem_limit_bytes=vmem_limit),
    )(x_bld, attn_mask,
      params["ln1_w"], params["ln1_b"],
      params["in_w"], params["in_b"],
      params["out_w"], params["out_b"],
      params["ln2_w"], params["ln2_b"],
      params["fc_w"], params["fc_b"],
      params["pr_w"], params["pr_b"])


def transformer_forward(x_lnd, layer_params, n_head, attn_mask=None):
    """x_lnd: (L, N, D) float32, matching PyTorch's Transformer.forward input."""
    L, N, D = x_lnd.shape
    if attn_mask is None:
        attn_mask = jnp.zeros((L, L), jnp.float32)
    x = jnp.transpose(x_lnd, (1, 0, 2))        # (N, L, D)
    for p in layer_params:
        x = residual_attention_block(x, p, attn_mask, n_head)
    return jnp.transpose(x, (1, 0, 2))         # back to (L, N, D)


# ----------------------- deterministic parameter init ---------------------- #

def init_params(key, width, layers):
    """Weights are stored PRE-TRANSPOSED (contraction along rows) and in bf16."""
    D = width
    params = []
    for _ in range(layers):
        keys = jax.random.split(key, 9)
        key = keys[0]
        s = 0.02
        p = {
            "ln1_w": jnp.ones((1, D), jnp.float32),
            "ln1_b": jnp.zeros((1, D), jnp.float32),
            "in_w": (s * jax.random.normal(keys[1], (D, 3 * D), jnp.float32)).astype(jnp.bfloat16),
            "in_b": s * jax.random.normal(keys[2], (1, 3 * D), jnp.float32),
            "out_w": (s * jax.random.normal(keys[3], (D, D), jnp.float32)).astype(jnp.bfloat16),
            "out_b": s * jax.random.normal(keys[4], (1, D), jnp.float32),
            "ln2_w": jnp.ones((1, D), jnp.float32),
            "ln2_b": jnp.zeros((1, D), jnp.float32),
            "fc_w": (s * jax.random.normal(keys[5], (D, 4 * D), jnp.float32)).astype(jnp.bfloat16),
            "fc_b": s * jax.random.normal(keys[6], (1, 4 * D), jnp.float32),
            "pr_w": (s * jax.random.normal(keys[7], (4 * D, D), jnp.float32)).astype(jnp.bfloat16),
            "pr_b": s * jax.random.normal(keys[8], (1, D), jnp.float32),
        }
        params.append(p)
    return params


# --------------------------- pure-JAX reference ----------------------------- #

def reference_forward(x_lnd, layer_params, n_head, attn_mask=None):
    L, N, D = x_lnd.shape
    hd = D // n_head
    if attn_mask is None:
        attn_mask = jnp.zeros((L, L), jnp.float32)

    def ln(v, w, b):
        mu = v.mean(-1, keepdims=True)
        var = ((v - mu) ** 2).mean(-1, keepdims=True)
        return (v - mu) / jnp.sqrt(var + 1e-5) * w + b

    x = jnp.transpose(x_lnd, (1, 0, 2))
    with jax.default_matmul_precision("highest"):
        for p in layer_params:
            in_w = p["in_w"].astype(jnp.float32)
            out_w = p["out_w"].astype(jnp.float32)
            fc_w = p["fc_w"].astype(jnp.float32)
            pr_w = p["pr_w"].astype(jnp.float32)

            h = ln(x, p["ln1_w"][0], p["ln1_b"][0])
            qkv = h @ in_w + p["in_b"][0]
            q, k, v = jnp.split(qkv, 3, axis=-1)
            q = q.reshape(N, L, n_head, hd)
            k = k.reshape(N, L, n_head, hd)
            v = v.reshape(N, L, n_head, hd)
            s = jnp.einsum("nqhd,nkhd->nhqk", q, k) / math.sqrt(hd) + attn_mask
            pw = jax.nn.softmax(s, axis=-1)
            a = jnp.einsum("nhqk,nkhd->nqhd", pw, v).reshape(N, L, D)
            a = a @ out_w + p["out_b"][0]
            x = x + a
            h2 = ln(x, p["ln2_w"][0], p["ln2_b"][0])
            m = h2 @ fc_w + p["fc_b"][0]
            m = m * jax.nn.sigmoid(1.702 * m)
            x = x + (m @ pr_w + p["pr_b"][0])
    return jnp.transpose(x, (1, 0, 2))


# ---------------------------------- main ------------------------------------ #

if __name__ == "__main__":
    L, N, D, HEADS, LAYERS = 16, 2, 128, 4, 2   # seq, batch, width, heads, layers

    key = jax.random.PRNGKey(0)
    kx, kp = jax.random.split(key)
    x = jax.random.normal(kx, (L, N, D), jnp.float32)
    params = init_params(kp, D, LAYERS)

    fwd = jax.jit(functools.partial(transformer_forward, n_head=HEADS))
    out = jax.block_until_ready(fwd(x, params))

    ref = reference_forward(x, params, HEADS)
    assert out.shape == (L, N, D)
    max_err = float(jnp.max(jnp.abs(out - ref)))
    # bf16 matmul inputs + approx reciprocal => slightly looser tolerance than pure f32.
    assert jnp.allclose(out, ref, atol=2e-2, rtol=2e-2), f"mismatch vs reference: {max_err}"

    print("KERNEL_OK")
</pallas_src>

<mosaic_0001>
module attributes {stable_mosaic.version = 11 : i64} {
  func.func @resblock_kernel(%arg0: i32, %arg1: memref<1x16x128xf32, #tpu.memory_space<vmem>>, %arg2: memref<16x16xf32, #tpu.memory_space<vmem>>, %arg3: memref<1x128xf32, #tpu.memory_space<vmem>>, %arg4: memref<1x128xf32, #tpu.memory_space<vmem>>, %arg5: memref<128x384xbf16, #tpu.memory_space<vmem>>, %arg6: memref<1x384xf32, #tpu.memory_space<vmem>>, %arg7: memref<128x128xbf16, #tpu.memory_space<vmem>>, %arg8: memref<1x128xf32, #tpu.memory_space<vmem>>, %arg9: memref<1x128xf32, #tpu.memory_space<vmem>>, %arg10: memref<1x128xf32, #tpu.memory_space<vmem>>, %arg11: memref<128x512xbf16, #tpu.memory_space<vmem>>, %arg12: memref<1x512xf32, #tpu.memory_space<vmem>>, %arg13: memref<512x128xbf16, #tpu.memory_space<vmem>>, %arg14: memref<1x128xf32, #tpu.memory_space<vmem>>, %arg15: memref<1x16x128xf32, #tpu.memory_space<vmem>>) attributes {dimension_semantics = [#tpu.dimension_semantics<parallel>], iteration_bounds = array<i64: 2>, scalar_prefetch = 0 : i64, scratch_operands = 0 : i64, tpu.core_type = #tpu.core_type<tc>, window_params = [{transform_indices = @transform_0, window_bounds = array<i64: 1, 16, 128>}, {pipeline_mode = #tpu.pipeline_mode<synchronous>, transform_indices = @transform_1, window_bounds = array<i64: 16, 16>}, {pipeline_mode = #tpu.pipeline_mode<synchronous>, transform_indices = @transform_2, window_bounds = array<i64: 1, 128>}, {pipeline_mode = #tpu.pipeline_mode<synchronous>, transform_indices = @transform_3, window_bounds = array<i64: 1, 128>}, {pipeline_mode = #tpu.pipeline_mode<synchronous>, transform_indices = @transform_4, window_bounds = array<i64: 128, 384>}, {pipeline_mode = #tpu.pipeline_mode<synchronous>, transform_indices = @transform_5, window_bounds = array<i64: 1, 384>}, {pipeline_mode = #tpu.pipeline_mode<synchronous>, transform_indices = @transform_6, window_bounds = array<i64: 128, 128>}, {pipeline_mode = #tpu.pipeline_mode<synchronous>, transform_indices = @transform_7, window_bounds = array<i64: 1, 128>}, {pipeline_mode = #tpu.pipeline_mode<synchronous>, transform_indices = @transform_8, window_bounds = array<i64: 1, 128>}, {pipeline_mode = #tpu.pipeline_mode<synchronous>, transform_indices = @transform_9, window_bounds = array<i64: 1, 128>}, {pipeline_mode = #tpu.pipeline_mode<synchronous>, transform_indices = @transform_10, window_bounds = array<i64: 128, 512>}, {pipeline_mode = #tpu.pipeline_mode<synchronous>, transform_indices = @transform_11, window_bounds = array<i64: 1, 512>}, {pipeline_mode = #tpu.pipeline_mode<synchronous>, transform_indices = @transform_12, window_bounds = array<i64: 512, 128>}, {pipeline_mode = #tpu.pipeline_mode<synchronous>, transform_indices = @transform_13, window_bounds = array<i64: 1, 128>}, {transform_indices = @transform_14, window_bounds = array<i64: 1, 16, 128>}]} {
    %c0 = arith.constant 0 : index
    %c0_0 = arith.constant 0 : index
    %c0_1 = arith.constant 0 : index
    %0 = vector.load %arg1[%c0, %c0_0, %c0_1] : memref<1x16x128xf32, #tpu.memory_space<vmem>>, vector<1x16x128xf32>
    %1 = vector.shape_cast %0 : vector<1x16x128xf32> to vector<16x128xf32>
    %c0_2 = arith.constant 0 : index
    %c0_3 = arith.constant 0 : index
    %2 = vector.load %arg2[%c0_2, %c0_3] : memref<16x16xf32, #tpu.memory_space<vmem>>, vector<16x16xf32>
    %c0_4 = arith.constant 0 : index
    %c0_5 = arith.constant 0 : index
    %3 = vector.load %arg3[%c0_4, %c0_5] : memref<1x128xf32, #tpu.memory_space<vmem>>, vector<1x128xf32>
    %4 = vector.shape_cast %3 : vector<1x128xf32> to vector<128xf32>
    %c0_6 = arith.constant 0 : index
    %c0_7 = arith.constant 0 : index
    %5 = vector.load %arg4[%c0_6, %c0_7] : memref<1x128xf32, #tpu.memory_space<vmem>>, vector<1x128xf32>
    %6 = vector.shape_cast %5 : vector<1x128xf32> to vector<128xf32>
    %cst = arith.constant dense<0.000000e+00> : vector<16xf32>
    %7 = vector.multi_reduction <add>, %1, %cst [1] : vector<16x128xf32> to vector<16xf32>
    %8 = vector.shape_cast %7 : vector<16xf32> to vector<16x1xf32>
    %cst_8 = arith.constant 1.280000e+02 : f32
    %9 = vector.broadcast %cst_8 : f32 to vector<16x1xf32>
    %10 = arith.divf %8, %9 : vector<16x1xf32>
    %11 = vector.broadcast %10 : vector<16x1xf32> to vector<16x128xf32>
    %12 = arith.subf %1, %11 : vector<16x128xf32>
    %13 = arith.mulf %12, %12 : vector<16x128xf32>
    %cst_9 = arith.constant dense<0.000000e+00> : vector<16xf32>
    %14 = vector.multi_reduction <add>, %13, %cst_9 [1] : vector<16x128xf32> to vector<16xf32>
    %15 = vector.shape_cast %14 : vector<16xf32> to vector<16x1xf32>
    %cst_10 = arith.constant 1.280000e+02 : f32
    %16 = vector.broadcast %cst_10 : f32 to vector<16x1xf32>
    %17 = arith.divf %15, %16 : vector<16x1xf32>
    %18 = vector.broadcast %10 : vector<16x1xf32> to vector<16x128xf32>
    %19 = arith.subf %1, %18 : vector<16x128xf32>
    %cst_11 = arith.constant 9.99999974E-6 : f32
    %20 = vector.broadcast %cst_11 : f32 to vector<16x1xf32>
    %21 = arith.addf %17, %20 : vector<16x1xf32>
    %22 = math.rsqrt %21 : vector<16x1xf32>
    %23 = vector.broadcast %22 : vector<16x1xf32> to vector<16x128xf32>
    %24 = arith.mulf %19, %23 : vector<16x128xf32>
    %25 = vector.shape_cast %4 : vector<128xf32> to vector<1x128xf32>
    %26 = vector.broadcast %25 : vector<1x128xf32> to vector<16x128xf32>
    %27 = arith.mulf %24, %26 : vector<16x128xf32>
    %28 = vector.shape_cast %6 : vector<128xf32> to vector<1x128xf32>
    %29 = vector.broadcast %28 : vector<1x128xf32> to vector<16x128xf32>
    %30 = arith.addf %27, %29 : vector<16x128xf32>
    %31 = arith.truncf %30 : vector<16x128xf32> to vector<16x128xbf16>
    %c0_12 = arith.constant 0 : index
    %c0_13 = arith.constant 0 : index
    %32 = vector.load %arg5[%c0_12, %c0_13] : memref<128x384xbf16, #tpu.memory_space<vmem>>, vector<128x384xbf16>
    %cst_14 = arith.constant dense<0.000000e+00> : vector<16x384xf32>
    %33 = tpu.matmul %31, %32, %cst_14 {dimension_numbers = #tpu.dot_dimension_numbers<[1], [0], [0], [1], [0, 0, 1, 1], [], []>} : vector<16x128xbf16>, vector<128x384xbf16>, vector<16x384xf32> -> vector<16x384xf32>
    %c0_15 = arith.constant 0 : index
    %c0_16 = arith.constant 0 : index
    %34 = vector.load %arg6[%c0_15, %c0_16] : memref<1x384xf32, #tpu.memory_space<vmem>>, vector<1x384xf32>
    %35 = vector.shape_cast %34 : vector<1x384xf32> to vector<384xf32>
    %36 = vector.shape_cast %35 : vector<384xf32> to vector<1x384xf32>
    %37 = vector.broadcast %36 : vector<1x384xf32> to vector<16x384xf32>
    %38 = arith.addf %33, %37 : vector<16x384xf32>
    %39 = vector.extract_strided_slice %38 {offsets = [0, 0], sizes = [16, 128], strides = [1, 1]} : vector<16x384xf32> to vector<16x128xf32>
    %40 = vector.shape_cast %39 : vector<16x128xf32> to vector<16x4x32xf32>
    %41 = tpu.transpose %40, [1, 0, 2] : vector<16x4x32xf32> -> vector<4x16x32xf32>
    %42 = arith.truncf %41 : vector<4x16x32xf32> to vector<4x16x32xbf16>
    %43 = vector.extract_strided_slice %38 {offsets = [0, 128], sizes = [16, 128], strides = [1, 1]} : vector<16x384xf32> to vector<16x128xf32>
    %44 = vector.shape_cast %43 : vector<16x128xf32> to vector<16x4x32xf32>
    %45 = tpu.transpose %44, [1, 0, 2] : vector<16x4x32xf32> -> vector<4x16x32xf32>
    %46 = arith.truncf %45 : vector<4x16x32xf32> to vector<4x16x32xbf16>
    %47 = vector.extract_strided_slice %38 {offsets = [0, 256], sizes = [16, 128], strides = [1, 1]} : vector<16x384xf32> to vector<16x128xf32>
    %48 = vector.shape_cast %47 : vector<16x128xf32> to vector<16x4x32xf32>
    %49 = tpu.transpose %48, [1, 0, 2] : vector<16x4x32xf32> -> vector<4x16x32xf32>
    %50 = arith.truncf %49 : vector<4x16x32xf32> to vector<4x16x32xbf16>
    "tpu.trace_start"() <{level = 10 : i32, message = "hqd,hkd->hqk"}> : () -> ()
    %cst_17 = arith.constant dense<0.000000e+00> : vector<4x16x16xf32>
    %51 = tpu.matmul %42, %46, %cst_17 {dimension_numbers = #tpu.dot_dimension_numbers<[2], [2], [1], [1], [0, 0, 0, 1, 1, 1], [0], [0]>} : vector<4x16x32xbf16>, vector<4x16x32xbf16>, vector<4x16x16xf32> -> vector<4x16x16xf32>
    "tpu.trace_stop"() : () -> ()
    %cst_18 = arith.constant 0.176776692 : f32
    %52 = vector.broadcast %cst_18 : f32 to vector<4x16x16xf32>
    %53 = arith.mulf %51, %52 : vector<4x16x16xf32>
    %54 = vector.shape_cast %2 : vector<16x16xf32> to vector<1x16x16xf32>
    %55 = vector.broadcast %54 : vector<1x16x16xf32> to vector<4x16x16xf32>
    %56 = arith.addf %53, %55 : vector<4x16x16xf32>
    %cst_19 = arith.constant dense<0xFF800000> : vector<4x16xf32>
    %57 = vector.multi_reduction <maximumf>, %56, %cst_19 [2] : vector<4x16x16xf32> to vector<4x16xf32>
    %58 = vector.shape_cast %57 : vector<4x16xf32> to vector<4x16x1xf32>
    %59 = vector.broadcast %58 : vector<4x16x1xf32> to vector<4x16x16xf32>
    %60 = arith.subf %56, %59 : vector<4x16x16xf32>
    %61 = math.exp %60 : vector<4x16x16xf32>
    %cst_20 = arith.constant dense<0.000000e+00> : vector<4x16xf32>
    %62 = vector.multi_reduction <add>, %61, %cst_20 [2] : vector<4x16x16xf32> to vector<4x16xf32>
    %63 = vector.shape_cast %62 : vector<4x16xf32> to vector<4x16x1xf32>
    %64 = tpu.reciprocal %63 {approx = true} : vector<4x16x1xf32> -> vector<4x16x1xf32>
    %65 = vector.broadcast %64 : vector<4x16x1xf32> to vector<4x16x16xf32>
    %66 = arith.mulf %61, %65 : vector<4x16x16xf32>
    %67 = arith.truncf %66 : vector<4x16x16xf32> to vector<4x16x16xbf16>
    "tpu.trace_start"() <{level = 10 : i32, message = "hqk,hkd->qhd"}> : () -> ()
    %cst_21 = arith.constant dense<0.000000e+00> : vector<4x32x16xf32>
    %68 = tpu.matmul %50, %67, %cst_21 {dimension_numbers = #tpu.dot_dimension_numbers<[1], [2], [2], [1], [0, 0, 0, 2, 1, 1], [0], [0]>} : vector<4x16x32xbf16>, vector<4x16x16xbf16>, vector<4x32x16xf32> -> vector<4x32x16xf32>
    %69 = tpu.transpose %68, [2, 0, 1] : vector<4x32x16xf32> -> vector<16x4x32xf32>
    "tpu.trace_stop"() : () -> ()
    %70 = vector.shape_cast %69 : vector<16x4x32xf32> to vector<16x128xf32>
    %71 = arith.truncf %70 : vector<16x128xf32> to vector<16x128xbf16>
    %c0_22 = arith.constant 0 : index
    %c0_23 = arith.constant 0 : index
    %72 = vector.load %arg7[%c0_22, %c0_23] : memref<128x128xbf16, #tpu.memory_space<vmem>>, vector<128x128xbf16>
    %cst_24 = arith.constant dense<0.000000e+00> : vector<16x128xf32>
    %73 = tpu.matmul %71, %72, %cst_24 {dimension_numbers = #tpu.dot_dimension_numbers<[1], [0], [0], [1], [0, 0, 1, 1], [], []>} : vector<16x128xbf16>, vector<128x128xbf16>, vector<16x128xf32> -> vector<16x128xf32>
    %c0_25 = arith.constant 0 : index
    %c0_26 = arith.constant 0 : index
    %74 = vector.load %arg8[%c0_25, %c0_26] : memref<1x128xf32, #tpu.memory_space<vmem>>, vector<1x128xf32>
    %75 = vector.shape_cast %74 : vector<1x128xf32> to vector<128xf32>
    %76 = vector.shape_cast %75 : vector<128xf32> to vector<1x128xf32>
    %77 = vector.broadcast %76 : vector<1x128xf32> to vector<16x128xf32>
    %78 = arith.addf %73, %77 : vector<16x128xf32>
    %79 = arith.addf %1, %78 : vector<16x128xf32>
    %c0_27 = arith.constant 0 : index
    %c0_28 = arith.constant 0 : index
    %80 = vector.load %arg9[%c0_27, %c0_28] : memref<1x128xf32, #tpu.memory_space<vmem>>, vector<1x128xf32>
    %81 = vector.shape_cast %80 : vector<1x128xf32> to vector<128xf32>
    %c0_29 = arith.constant 0 : index
    %c0_30 = arith.constant 0 : index
    %82 = vector.load %arg10[%c0_29, %c0_30] : memref<1x128xf32, #tpu.memory_space<vmem>>, vector<1x128xf32>
    %83 = vector.shape_cast %82 : vector<1x128xf32> to vector<128xf32>
    %cst_31 = arith.constant dense<0.000000e+00> : vector<16xf32>
    %84 = vector.multi_reduction <add>, %79, %cst_31 [1] : vector<16x128xf32> to vector<16xf32>
    %85 = vector.shape_cast %84 : vector<16xf32> to vector<16x1xf32>
    %cst_32 = arith.constant 1.280000e+02 : f32
    %86 = vector.broadcast %cst_32 : f32 to vector<16x1xf32>
    %87 = arith.divf %85, %86 : vector<16x1xf32>
    %88 = vector.broadcast %87 : vector<16x1xf32> to vector<16x128xf32>
    %89 = arith.subf %79, %88 : vector<16x128xf32>
    %90 = arith.mulf %89, %89 : vector<16x128xf32>
    %cst_33 = arith.constant dense<0.000000e+00> : vector<16xf32>
    %91 = vector.multi_reduction <add>, %90, %cst_33 [1] : vector<16x128xf32> to vector<16xf32>
    %92 = vector.shape_cast %91 : vector<16xf32> to vector<16x1xf32>
    %cst_34 = arith.constant 1.280000e+02 : f32
    %93 = vector.broadcast %cst_34 : f32 to vector<16x1xf32>
    %94 = arith.divf %92, %93 : vector<16x1xf32>
    %95 = vector.broadcast %87 : vector<16x1xf32> to vector<16x128xf32>
    %96 = arith.subf %79, %95 : vector<16x128xf32>
    %cst_35 = arith.constant 9.99999974E-6 : f32
    %97 = vector.broadcast %cst_35 : f32 to vector<16x1xf32>
    %98 = arith.addf %94, %97 : vector<16x1xf32>
    %99 = math.rsqrt %98 : vector<16x1xf32>
    %100 = vector.broadcast %99 : vector<16x1xf32> to vector<16x128xf32>
    %101 = arith.mulf %96, %100 : vector<16x128xf32>
    %102 = vector.shape_cast %81 : vector<128xf32> to vector<1x128xf32>
    %103 = vector.broadcast %102 : vector<1x128xf32> to vector<16x128xf32>
    %104 = arith.mulf %101, %103 : vector<16x128xf32>
    %105 = vector.shape_cast %83 : vector<128xf32> to vector<1x128xf32>
    %106 = vector.broadcast %105 : vector<1x128xf32> to vector<16x128xf32>
    %107 = arith.addf %104, %106 : vector<16x128xf32>
    %108 = arith.truncf %107 : vector<16x128xf32> to vector<16x128xbf16>
    %c0_36 = arith.constant 0 : index
    %c0_37 = arith.constant 0 : index
    %109 = vector.load %arg11[%c0_36, %c0_37] : memref<128x512xbf16, #tpu.memory_space<vmem>>, vector<128x512xbf16>
    %cst_38 = arith.constant dense<0.000000e+00> : vector<16x512xf32>
    %110 = tpu.matmul %108, %109, %cst_38 {dimension_numbers = #tpu.dot_dimension_numbers<[1], [0], [0], [1], [0, 0, 1, 1], [], []>} : vector<16x128xbf16>, vector<128x512xbf16>, vector<16x512xf32> -> vector<16x512xf32>
    %c0_39 = arith.constant 0 : index
    %c0_40 = arith.constant 0 : index
    %111 = vector.load %arg12[%c0_39, %c0_40] : memref<1x512xf32, #tpu.memory_space<vmem>>, vector<1x512xf32>
    %112 = vector.shape_cast %111 : vector<1x512xf32> to vector<512xf32>
    %113 = vector.shape_cast %112 : vector<512xf32> to vector<1x512xf32>
    %114 = vector.broadcast %113 : vector<1x512xf32> to vector<16x512xf32>
    %115 = arith.addf %110, %114 : vector<16x512xf32>
    %cst_41 = arith.constant 1.702000e+00 : f32
    %116 = vector.broadcast %cst_41 : f32 to vector<16x512xf32>
    %117 = arith.mulf %116, %115 : vector<16x512xf32>
    %118 = arith.negf %117 : vector<16x512xf32>
    %119 = math.exp %118 : vector<16x512xf32>
    %cst_42 = arith.constant 1.000000e+00 : f32
    %120 = vector.broadcast %cst_42 : f32 to vector<16x512xf32>
    %121 = arith.addf %120, %119 : vector<16x512xf32>
    %122 = arith.divf %120, %121 : vector<16x512xf32>
    %123 = arith.mulf %115, %122 : vector<16x512xf32>
    %124 = arith.truncf %123 : vector<16x512xf32> to vector<16x512xbf16>
    %c0_43 = arith.constant 0 : index
    %c0_44 = arith.constant 0 : index
    %125 = vector.load %arg13[%c0_43, %c0_44] : memref<512x128xbf16, #tpu.memory_space<vmem>>, vector<512x128xbf16>
    %cst_45 = arith.constant dense<0.000000e+00> : vector<16x128xf32>
    %126 = tpu.matmul %124, %125, %cst_45 {dimension_numbers = #tpu.dot_dimension_numbers<[1], [0], [0], [1], [0, 0, 1, 1], [], []>} : vector<16x512xbf16>, vector<512x128xbf16>, vector<16x128xf32> -> vector<16x128xf32>
    %c0_46 = arith.constant 0 : index
    %c0_47 = arith.constant 0 : index
    %127 = vector.load %arg14[%c0_46, %c0_47] : memref<1x128xf32, #tpu.memory_space<vmem>>, vector<1x128xf32>
    %128 = vector.shape_cast %127 : vector<1x128xf32> to vector<128xf32>
    %129 = vector.shape_cast %128 : vector<128xf32> to vector<1x128xf32>
    %130 = vector.broadcast %129 : vector<1x128xf32> to vector<16x128xf32>
    %131 = arith.addf %126, %130 : vector<16x128xf32>
    %132 = arith.addf %79, %131 : vector<16x128xf32>
    %c0_48 = arith.constant 0 : index
    %c0_49 = arith.constant 0 : index
    %c0_50 = arith.constant 0 : index
    %133 = vector.load %arg15[%c0_48, %c0_49, %c0_50] : memref<1x16x128xf32, #tpu.memory_space<vmem>>, vector<1x16x128xf32>
    %134 = vector.shape_cast %133 : vector<1x16x128xf32> to vector<16x128xf32>
    %135 = vector.shape_cast %132 : vector<16x128xf32> to vector<1x16x128xf32>
    tpu.vector_store %arg15[%c0_48, %c0_49, %c0_50], %135 {strides = array<i32>} : memref<1x16x128xf32, #tpu.memory_space<vmem>>, vector<1x16x128xf32>,
    return
  }
  func.func @transform_0(%arg0: i32) -> (i32, i32, i32) {
    %c0_i32 = arith.constant 0 : i32
    %c0_i32_0 = arith.constant 0 : i32
    %c0_i32_1 = arith.constant 0 : i32
    return %arg0, %c0_i32, %c0_i32_0 : i32, i32, i32
  }
  func.func @transform_1(%arg0: i32) -> (i32, i32) {
    %c0_i32 = arith.constant 0 : i32
    %c0_i32_0 = arith.constant 0 : i32
    %c0_i32_1 = arith.constant 0 : i32
    return %c0_i32, %c0_i32_0 : i32, i32
  }
  func.func @transform_2(%arg0: i32) -> (i32, i32) {
    %c0_i32 = arith.constant 0 : i32
    %c0_i32_0 = arith.constant 0 : i32
    %c0_i32_1 = arith.constant 0 : i32
    return %c0_i32, %c0_i32_0 : i32, i32
  }
  func.func @transform_3(%arg0: i32) -> (i32, i32) {
    %c0_i32 = arith.constant 0 : i32
    %c0_i32_0 = arith.constant 0 : i32
    %c0_i32_1 = arith.constant 0 : i32
    return %c0_i32, %c0_i32_0 : i32, i32
  }
  func.func @transform_4(%arg0: i32) -> (i32, i32) {
    %c0_i32 = arith.constant 0 : i32
    %c0_i32_0 = arith.constant 0 : i32
    %c0_i32_1 = arith.constant 0 : i32
    return %c0_i32, %c0_i32_0 : i32, i32
  }
  func.func @transform_5(%arg0: i32) -> (i32, i32) {
    %c0_i32 = arith.constant 0 : i32
    %c0_i32_0 = arith.constant 0 : i32
    %c0_i32_1 = arith.constant 0 : i32
    return %c0_i32, %c0_i32_0 : i32, i32
  }
  func.func @transform_6(%arg0: i32) -> (i32, i32) {
    %c0_i32 = arith.constant 0 : i32
    %c0_i32_0 = arith.constant 0 : i32
    %c0_i32_1 = arith.constant 0 : i32
    return %c0_i32, %c0_i32_0 : i32, i32
  }
  func.func @transform_7(%arg0: i32) -> (i32, i32) {
    %c0_i32 = arith.constant 0 : i32
    %c0_i32_0 = arith.constant 0 : i32
    %c0_i32_1 = arith.constant 0 : i32
    return %c0_i32, %c0_i32_0 : i32, i32
  }
  func.func @transform_8(%arg0: i32) -> (i32, i32) {
    %c0_i32 = arith.constant 0 : i32
    %c0_i32_0 = arith.constant 0 : i32
    %c0_i32_1 = arith.constant 0 : i32
    return %c0_i32, %c0_i32_0 : i32, i32
  }
  func.func @transform_9(%arg0: i32) -> (i32, i32) {
    %c0_i32 = arith.constant 0 : i32
    %c0_i32_0 = arith.constant 0 : i32
    %c0_i32_1 = arith.constant 0 : i32
    return %c0_i32, %c0_i32_0 : i32, i32
  }
  func.func @transform_10(%arg0: i32) -> (i32, i32) {
    %c0_i32 = arith.constant 0 : i32
    %c0_i32_0 = arith.constant 0 : i32
    %c0_i32_1 = arith.constant 0 : i32
    return %c0_i32, %c0_i32_0 : i32, i32
  }
  func.func @transform_11(%arg0: i32) -> (i32, i32) {
    %c0_i32 = arith.constant 0 : i32
    %c0_i32_0 = arith.constant 0 : i32
    %c0_i32_1 = arith.constant 0 : i32
    return %c0_i32, %c0_i32_0 : i32, i32
  }
  func.func @transform_12(%arg0: i32) -> (i32, i32) {
    %c0_i32 = arith.constant 0 : i32
    %c0_i32_0 = arith.constant 0 : i32
    %c0_i32_1 = arith.constant 0 : i32
    return %c0_i32, %c0_i32_0 : i32, i32
  }
  func.func @transform_13(%arg0: i32) -> (i32, i32) {
    %c0_i32 = arith.constant 0 : i32
    %c0_i32_0 = arith.constant 0 : i32
    %c0_i32_1 = arith.constant 0 : i32
    return %c0_i32, %c0_i32_0 : i32, i32
  }
  func.func @transform_14(%arg0: i32) -> (i32, i32, i32) {
    %c0_i32 = arith.constant 0 : i32
    %c0_i32_0 = arith.constant 0 : i32
    %c0_i32_1 = arith.constant 0 : i32
    return %arg0, %c0_i32, %c0_i32_0 : i32, i32, i32
  }
}

module attributes {stable_mosaic.version = 11 : i64} {
  func.func @resblock_kernel(%arg0: i32, %arg1: memref<1x16x128xf32, #tpu.memory_space<vmem>>, %arg2: memref<16x16xf32, #tpu.memory_space<vmem>>, %arg3: memref<1x128xf32, #tpu.memory_space<vmem>>, %arg4: memref<1x128xf32, #tpu.memory_space<vmem>>, %arg5: memref<128x384xbf16, #tpu.memory_space<vmem>>, %arg6: memref<1x384xf32, #tpu.memory_space<vmem>>, %arg7: memref<128x128xbf16, #tpu.memory_space<vmem>>, %arg8: memref<1x128xf32, #tpu.memory_space<vmem>>, %arg9: memref<1x128xf32, #tpu.memory_space<vmem>>, %arg10: memref<1x128xf32, #tpu.memory_space<vmem>>, %arg11: memref<128x512xbf16, #tpu.memory_space<vmem>>, %arg12: memref<1x512xf32, #tpu.memory_space<vmem>>, %arg13: memref<512x128xbf16, #tpu.memory_space<vmem>>, %arg14: memref<1x128xf32, #tpu.memory_space<vmem>>, %arg15: memref<1x16x128xf32, #tpu.memory_space<vmem>>) attributes {dimension_semantics = [#tpu.dimension_semantics<parallel>], iteration_bounds = array<i64: 2>, scalar_prefetch = 0 : i64, scratch_operands = 0 : i64, tpu.core_type = #tpu.core_type<tc>, window_params = [{transform_indices = @transform_0, window_bounds = array<i64: 1, 16, 128>}, {pipeline_mode = #tpu.pipeline_mode<synchronous>, transform_indices = @transform_1, window_bounds = array<i64: 16, 16>}, {pipeline_mode = #tpu.pipeline_mode<synchronous>, transform_indices = @transform_2, window_bounds = array<i64: 1, 128>}, {pipeline_mode = #tpu.pipeline_mode<synchronous>, transform_indices = @transform_3, window_bounds = array<i64: 1, 128>}, {pipeline_mode = #tpu.pipeline_mode<synchronous>, transform_indices = @transform_4, window_bounds = array<i64: 128, 384>}, {pipeline_mode = #tpu.pipeline_mode<synchronous>, transform_indices = @transform_5, window_bounds = array<i64: 1, 384>}, {pipeline_mode = #tpu.pipeline_mode<synchronous>, transform_indices = @transform_6, window_bounds = array<i64: 128, 128>}, {pipeline_mode = #tpu.pipeline_mode<synchronous>, transform_indices = @transform_7, window_bounds = array<i64: 1, 128>}, {pipeline_mode = #tpu.pipeline_mode<synchronous>, transform_indices = @transform_8, window_bounds = array<i64: 1, 128>}, {pipeline_mode = #tpu.pipeline_mode<synchronous>, transform_indices = @transform_9, window_bounds = array<i64: 1, 128>}, {pipeline_mode = #tpu.pipeline_mode<synchronous>, transform_indices = @transform_10, window_bounds = array<i64: 128, 512>}, {pipeline_mode = #tpu.pipeline_mode<synchronous>, transform_indices = @transform_11, window_bounds = array<i64: 1, 512>}, {pipeline_mode = #tpu.pipeline_mode<synchronous>, transform_indices = @transform_12, window_bounds = array<i64: 512, 128>}, {pipeline_mode = #tpu.pipeline_mode<synchronous>, transform_indices = @transform_13, window_bounds = array<i64: 1, 128>}, {transform_indices = @transform_14, window_bounds = array<i64: 1, 16, 128>}]} {
    %c0 = arith.constant 0 : index
    %c0_0 = arith.constant 0 : index
    %c0_1 = arith.constant 0 : index
    %0 = vector.load %arg1[%c0, %c0_0, %c0_1] : memref<1x16x128xf32, #tpu.memory_space<vmem>>, vector<1x16x128xf32>
    %1 = vector.shape_cast %0 : vector<1x16x128xf32> to vector<16x128xf32>
    %c0_2 = arith.constant 0 : index
    %c0_3 = arith.constant 0 : index
    %2 = vector.load %arg2[%c0_2, %c0_3] : memref<16x16xf32, #tpu.memory_space<vmem>>, vector<16x16xf32>
    %c0_4 = arith.constant 0 : index
    %c0_5 = arith.constant 0 : index
    %3 = vector.load %arg3[%c0_4, %c0_5] : memref<1x128xf32, #tpu.memory_space<vmem>>, vector<1x128xf32>
    %4 = vector.shape_cast %3 : vector<1x128xf32> to vector<128xf32>
    %c0_6 = arith.constant 0 : index
    %c0_7 = arith.constant 0 : index
    %5 = vector.load %arg4[%c0_6, %c0_7] : memref<1x128xf32, #tpu.memory_space<vmem>>, vector<1x128xf32>
    %6 = vector.shape_cast %5 : vector<1x128xf32> to vector<128xf32>
    %cst = arith.constant dense<0.000000e+00> : vector<16xf32>
    %7 = vector.multi_reduction <add>, %1, %cst [1] : vector<16x128xf32> to vector<16xf32>
    %8 = vector.shape_cast %7 : vector<16xf32> to vector<16x1xf32>
    %cst_8 = arith.constant 1.280000e+02 : f32
    %9 = vector.broadcast %cst_8 : f32 to vector<16x1xf32>
    %10 = arith.divf %8, %9 : vector<16x1xf32>
    %11 = vector.broadcast %10 : vector<16x1xf32> to vector<16x128xf32>
    %12 = arith.subf %1, %11 : vector<16x128xf32>
    %13 = arith.mulf %12, %12 : vector<16x128xf32>
    %cst_9 = arith.constant dense<0.000000e+00> : vector<16xf32>
    %14 = vector.multi_reduction <add>, %13, %cst_9 [1] : vector<16x128xf32> to vector<16xf32>
    %15 = vector.shape_cast %14 : vector<16xf32> to vector<16x1xf32>
    %cst_10 = arith.constant 1.280000e+02 : f32
    %16 = vector.broadcast %cst_10 : f32 to vector<16x1xf32>
    %17 = arith.divf %15, %16 : vector<16x1xf32>
    %18 = vector.broadcast %10 : vector<16x1xf32> to vector<16x128xf32>
    %19 = arith.subf %1, %18 : vector<16x128xf32>
    %cst_11 = arith.constant 9.99999974E-6 : f32
    %20 = vector.broadcast %cst_11 : f32 to vector<16x1xf32>
    %21 = arith.addf %17, %20 : vector<16x1xf32>
    %22 = math.rsqrt %21 : vector<16x1xf32>
    %23 = vector.broadcast %22 : vector<16x1xf32> to vector<16x128xf32>
    %24 = arith.mulf %19, %23 : vector<16x128xf32>
    %25 = vector.shape_cast %4 : vector<128xf32> to vector<1x128xf32>
    %26 = vector.broadcast %25 : vector<1x128xf32> to vector<16x128xf32>
    %27 = arith.mulf %24, %26 : vector<16x128xf32>
    %28 = vector.shape_cast %6 : vector<128xf32> to vector<1x128xf32>
    %29 = vector.broadcast %28 : vector<1x128xf32> to vector<16x128xf32>
    %30 = arith.addf %27, %29 : vector<16x128xf32>
    %31 = arith.truncf %30 : vector<16x128xf32> to vector<16x128xbf16>
    %c0_12 = arith.constant 0 : index
    %c0_13 = arith.constant 0 : index
    %32 = vector.load %arg5[%c0_12, %c0_13] : memref<128x384xbf16, #tpu.memory_space<vmem>>, vector<128x384xbf16>
    %cst_14 = arith.constant dense<0.000000e+00> : vector<16x384xf32>
    %33 = tpu.matmul %31, %32, %cst_14 {dimension_numbers = #tpu.dot_dimension_numbers<[1], [0], [0], [1], [0, 0, 1, 1], [], []>} : vector<16x128xbf16>, vector<128x384xbf16>, vector<16x384xf32> -> vector<16x384xf32>
    %c0_15 = arith.constant 0 : index
    %c0_16 = arith.constant 0 : index
    %34 = vector.load %arg6[%c0_15, %c0_16] : memref<1x384xf32, #tpu.memory_space<vmem>>, vector<1x384xf32>
    %35 = vector.shape_cast %34 : vector<1x384xf32> to vector<384xf32>
    %36 = vector.shape_cast %35 : vector<384xf32> to vector<1x384xf32>
    %37 = vector.broadcast %36 : vector<1x384xf32> to vector<16x384xf32>
    %38 = arith.addf %33, %37 : vector<16x384xf32>
    %39 = vector.extract_strided_slice %38 {offsets = [0, 0], sizes = [16, 128], strides = [1, 1]} : vector<16x384xf32> to vector<16x128xf32>
    %40 = vector.shape_cast %39 : vector<16x128xf32> to vector<16x4x32xf32>
    %41 = tpu.transpose %40, [1, 0, 2] : vector<16x4x32xf32> -> vector<4x16x32xf32>
    %42 = arith.truncf %41 : vector<4x16x32xf32> to vector<4x16x32xbf16>
    %43 = vector.extract_strided_slice %38 {offsets = [0, 128], sizes = [16, 128], strides = [1, 1]} : vector<16x384xf32> to vector<16x128xf32>
    %44 = vector.shape_cast %43 : vector<16x128xf32> to vector<16x4x32xf32>
    %45 = tpu.transpose %44, [1, 0, 2] : vector<16x4x32xf32> -> vector<4x16x32xf32>
    %46 = arith.truncf %45 : vector<4x16x32xf32> to vector<4x16x32xbf16>
    %47 = vector.extract_strided_slice %38 {offsets = [0, 256], sizes = [16, 128], strides = [1, 1]} : vector<16x384xf32> to vector<16x128xf32>
    %48 = vector.shape_cast %47 : vector<16x128xf32> to vector<16x4x32xf32>
    %49 = tpu.transpose %48, [1, 0, 2] : vector<16x4x32xf32> -> vector<4x16x32xf32>
    %50 = arith.truncf %49 : vector<4x16x32xf32> to vector<4x16x32xbf16>
    "tpu.trace_start"() <{level = 10 : i32, message = "hqd,hkd->hqk"}> : () -> ()
    %cst_17 = arith.constant dense<0.000000e+00> : vector<4x16x16xf32>
    %51 = tpu.matmul %42, %46, %cst_17 {dimension_numbers = #tpu.dot_dimension_numbers<[2], [2], [1], [1], [0, 0, 0, 1, 1, 1], [0], [0]>} : vector<4x16x32xbf16>, vector<4x16x32xbf16>, vector<4x16x16xf32> -> vector<4x16x16xf32>
    "tpu.trace_stop"() : () -> ()
    %cst_18 = arith.constant 0.176776692 : f32
    %52 = vector.broadcast %cst_18 : f32 to vector<4x16x16xf32>
    %53 = arith.mulf %51, %52 : vector<4x16x16xf32>
    %54 = vector.shape_cast %2 : vector<16x16xf32> to vector<1x16x16xf32>
    %55 = vector.broadcast %54 : vector<1x16x16xf32> to vector<4x16x16xf32>
    %56 = arith.addf %53, %55 : vector<4x16x16xf32>
    %cst_19 = arith.constant dense<0xFF800000> : vector<4x16xf32>
    %57 = vector.multi_reduction <maximumf>, %56, %cst_19 [2] : vector<4x16x16xf32> to vector<4x16xf32>
    %58 = vector.shape_cast %57 : vector<4x16xf32> to vector<4x16x1xf32>
    %59 = vector.broadcast %58 : vector<4x16x1xf32> to vector<4x16x16xf32>
    %60 = arith.subf %56, %59 : vector<4x16x16xf32>
    %61 = math.exp %60 : vector<4x16x16xf32>
    %cst_20 = arith.constant dense<0.000000e+00> : vector<4x16xf32>
    %62 = vector.multi_reduction <add>, %61, %cst_20 [2] : vector<4x16x16xf32> to vector<4x16xf32>
    %63 = vector.shape_cast %62 : vector<4x16xf32> to vector<4x16x1xf32>
    %64 = tpu.reciprocal %63 {approx = true} : vector<4x16x1xf32> -> vector<4x16x1xf32>
    %65 = vector.broadcast %64 : vector<4x16x1xf32> to vector<4x16x16xf32>
    %66 = arith.mulf %61, %65 : vector<4x16x16xf32>
    %67 = arith.truncf %66 : vector<4x16x16xf32> to vector<4x16x16xbf16>
    "tpu.trace_start"() <{level = 10 : i32, message = "hqk,hkd->qhd"}> : () -> ()
    %cst_21 = arith.constant dense<0.000000e+00> : vector<4x32x16xf32>
    %68 = tpu.matmul %50, %67, %cst_21 {dimension_numbers = #tpu.dot_dimension_numbers<[1], [2], [2], [1], [0, 0, 0, 2, 1, 1], [0], [0]>} : vector<4x16x32xbf16>, vector<4x16x16xbf16>, vector<4x32x16xf32> -> vector<4x32x16xf32>
    %69 = tpu.transpose %68, [2, 0, 1] : vector<4x32x16xf32> -> vector<16x4x32xf32>
    "tpu.trace_stop"() : () -> ()
    %70 = vector.shape_cast %69 : vector<16x4x32xf32> to vector<16x128xf32>
    %71 = arith.truncf %70 : vector<16x128xf32> to vector<16x128xbf16>
    %c0_22 = arith.constant 0 : index
    %c0_23 = arith.constant 0 : index
    %72 = vector.load %arg7[%c0_22, %c0_23] : memref<128x128xbf16, #tpu.memory_space<vmem>>, vector<128x128xbf16>
    %cst_24 = arith.constant dense<0.000000e+00> : vector<16x128xf32>
    %73 = tpu.matmul %71, %72, %cst_24 {dimension_numbers = #tpu.dot_dimension_numbers<[1], [0], [0], [1], [0, 0, 1, 1], [], []>} : vector<16x128xbf16>, vector<128x128xbf16>, vector<16x128xf32> -> vector<16x128xf32>
    %c0_25 = arith.constant 0 : index
    %c0_26 = arith.constant 0 : index
    %74 = vector.load %arg8[%c0_25, %c0_26] : memref<1x128xf32, #tpu.memory_space<vmem>>, vector<1x128xf32>
    %75 = vector.shape_cast %74 : vector<1x128xf32> to vector<128xf32>
    %76 = vector.shape_cast %75 : vector<128xf32> to vector<1x128xf32>
    %77 = vector.broadcast %76 : vector<1x128xf32> to vector<16x128xf32>
    %78 = arith.addf %73, %77 : vector<16x128xf32>
    %79 = arith.addf %1, %78 : vector<16x128xf32>
    %c0_27 = arith.constant 0 : index
    %c0_28 = arith.constant 0 : index
    %80 = vector.load %arg9[%c0_27, %c0_28] : memref<1x128xf32, #tpu.memory_space<vmem>>, vector<1x128xf32>
    %81 = vector.shape_cast %80 : vector<1x128xf32> to vector<128xf32>
    %c0_29 = arith.constant 0 : index
    %c0_30 = arith.constant 0 : index
    %82 = vector.load %arg10[%c0_29, %c0_30] : memref<1x128xf32, #tpu.memory_space<vmem>>, vector<1x128xf32>
    %83 = vector.shape_cast %82 : vector<1x128xf32> to vector<128xf32>
    %cst_31 = arith.constant dense<0.000000e+00> : vector<16xf32>
    %84 = vector.multi_reduction <add>, %79, %cst_31 [1] : vector<16x128xf32> to vector<16xf32>
    %85 = vector.shape_cast %84 : vector<16xf32> to vector<16x1xf32>
    %cst_32 = arith.constant 1.280000e+02 : f32
    %86 = vector.broadcast %cst_32 : f32 to vector<16x1xf32>
    %87 = arith.divf %85, %86 : vector<16x1xf32>
    %88 = vector.broadcast %87 : vector<16x1xf32> to vector<16x128xf32>
    %89 = arith.subf %79, %88 : vector<16x128xf32>
    %90 = arith.mulf %89, %89 : vector<16x128xf32>
    %cst_33 = arith.constant dense<0.000000e+00> : vector<16xf32>
    %91 = vector.multi_reduction <add>, %90, %cst_33 [1] : vector<16x128xf32> to vector<16xf32>
    %92 = vector.shape_cast %91 : vector<16xf32> to vector<16x1xf32>
    %cst_34 = arith.constant 1.280000e+02 : f32
    %93 = vector.broadcast %cst_34 : f32 to vector<16x1xf32>
    %94 = arith.divf %92, %93 : vector<16x1xf32>
    %95 = vector.broadcast %87 : vector<16x1xf32> to vector<16x128xf32>
    %96 = arith.subf %79, %95 : vector<16x128xf32>
    %cst_35 = arith.constant 9.99999974E-6 : f32
    %97 = vector.broadcast %cst_35 : f32 to vector<16x1xf32>
    %98 = arith.addf %94, %97 : vector<16x1xf32>
    %99 = math.rsqrt %98 : vector<16x1xf32>
    %100 = vector.broadcast %99 : vector<16x1xf32> to vector<16x128xf32>
    %101 = arith.mulf %96, %100 : vector<16x128xf32>
    %102 = vector.shape_cast %81 : vector<128xf32> to vector<1x128xf32>
    %103 = vector.broadcast %102 : vector<1x128xf32> to vector<16x128xf32>
    %104 = arith.mulf %101, %103 : vector<16x128xf32>
    %105 = vector.shape_cast %83 : vector<128xf32> to vector<1x128xf32>
    %106 = vector.broadcast %105 : vector<1x128xf32> to vector<16x128xf32>
    %107 = arith.addf %104, %106 : vector<16x128xf32>
    %108 = arith.truncf %107 : vector<16x128xf32> to vector<16x128xbf16>
    %c0_36 = arith.constant 0 : index
    %c0_37 = arith.constant 0 : index
    %109 = vector.load %arg11[%c0_36, %c0_37] : memref<128x512xbf16, #tpu.memory_space<vmem>>, vector<128x512xbf16>
    %cst_38 = arith.constant dense<0.000000e+00> : vector<16x512xf32>
    %110 = tpu.matmul %108, %109, %cst_38 {dimension_numbers = #tpu.dot_dimension_numbers<[1], [0], [0], [1], [0, 0, 1, 1], [], []>} : vector<16x128xbf16>, vector<128x512xbf16>, vector<16x512xf32> -> vector<16x512xf32>
    %c0_39 = arith.constant 0 : index
    %c0_40 = arith.constant 0 : index
    %111 = vector.load %arg12[%c0_39, %c0_40] : memref<1x512xf32, #tpu.memory_space<vmem>>, vector<1x512xf32>
    %112 = vector.shape_cast %111 : vector<1x512xf32> to vector<512xf32>
    %113 = vector.shape_cast %112 : vector<512xf32> to vector<1x512xf32>
    %114 = vector.broadcast %113 : vector<1x512xf32> to vector<16x512xf32>
    %115 = arith.addf %110, %114 : vector<16x512xf32>
    %cst_41 = arith.constant 1.702000e+00 : f32
    %116 = vector.broadcast %cst_41 : f32 to vector<16x512xf32>
    %117 = arith.mulf %116, %115 : vector<16x512xf32>
    %118 = arith.negf %117 : vector<16x512xf32>
    %119 = math.exp %118 : vector<16x512xf32>
    %cst_42 = arith.constant 1.000000e+00 : f32
    %120 = vector.broadcast %cst_42 : f32 to vector<16x512xf32>
    %121 = arith.addf %120, %119 : vector<16x512xf32>
    %122 = arith.divf %120, %121 : vector<16x512xf32>
    %123 = arith.mulf %115, %122 : vector<16x512xf32>
    %124 = arith.truncf %123 : vector<16x512xf32> to vector<16x512xbf16>
    %c0_43 = arith.constant 0 : index
    %c0_44 = arith.constant 0 : index
    %125 = vector.load %arg13[%c0_43, %c0_44] : memref<512x128xbf16, #tpu.memory_space<vmem>>, vector<512x128xbf16>
    %cst_45 = arith.constant dense<0.000000e+00> : vector<16x128xf32>
    %126 = tpu.matmul %124, %125, %cst_45 {dimension_numbers = #tpu.dot_dimension_numbers<[1], [0], [0], [1], [0, 0, 1, 1], [], []>} : vector<16x512xbf16>, vector<512x128xbf16>, vector<16x128xf32> -> vector<16x128xf32>
    %c0_46 = arith.constant 0 : index
    %c0_47 = arith.constant 0 : index
    %127 = vector.load %arg14[%c0_46, %c0_47] : memref<1x128xf32, #tpu.memory_space<vmem>>, vector<1x128xf32>
    %128 = vector.shape_cast %127 : vector<1x128xf32> to vector<128xf32>
    %129 = vector.shape_cast %128 : vector<128xf32> to vector<1x128xf32>
    %130 = vector.broadcast %129 : vector<1x128xf32> to vector<16x128xf32>
    %131 = arith.addf %126, %130 : vector<16x128xf32>
    %132 = arith.addf %79, %131 : vector<16x128xf32>
    %c0_48 = arith.constant 0 : index
    %c0_49 = arith.constant 0 : index
    %c0_50 = arith.constant 0 : index
    %133 = vector.load %arg15[%c0_48, %c0_49, %c0_50] : memref<1x16x128xf32, #tpu.memory_space<vmem>>, vector<1x16x128xf32>
    %134 = vector.shape_cast %133 : vector<1x16x128xf32> to vector<16x128xf32>
    %135 = vector.shape_cast %132 : vector<16x128xf32> to vector<1x16x128xf32>
    tpu.vector_store %arg15[%c0_48, %c0_49, %c0_50], %135 {strides = array<i32>} : memref<1x16x128xf32, #tpu.memory_space<vmem>>, vector<1x16x128xf32>,
    return
  }
  func.func @transform_0(%arg0: i32) -> (i32, i32, i32) {
    %c0_i32 = arith.constant 0 : i32
    %c0_i32_0 = arith.constant 0 : i32
    %c0_i32_1 = arith.constant 0 : i32
    return %arg0, %c0_i32, %c0_i32_0 : i32, i32, i32
  }
  func.func @transform_1(%arg0: i32) -> (i32, i32) {
    %c0_i32 = arith.constant 0 : i32
    %c0_i32_0 = arith.constant 0 : i32
    %c0_i32_1 = arith.constant 0 : i32
    return %c0_i32, %c0_i32_0 : i32, i32
  }
  func.func @transform_2(%arg0: i32) -> (i32, i32) {
    %c0_i32 = arith.constant 0 : i32
    %c0_i32_0 = arith.constant 0 : i32
    %c0_i32_1 = arith.constant 0 : i32
    return %c0_i32, %c0_i32_0 : i32, i32
  }
  func.func @transform_3(%arg0: i32) -> (i32, i32) {
    %c0_i32 = arith.constant 0 : i32
    %c0_i32_0 = arith.constant 0 : i32
    %c0_i32_1 = arith.constant 0 : i32
    return %c0_i32, %c0_i32_0 : i32, i32
  }
  func.func @transform_4(%arg0: i32) -> (i32, i32) {
    %c0_i32 = arith.constant 0 : i32
    %c0_i32_0 = arith.constant 0 : i32
    %c0_i32_1 = arith.constant 0 : i32
    return %c0_i32, %c0_i32_0 : i32, i32
  }
  func.func @transform_5(%arg0: i32) -> (i32, i32) {
    %c0_i32 = arith.constant 0 : i32
    %c0_i32_0 = arith.constant 0 : i32
    %c0_i32_1 = arith.constant 0 : i32
    return %c0_i32, %c0_i32_0 : i32, i32
  }
  func.func @transform_6(%arg0: i32) -> (i32, i32) {
    %c0_i32 = arith.constant 0 : i32
    %c0_i32_0 = arith.constant 0 : i32
    %c0_i32_1 = arith.constant 0 : i32
    return %c0_i32, %c0_i32_0 : i32, i32
  }
  func.func @transform_7(%arg0: i32) -> (i32, i32) {
    %c0_i32 = arith.constant 0 : i32
    %c0_i32_0 = arith.constant 0 : i32
    %c0_i32_1 = arith.constant 0 : i32
    return %c0_i32, %c0_i32_0 : i32, i32
  }
  func.func @transform_8(%arg0: i32) -> (i32, i32) {
    %c0_i32 = arith.constant 0 : i32
    %c0_i32_0 = arith.constant 0 : i32
    %c0_i32_1 = arith.constant 0 : i32
    return %c0_i32, %c0_i32_0 : i32, i32
  }
  func.func @transform_9(%arg0: i32) -> (i32, i32) {
    %c0_i32 = arith.constant 0 : i32
    %c0_i32_0 = arith.constant 0 : i32
    %c0_i32_1 = arith.constant 0 : i32
    return %c0_i32, %c0_i32_0 : i32, i32
  }
  func.func @transform_10(%arg0: i32) -> (i32, i32) {
    %c0_i32 = arith.constant 0 : i32
    %c0_i32_0 = arith.constant 0 : i32
    %c0_i32_1 = arith.constant 0 : i32
    return %c0_i32, %c0_i32_0 : i32, i32
  }
  func.func @transform_11(%arg0: i32) -> (i32, i32) {
    %c0_i32 = arith.constant 0 : i32
    %c0_i32_0 = arith.constant 0 : i32
    %c0_i32_1 = arith.constant 0 : i32
    return %c0_i32, %c0_i32_0 : i32, i32
  }
  func.func @transform_12(%arg0: i32) -> (i32, i32) {
    %c0_i32 = arith.constant 0 : i32
    %c0_i32_0 = arith.constant 0 : i32
    %c0_i32_1 = arith.constant 0 : i32
    return %c0_i32, %c0_i32_0 : i32, i32
  }
  func.func @transform_13(%arg0: i32) -> (i32, i32) {
    %c0_i32 = arith.constant 0 : i32
    %c0_i32_0 = arith.constant 0 : i32
    %c0_i32_1 = arith.constant 0 : i32
    return %c0_i32, %c0_i32_0 : i32, i32
  }
  func.func @transform_14(%arg0: i32) -> (i32, i32, i32) {
    %c0_i32 = arith.constant 0 : i32
    %c0_i32_0 = arith.constant 0 : i32
    %c0_i32_1 = arith.constant 0 : i32
    return %arg0, %c0_i32, %c0_i32_0 : i32, i32, i32
  }
}

</mosaic_0001>

<bundles_post_ra>
// kernel: transformer_forward.3
= control target key start
LH: loop header
LB: loop body
LE: loop exit
PB: predicated region body
PF: predicated region fallthrough
CT: control target
= control target key end

     0   :  { %s4259_s29 = smov 0   ;;  %s5014_s0 = inlined_call_operand.vmem [shape: f32[2,16,128], index: 0, kind: input, shape index: {}, may-alias: {0,14}]   ;;  %s5015_s1 = inlined_call_operand.vmem [shape: f32[16,16], index: 1, kind: input, shape index: {}]   ;;  %s5016_s2 = inlined_call_operand.vmem [shape: f32[1,128], index: 2, kind: input, shape index: {}]   ;;  %s5017_s3 = inlined_call_operand.vmem [shape: f32[1,128], index: 3, kind: input, shape index: {}]   ;;  %s5018_s4 = inlined_call_operand.vmem [shape: bf16[128,384], index: 4, kind: input, shape index: {}]   ;;  %s5019_s5 = inlined_call_operand.vmem [shape: f32[1,384], index: 5, kind: input, shape index: {}]   ;;  %s5020_s6 = inlined_call_operand.vmem [shape: bf16[128,128], index: 6, kind: input, shape index: {}]   ;;  %s5021_s7 = inlined_call_operand.vmem [shape: f32[1,128], index: 7, kind: input, shape index: {}]   ;;  %s5022_s8 = inlined_call_operand.vmem [shape: f32[1,128], index: 8, kind: input, shape index: {}]   ;;  %s5023_s9 = inlined_call_operand.vmem [shape: f32[1,128], index: 9, kind: input, shape index: {}]   ;;  %s5024_s10 = inlined_call_operand.vmem [shape: bf16[128,512], index: 10, kind: input, shape index: {}]   ;;  %s5025_s11 = inlined_call_operand.vmem [shape: f32[1,512], index: 11, kind: input, shape index: {}]   ;;  %s5026_s12 = inlined_call_operand.vmem [shape: bf16[512,128], index: 12, kind: input, shape index: {}]   ;;  %s5027_s13 = inlined_call_operand.vmem [shape: f32[1,128], index: 13, kind: input, shape index: {}]   ;;  %s5028_s14 = inlined_call_operand.vmem [shape: f32[2,16,128], index: 14, kind: output, shape index: {}, may-alias: {0,14}]  }
   0x1 LB: > { %s3618_s30 = sadd.s32 4294967295, %s4174_s29   ;;  %p3622_p0 = scmp.ge.s32.totalorder %s4174_s29, 1  ;;  %s4174_s29 = sphi %s4259_s29, %s24_s29  }
   0x2   : > { %p412_p1 = scmp.lt.s32.totalorder %s4174_s29, 3 }
   0x4   : > { %p413_p2 = pnand %p3622_p0, %p412_p1 }
   0x5   : > { %p458_p3 = scmp.lt.s32.totalorder (!%p413_p2), %s3618_s30, 1  ;;  %v3974_v2 = vld [vmem:[%s5018_s4 + $0x4] ss:$12 sps:$4 sm:$0xff] (!%p413_p2)   ;;  %v3976_v3 = vld [vmem:[%s5018_s4] ss:$12 sps:$4 sm:$0xff] (!%p413_p2)   ;;  %v4176_v4 = vmov (!%p413_p2), 0.0   ;;  %v549_v53 = vlaneseq (!%p413_p2) }
   0x6   : > { %416 = sbr.rel (%p413_p2) target bundleno = 2781 (0xadd), region = 76  ;;  %3851 = vmatprep.subr.bf16.mxu1 (!%p413_p2), %v4176_v4  ;;  %v3977_v5 = vld [vmem:[%s5018_s4 + $0x8] ss:$12 sps:$4 sm:$0xff] (!%p413_p2)   ;;  %692 = vmatprep.subr.bf16.mxu0 (!%p413_p2), %v3974_v2  ;;  %v3980_v15 = vld [vmem:[%s5018_s4 + $0x18] ss:$12 sps:$4 sm:$0xff] (!%p413_p2)   ;;  %v4177_v30 = vmov (!%p413_p2), 0  }
   0x7   : > { %v3978_v6 = vld [vmem:[%s5018_s4 + $0x1c] ss:$12 sps:$4 sm:$0xff] (!%p413_p2)   ;;  %693 = vmatpush1.bf16.msra.mxu0 (!%p413_p2), %v3976_v3  ;;  %3852 = vmatpush3.bf16.msra.mxu1 (!%p413_p2), %v3977_v5  ;;  %v3981_v16 = vld [vmem:[%s5018_s4 + $0x20] ss:$12 sps:$4 sm:$0xff] (!%p413_p2)   ;;  %v3985_v19 = vld [vmem:[%s5018_s4 + $0x38] ss:$12 sps:$4 sm:$0xff] (!%p413_p2)  }
   0x8   : > { %694 = vmatprep.subr.bf16.mxu0 (!%p413_p2), %v3978_v6  ;;  %3853 = vmatprep.subr.bf16.mxu1 (!%p413_p2), %v4176_v4  ;;  %v3982_v17 = vld [vmem:[%s5018_s4 + $0x34] ss:$12 sps:$4 sm:$0xff] (!%p413_p2)   ;;  %v3984_v18 = vld [vmem:[%s5018_s4 + $0x30] ss:$12 sps:$4 sm:$0xff] (!%p413_p2)   ;;  %v3986_v20 = vld [vmem:[%s5018_s4 + $0x4c] ss:$12 sps:$4 sm:$0xff] (!%p413_p2)  }
   0x9   : > { %v3988_v21 = vld [vmem:[%s5018_s4 + $0x48] ss:$12 sps:$4 sm:$0xff] (!%p413_p2)   ;;  %v3989_v22 = vld [vmem:[%s5018_s4 + $0x50] ss:$12 sps:$4 sm:$0xff] (!%p413_p2)   ;;  %v3992_v24 = vld [vmem:[%s5018_s4 + $0x60] ss:$12 sps:$4 sm:$0xff] (!%p413_p2)   ;;  %724 = vmatprep.mubr.bf16.mxu0 (!%p413_p2), %v4177_v30 }
   0xa   : > { %v3990_v23 = vld [vmem:[%s5018_s4 + $0x64] ss:$12 sps:$4 sm:$0xff] (!%p413_p2)   ;;  %v3993_v25 = vld [vmem:[%s5018_s4 + $0x68] ss:$12 sps:$4 sm:$0xff] (!%p413_p2)   ;;  %v3997_v28 = vld [vmem:[%s5018_s4 + $0x80] ss:$12 sps:$4 sm:$0xff] (!%p413_p2)  }
   0xb   : > { %695 = vmatpush1.bf16.msra.mxu0 (!%p413_p2), %v3980_v15  ;;  %3854 = vmatpush3.bf16.msra.mxu1 (!%p413_p2), %v3981_v16  ;;  %v3994_v26 = vld [vmem:[%s5018_s4 + $0x7c] ss:$12 sps:$4 sm:$0xff] (!%p413_p2)   ;;  %v3996_v27 = vld [vmem:[%s5018_s4 + $0x78] ss:$12 sps:$4 sm:$0xff] (!%p413_p2)   ;;  %v3998_v29 = vld [vmem:[%s5018_s4 + $0x94] ss:$12 sps:$4 sm:$0xff] (!%p413_p2)  }
   0xc   : > { %3855 = vmatprep.subr.bf16.mxu1 (!%p413_p2), %v4176_v4  ;;  %696 = vmatprep.subr.bf16.mxu0 (!%p413_p2), %v3982_v17  ;;  %vm4178_vm0 = vmmov (!%p413_p2), 0   ;;  %v4000_v31 = vld [vmem:[%s5018_s4 + $0x90] ss:$12 sps:$4 sm:$0xff] (!%p413_p2)   ;;  %v4001_v32 = vld [vmem:[%s5018_s4 + $0x98] ss:$12 sps:$4 sm:$0xff] (!%p413_p2)   ;;  %v4381_v54 = vshrl.u32 (!%p413_p2), %v549_v53, 7 }
   0xd   : > { %s5030_s30 = smov (!%p458_p3, %s3618_s30), 1  ;;  %3867 = vmatprep.mubr.msk.bf16.mxu1 %vm4178_vm0, %v4176_v4  ;;  %v4002_v33 = vld [vmem:[%s5018_s4 + $0xac] ss:$12 sps:$4 sm:$0xff]   ;;  %v4004_v34 = vld [vmem:[%s5018_s4 + $0xa8] ss:$12 sps:$4 sm:$0xff]   ;;  %s4179_s25 = smov 96  }
   0xe   : > { %s3767_s15 = sshll.u32 %s5030_s30, 4  ;;  %v4005_v35 = vld [vmem:[%s5018_s4 + $0xb0] ss:$12 sps:$4 sm:$0xff]   ;;  %v3627_v44 = vld [vmem:[%s5016_s2] ss:$0 sm:$0xff]  ;;  %v551_v55 = vsub.s32 0, %v4381_v54 }
   0xf   : > { %s4275_s18 = scalar_lea.vmem %s5014_s0, %s3767_s15  ;;  %697 = vmatpush1.bf16.msra.mxu0 %v3984_v18  ;;  %3856 = vmatpush3.bf16.msra.mxu1 %v3985_v19  ;;  %v3628_v48 = vld [vmem:[%s5017_s3] ss:$0 sm:$0xff]  ;;  %v555_v57 = vsub.s32 1, %v4381_v54  ;;  %s4180_s26 = smov 64   ;;  %vm1664_vm1 = vcmask 261120   ;;  %vm1869_vm2 = vcmask 130048  }
  0x10   : > { %v469_v0 = vld [vmem:[%s4275_s18] sm:$0xff]  ;;  %v470_v1 = vld [vmem:[%s4275_s18 + $0x8] sm:$0xff]  ;;  %3857 = vmatprep.subr.bf16.mxu1 %v4176_v4  ;;  %698 = vmatprep.subr.bf16.mxu0 %v3986_v20  ;;  %s4181_s27 = smov 32   ;;  %vm2684_vm3 = vcmask 523264   ;;  %vm2687_vm4 = vcmask 785408   ;;  %s467_s24 = scalar_lea.vmem %s5028_s14, %s3767_s15 }
  0x11   : > { %475 = vadd.xlane.f32.xlu0 %v469_v0  ;;  %v4387_v56 = vld [vmem:[%s5019_s5] sm:$0x7] }
  0x12   : > { %v552_v58 = vrot.slane %v4387_v56, %v551_v55  ;;  %v556_v59 = vrot.slane %v4387_v56, %v555_v57 }
  0x13   : > { %699 = vmatpush1.bf16.msra.mxu0 %v3988_v21  ;;  %3858 = vmatpush3.bf16.msra.mxu1 %v3989_v22 }
  0x14   : > { %3859 = vmatprep.subr.bf16.mxu1 %v4176_v4  ;;  %700 = vmatprep.subr.bf16.mxu0 %v3990_v23 }
  0x15   : > { %477 = vadd.xlane.f32.xlu0 %v470_v1 }
  0x17   : > { %701 = vmatpush1.bf16.msra.mxu0 %v3992_v24  ;;  %3860 = vmatpush3.bf16.msra.mxu1 %v3993_v25 }
  0x18   : > { %702 = vmatprep.subr.bf16.mxu0 %v3994_v26  ;;  %3861 = vmatprep.subr.bf16.mxu1 %v4176_v4 }
  0x1b   : > { %703 = vmatpush1.bf16.msra.mxu0 %v3996_v27  ;;  %3862 = vmatpush3.bf16.msra.mxu1 %v3997_v28 }
  0x1c   : > { %704 = vmatprep.subr.bf16.mxu0 %v3998_v29  ;;  %3863 = vmatprep.subr.bf16.mxu1 %v4176_v4 }
  0x1f   : > { %705 = vmatpush1.bf16.msra.mxu0 %v4000_v31  ;;  %3864 = vmatpush3.bf16.msra.mxu1 %v4001_v32 }
  0x20   : > { %706 = vmatprep.subr.bf16.mxu0 %v4002_v33  ;;  %3865 = vmatprep.subr.bf16.mxu1 %v4176_v4 }
  0x23   : > { %707 = vmatpush1.bf16.msra.mxu0 %v4004_v34  ;;  %3866 = vmatpush3.bf16.msra.mxu1 %v4005_v35 }
  0x24   : > { %3871 = vmatprep.subr.bf16.mxu1 %v4176_v4 }
  0x9e   : > { %v476_v7 = vpop.xlane.xlu0 %475 }
  0x9f   : > { %v480_v8 = vmul.f32 0.0078125, %v476_v7 }
  0xa1   : > { %v4293_v9 = vsub.f32 %v469_v0, %v480_v8 }
  0xa2   : > { %v478_v10 = vpop.xlane.xlu0 %477 }
  0xa3   : > { %v481_v11 = vmul.f32 0.0078125, %v478_v10  ;;  %v484_v12 = vmul.f32 %v4293_v9, %v4293_v9 }
  0xa5   : > { %v4297_v13 = vsub.f32 %v470_v1, %v481_v11  ;;  %486 = vadd.xlane.f32.xlu1 %v484_v12 }
  0xa7   : > { %v485_v14 = vmul.f32 %v4297_v13, %v4297_v13 }
  0xa9   : > { %488 = vadd.xlane.f32.xlu1 %v485_v14 }
 0x132   : > { %v487_v36 = vpop.xlane.xlu1 %486 }
 0x133   : > { %v490_v37 = vmul.f32 0.0078125, %v487_v36 }
 0x135   : > { %v492_v38 = vadd.f32 1e-05, %v490_v37 }
 0x136   : > { %v489_v39 = vpop.xlane.xlu1 %488 }
 0x137   : > { %4094 = vrsqrt.f32 %v492_v38  ;;  %v491_v40 = vmul.f32 0.0078125, %v489_v39 }
 0x139   : > { %v493_v41 = vadd.f32 1e-05, %v491_v40 }
 0x13b   : > { %4096 = vrsqrt.f32 %v493_v41 }
 0x141   : > { %v4095_v42 = vpop.eup %4094 }
 0x142   : > { %v496_v43 = vmul.f32 %v4095_v42, %v4293_v9  ;;  %v4182_v9 = vmov 1983009808  }
 0x143   : > { %v799_v10 = vunpack.c.l.s4 %v4182_v9 }
 0x144   : > { %v504_v47 = vmul.f32 %v3627_v44, %v496_v43 }
 0x145   : > { %v4097_v45 = vpop.eup %4096  ;;  %v800_v15 = vunpack.c.0.s8 %v799_v10 }
 0x146   : > { %v497_v46 = vmul.f32 %v4097_v45, %v4297_v13  ;;  %v512_v50 = vadd.f32 %v3628_v48, %v504_v47  ;;  %v4183_v13 = vmov 1934713408  }
 0x147   : > { %v831_v14 = vunpack.c.l.s4 %v4183_v13  ;;  %v4425_v19 = vsub.s32 %v800_v15, %v4381_v54 }
 0x148   : > { %v505_v49 = vmul.f32 %v3627_v44, %v497_v46 }
 0x149   : > { %v832_v18 = vunpack.c.0.s8 %v831_v14 }
 0x14a   : > { %v513_v51 = vadd.f32 %v3628_v48, %v505_v49 }
 0x14b   : > { %v4428_v26 = vsub.s32 %v832_v18, %v4381_v54 }
 0x14c   : > { %v514_v52 = vpack.c.bf16 %v513_v51, %v512_v50 }
 0x14e   : > { %725 = vmatmul.mubr.bf16.vlgmr.msra.gmra.mrb[0].mxu0 %v514_v52  ;;  %3868 = vmatmul.mubr.bf16.vlgmr.msra.gmra.mrb[0].mxu1 %v514_v52 }
 0x14f   : > { %3873 = vmatprep.mubr.msk.bf16.mxu1 %vm4178_vm0, %v4176_v4 }
 0x221   : > { %v726_v60 = vpop.f32.mrb[0].mxu0  ;;  %v4396_v61 = vpop.f32.mrb[0].mxu1 }
 0x222   : > { %v4398_v62 = vadd.f32 %v726_v60, %v552_v58  ;;  %v728_v63 = vpop.f32.mrb[1].mxu0  ;;  %v3869_v0 = vpop.f32.mrb[1].mxu1 }
 0x223   : > { %v729_v1 = vadd.f32 %v728_v63, %v556_v59  ;;  %v730_v2 = vpop.f32.mrb[2].mxu0  ;;  %v4400_v3 = vpop.f32.mrb[2].mxu1 }
 0x224   : > { %v732_v5 = vpop.f32.mrb[3].mxu0  ;;  %v3870_v6 = vpop.f32.mrb[3].mxu1  ;;  %778 = vrot.lane.b32.xlu0 %v4398_v62, %s4179_s25  ;;  %v4405_v7 = vadd.f32 %v730_v2, %v552_v58 }
 0x225   : > { %1080 = vrot.lane.b32.xlu1 %v729_v1, %s4180_s26  ;;  %v733_v8 = vadd.f32 %v732_v5, %v556_v59 }
 0x228   : > { %1074 = vrot.lane.b32.xlu0 %v729_v1, %s4179_s25 }
 0x229   : > { %780 = vrot.lane.b32.xlu1 %v4405_v7, %s4179_s25 }
 0x22c   : > { %1086 = vrot.lane.b32.xlu0 %v729_v1, %s4181_s27 }
 0x22d   : > { %1076 = vrot.lane.b32.xlu1 %v733_v8, %s4179_s25 }
 0x230   : > { %784 = vrot.lane.b32.xlu0 %v4398_v62, %s4180_s26 }
 0x231   : > { %1082 = vrot.lane.b32.xlu1 %v733_v8, %s4180_s26 }
 0x234   : > { %790 = vrot.lane.b32.xlu0 %v4398_v62, %s4181_s27 }
 0x235   : > { %1088 = vrot.lane.b32.xlu1 %v733_v8, %s4181_s27 }
 0x239   : > { %786 = vrot.lane.b32.xlu1 %v4405_v7, %s4180_s26 }
 0x23d   : > { %792 = vrot.lane.b32.xlu1 %v4405_v7, %s4181_s27 }
 0x296   : > { %v779_v11 = vpop.permute.xlu0 %778 }
 0x297   : > { %v1081_v12 = vpop.permute.xlu1 %1080 }
 0x298   : > { %v1092_v20 = vcombine.low %v729_v1, %v1081_v12  ;;  %v1093_v21 = vcombine.high %v729_v1, %v1081_v12 }
 0x29a   : > { %v1075_v16 = vpop.permute.xlu0 %1074  ;;  %v1100_v27 = vrot.slane %v1092_v20, %v4425_v19  ;;  %v1107_v28 = vrot.slane %v1093_v21, %v4425_v19 }
 0x29b   : > { %v4422_v17 = vpop.permute.xlu1 %780 }
 0x29e   : > { %v1087_v22 = vpop.permute.xlu0 %1086 }
 0x29f   : > { %v1108_v23 = vcombine.low %v1075_v16, %v1087_v22  ;;  %v1109_v24 = vcombine.high %v1075_v16, %v1087_v22  ;;  %v1077_v25 = vpop.permute.xlu1 %1076 }
 0x2a1   : > { %v1116_v29 = vrot.slane %v1108_v23, %v4425_v19  ;;  %v1123_v31 = vrot.slane %v1109_v24, %v4425_v19 }
 0x2a2   : > { %v785_v32 = vpop.permute.xlu0 %784 }
 0x2a3   : > { %v1124_v33 = vcombine.low %v1100_v27, %v1116_v29  ;;  %v1125_v34 = vcombine.high %v1100_v27, %v1116_v29  ;;  %v1140_v35 = vcombine.low %v1107_v28, %v1123_v31  ;;  %v1141_v36 = vcombine.high %v1107_v28, %v1123_v31  ;;  %v1083_v37 = vpop.permute.xlu1 %1082 }
 0x2a4   : > { %v796_v38 = vcombine.low %v4398_v62, %v785_v32  ;;  %v797_v39 = vcombine.high %v4398_v62, %v785_v32  ;;  %v1160_v40 = vcombine.low %v733_v8, %v1083_v37  ;;  %v1161_v41 = vcombine.high %v733_v8, %v1083_v37 }
 0x2a5   : > { %v1132_v42 = vrot.slane %v1124_v33, %v4428_v26  ;;  %v1139_v43 = vrot.slane %v1125_v34, %v4428_v26  ;;  %v1148_v44 = vrot.slane %v1140_v35, %v4428_v26  ;;  %v1155_v45 = vrot.slane %v1141_v36, %v4428_v26 }
 0x2a6   : > { %v791_v46 = vpop.permute.xlu0 %790  ;;  %v804_v60 = vrot.slane %v796_v38, %v4425_v19  ;;  %v811_v62 = vrot.slane %v797_v39, %v4425_v19  ;;  %v1168_v63 = vrot.slane %v1160_v40, %v4425_v19  ;;  %v1175_v0 = vrot.slane %v1161_v41, %v4425_v19 }
 0x2a7   : > { %v1228_v47 = vcombine.low %v1132_v42, %v1139_v43  ;;  %v3657_v48 = vcombine.high %v1132_v42, %v1139_v43  ;;  %v1244_v49 = vcombine.low %v1148_v44, %v1155_v45  ;;  %v3658_v50 = vcombine.high %v1148_v44, %v1155_v45  ;;  %v1089_v51 = vpop.permute.xlu1 %1088 }
 0x2a8   : > { %v812_v52 = vcombine.low %v779_v11, %v791_v46  ;;  %v813_v53 = vcombine.high %v779_v11, %v791_v46  ;;  %v1176_v58 = vcombine.low %v1077_v25, %v1089_v51  ;;  %v1177_v59 = vcombine.high %v1077_v25, %v1089_v51 }
 0x2a9   : > { %v4449_v8 = vrot.slane %v1228_v47, %v4425_v19  ;;  %v4452_v9 = vrot.slane %v3657_v48, %v4425_v19  ;;  %v4455_v10 = vrot.slane %v1244_v49, %v4425_v19  ;;  %v4458_v11 = vrot.slane %v3658_v50, %v4425_v19 }
 0x2aa   : > { %v820_v1 = vrot.slane %v812_v52, %v4425_v19  ;;  %v827_v2 = vrot.slane %v813_v53, %v4425_v19  ;;  %v1184_v5 = vrot.slane %v1176_v58, %v4425_v19  ;;  %v1191_v6 = vrot.slane %v1177_v59, %v4425_v19 }
 0x2ab   : > { %v787_v16 = vpop.permute.xlu1 %786  ;;  %v1260_v42 = vcombine.low %v4449_v8, %v4452_v9  ;;  %v1276_v43 = vcombine.low %v4455_v10, %v4458_v11 }
 0x2ac   : > { %v828_v12 = vcombine.low %v804_v60, %v820_v1  ;;  %v829_v13 = vcombine.high %v804_v60, %v820_v1  ;;  %v844_v14 = vcombine.low %v811_v62, %v827_v2  ;;  %v845_v15 = vcombine.high %v811_v62, %v827_v2 }
 0x2ad   : > { %v1192_v18 = vcombine.low %v1168_v63, %v1184_v5  ;;  %v1193_v20 = vcombine.high %v1168_v63, %v1184_v5  ;;  %v1208_v21 = vcombine.low %v1175_v0, %v1191_v6  ;;  %v1209_v22 = vcombine.high %v1175_v0, %v1191_v6 }
 0x2ae   : > { %v836_v23 = vrot.slane %v828_v12, %v4428_v26  ;;  %v843_v24 = vrot.slane %v829_v13, %v4428_v26  ;;  %v852_v25 = vrot.slane %v844_v14, %v4428_v26  ;;  %v859_v27 = vrot.slane %v845_v15, %v4428_v26 }
 0x2af   : > { %v1200_v28 = vrot.slane %v1192_v18, %v4428_v26  ;;  %v1207_v29 = vrot.slane %v1193_v20, %v4428_v26  ;;  %v1216_v31 = vrot.slane %v1208_v21, %v4428_v26  ;;  %v1223_v32 = vrot.slane %v1209_v22, %v4428_v26  ;;  %v793_v41 = vpop.permute.xlu1 %792 }
 0x2b0   : > { %v932_v37 = vcombine.low %v836_v23, %v843_v24  ;;  %v3653_v38 = vcombine.high %v836_v23, %v843_v24  ;;  %v948_v39 = vcombine.low %v852_v25, %v859_v27  ;;  %v3654_v40 = vcombine.high %v852_v25, %v859_v27 }
 0x2b1   : > { %v1296_v33 = vcombine.low %v1200_v28, %v1207_v29  ;;  %v3659_v34 = vcombine.high %v1200_v28, %v1207_v29  ;;  %v1312_v35 = vcombine.low %v1216_v31, %v1223_v32  ;;  %v3660_v36 = vcombine.high %v1216_v31, %v1223_v32 }
 0x2b2   : > { %v864_v48 = vcombine.low %v4405_v7, %v787_v16  ;;  %v865_v49 = vcombine.high %v4405_v7, %v787_v16  ;;  %v880_v50 = vcombine.low %v4422_v17, %v793_v41  ;;  %v881_v51 = vcombine.high %v4422_v17, %v793_v41 }
 0x2b3   : > { %v4473_v44 = vrot.slane %v1296_v33, %v4425_v19  ;;  %v1311_v45 = vrot.slane %v3659_v34, %v4425_v19  ;;  %v1319_v46 = vrot.slane %v1312_v35, %v4425_v19  ;;  %v1327_v47 = vrot.slane %v3660_v36, %v4425_v19 }
 0x2b4   : > { %v4483_v52 = vrot.slane %v932_v37, %v4425_v19  ;;  %v4486_v53 = vrot.slane %v3653_v38, %v4425_v19  ;;  %v4489_v58 = vrot.slane %v948_v39, %v4425_v19  ;;  %v4492_v59 = vrot.slane %v3654_v40, %v4425_v19 }
 0x2b5   : > { %v872_v60 = vrot.slane %v864_v48, %v4425_v19  ;;  %v879_v7 = vrot.slane %v865_v49, %v4425_v19  ;;  %v888_v62 = vrot.slane %v880_v50, %v4425_v19  ;;  %v895_v17 = vrot.slane %v881_v51, %v4425_v19 }
 0x2b6   : > { %v1268_v63 = vrot.slane %v1260_v42, %v4428_v26  ;;  %v1284_v0 = vrot.slane %v1276_v43, %v4428_v26  ;;  %v1328_v1 = vcombine.low %v4473_v44, %v1311_v45  ;;  %v1344_v2 = vcombine.low %v1319_v46, %v1327_v47 }
 0x2b7   : > { %v896_v5 = vcombine.low %v872_v60, %v888_v62  ;;  %v897_v6 = vcombine.high %v872_v60, %v888_v62  ;;  %v912_v12 = vcombine.low %v879_v7, %v895_v17  ;;  %v913_v13 = vcombine.high %v879_v7, %v895_v17 }
 0x2b8   : > { %v1336_v14 = vrot.slane %v1328_v1, %v4428_v26  ;;  %v1352_v15 = vrot.slane %v1344_v2, %v4428_v26  ;;  %v964_v22 = vcombine.low %v4483_v52, %v4486_v53  ;;  %v980_v23 = vcombine.low %v4489_v58, %v4492_v59 }
 0x2b9   : > { %v904_v16 = vrot.slane %v896_v5, %v4428_v26  ;;  %v911_v18 = vrot.slane %v897_v6, %v4428_v26  ;;  %v920_v20 = vrot.slane %v912_v12, %v4428_v26  ;;  %v927_v21 = vrot.slane %v913_v13, %v4428_v26 }
 0x2ba   : > { %v1292_v24 = vcombine.low %v1268_v63, %v1284_v0  ;;  %v1360_v25 = vcombine.low %v1336_v14, %v1352_v15  ;;  %v972_v37 = vrot.slane %v964_v22, %v4428_v26  ;;  %v988_v38 = vrot.slane %v980_v23, %v4428_v26 }
 0x2bb   : > { %v1000_v27 = vcombine.low %v904_v16, %v911_v18  ;;  %v3655_v28 = vcombine.high %v904_v16, %v911_v18  ;;  %v1016_v29 = vcombine.low %v920_v20, %v927_v21  ;;  %v3656_v31 = vcombine.high %v920_v20, %v927_v21 }
 0x2bc   : > { %v1364_v32 = vpack.c.bf16 %v1360_v25, %v1292_v24  ;;  %v1361_v42 = vcombine.high %v1336_v14, %v1352_v15  ;;  %v1329_v43 = vcombine.high %v4473_v44, %v1311_v45  ;;  %v1261_v48 = vcombine.high %v4449_v8, %v4452_v9 }
 0x2bd   : > { %v1007_v33 = vrot.slane %v1000_v27, %v4425_v19  ;;  %v1015_v34 = vrot.slane %v3655_v28, %v4425_v19  ;;  %v1023_v35 = vrot.slane %v1016_v29, %v4425_v19  ;;  %v1031_v36 = vrot.slane %v3656_v31, %v4425_v19  ;;  %v471_v31 = vld [vmem:[%s5015_s1] sm:$0xff] }
 0x2be   : > { %v1669_v39 = vsel %vm1664_vm1, %v1364_v32, 0  ;;  %v1345_v49 = vcombine.high %v1319_v46, %v1327_v47  ;;  %v1293_v60 = vcombine.high %v1268_v63, %v1284_v0  ;;  %v1277_v7 = vcombine.high %v4455_v10, %v4458_v11 }
 0x2bf   : > { %v1032_v40 = vcombine.low %v1007_v33, %v1015_v34  ;;  %v1048_v41 = vcombine.low %v1023_v35, %v1031_v36  ;;  %3872 = vmatpush3.bf16.xpose.msra.mxu1 %v1669_v39  ;;  %v996_v62 = vcombine.low %v972_v37, %v988_v38  ;;  %v1343_v2 = vrot.slane %v1329_v43, %v4428_v26 }
 0x2c0   : > { %3877 = vmatprep.subr.bf16.mxu1 %v4176_v4  ;;  %v1365_v1 = vpack.c.bf16 %v1361_v42, %v1293_v60  ;;  %v1359_v44 = vrot.slane %v1345_v49, %v4428_v26  ;;  %v1275_v5 = vrot.slane %v1261_v48, %v4428_v26  ;;  %v1291_v8 = vrot.slane %v1277_v7, %v4428_v26 }
 0x2c1   : > { %v1040_v50 = vrot.slane %v1032_v40, %v4428_v26  ;;  %v1056_v51 = vrot.slane %v1048_v41, %v4428_v26  ;;  %v1033_v10 = vcombine.high %v1007_v33, %v1015_v34  ;;  %v1049_v11 = vcombine.high %v1023_v35, %v1031_v36  ;;  %v472_v35 = vld [vmem:[%s5015_s1 + $0x8] sm:$0xff] }
 0x2c2   : > { %v1716_v9 = vsel %vm1664_vm1, %v1365_v1, 0  ;;  %v1362_v46 = vcombine.low %v1343_v2, %v1359_v44  ;;  %v1294_v63 = vcombine.low %v1275_v5, %v1291_v8  ;;  %v965_v0 = vcombine.high %v4483_v52, %v4486_v53 }
 0x2c3   : > { %v1064_v17 = vcombine.low %v1040_v50, %v1056_v51  ;;  %v1065_v47 = vcombine.high %v1040_v50, %v1056_v51  ;;  %v981_v6 = vcombine.high %v4489_v58, %v4492_v59  ;;  %v997_v12 = vcombine.high %v972_v37, %v988_v38 }
 0x2c4   : > { %v1366_v13 = vpack.c.bf16 %v1362_v46, %v1294_v63  ;;  %v1047_v14 = vrot.slane %v1033_v10, %v4428_v26  ;;  %v1063_v15 = vrot.slane %v1049_v11, %v4428_v26  ;;  %v979_v18 = vrot.slane %v965_v0, %v4428_v26 }
 0x2c5   : > { %v1068_v45 = vpack.c.bf16 %v1064_v17, %v996_v62  ;;  %v1069_v16 = vpack.c.bf16 %v1065_v47, %v997_v12  ;;  %v995_v20 = vrot.slane %v981_v6, %v4428_v26  ;;  %v1363_v22 = vcombine.high %v1343_v2, %v1359_v44 }
 0x2c6   : > { %v1763_v21 = vsel %vm1664_vm1, %v1366_v13, 0  ;;  %v1066_v52 = vcombine.low %v1047_v14, %v1063_v15  ;;  %v1295_v53 = vcombine.high %v1275_v5, %v1291_v8  ;;  %v1067_v25 = vcombine.high %v1047_v14, %v1063_v15 }
 0x2c7   : > { %3874 = vmatmul.mubr.msk.bf16.vlgmr.msra.gmra.mrb[4].mxu1 %vm1664_vm1, %v1068_v45  ;;  %v998_v58 = vcombine.low %v979_v18, %v995_v20  ;;  %v999_v27 = vcombine.high %v979_v18, %v995_v20  ;;  %v559_v20 = vsub.s32 2, %v4381_v54 }
 0x2c8   : > { %3878 = vmatpush3.bf16.xpose.msra.mxu1 %v1716_v9  ;;  %3879 = vmatprep.mubr.msk.bf16.mxu1 %vm4178_vm0, %v4176_v4  ;;  %v1367_v59 = vpack.c.bf16 %v1363_v22, %v1295_v53 }
 0x2c9   : > { %3883 = vmatprep.subr.bf16.mxu1 %v4176_v4  ;;  %v1070_v23 = vpack.c.bf16 %v1066_v52, %v998_v58  ;;  %v1071_v28 = vpack.c.bf16 %v1067_v25, %v999_v27 }
 0x2ca   : > { %v1810_v24 = vsel %vm1664_vm1, %v1367_v59, 0 }
 0x2cf   : > { %3880 = vmatmul.mubr.msk.bf16.vlgmr.msra.gmra.mrb[8].mxu1 %vm1664_vm1, %v1069_v16 }
 0x2d0   : > { %3884 = vmatpush3.bf16.xpose.msra.mxu1 %v1763_v21  ;;  %3885 = vmatprep.mubr.msk.bf16.mxu1 %vm4178_vm0, %v4176_v4  ;;  %v560_v21 = vrot.slane %v4387_v56, %v559_v20 }
 0x2d1   : > { %3889 = vmatprep.subr.bf16.mxu1 %v4176_v4 }
 0x2d2   : > { %v4572_v22 = vadd.f32 %v4400_v3, %v560_v21  ;;  %v4577_v52 = vadd.f32 %v4396_v61, %v560_v21 }
 0x2d7   : > { %3886 = vmatmul.mubr.msk.bf16.vlgmr.msra.gmra.mrb[12].mxu1 %vm1664_vm1, %v1070_v23 }
 0x2d8   : > { %3890 = vmatpush3.bf16.xpose.msra.mxu1 %v1810_v24  ;;  %3891 = vmatprep.mubr.msk.bf16.mxu1 %vm4178_vm0, %v4176_v4 }
 0x2df   : > { %3892 = vmatmul.mubr.msk.bf16.vlgmr.msra.gmra.mrb[16].mxu1 %vm1664_vm1, %v1071_v28 }
 0x39a   : > { %v1705_v29 = vpop.f32.mrb[4].mxu1 }
 0x39b   : > { %v1853_v32 = vmul.f32 0.17677669, %v1705_v29  ;;  %v3875_v33 = vpop.f32.mrb[5].mxu1 }
 0x39c   : > { %v1708_v34 = vpop.f32.mrb[6].mxu1 }
 0x39d   : > { %v1854_v36 = vmul.f32 0.17677669, %v1708_v34  ;;  %v3876_v37 = vpop.f32.mrb[7].mxu1  ;;  %v1861_v38 = vadd.f32 %v1853_v32, %v471_v31 }
 0x39f   : > { %v1870_v39 = vsel %vm1869_vm2, %v1861_v38, -inf  ;;  %v1862_v40 = vadd.f32 %v1854_v36, %v472_v35 }
 0x3a0   : > { %1871 = vmax.xlane.f32.xlu0 %v1870_v39 }
 0x3a1   : > { %v1873_v41 = vsel %vm1869_vm2, %v1862_v40, -inf }
 0x3a2   : > { %1874 = vmax.xlane.f32.xlu1 %v1873_v41  ;;  %v1752_v42 = vpop.f32.mrb[8].mxu1 }
 0x3a3   : > { %v1855_v43 = vmul.f32 0.17677669, %v1752_v42  ;;  %v3881_v48 = vpop.f32.mrb[9].mxu1 }
 0x3a4   : > { %v1755_v49 = vpop.f32.mrb[10].mxu1 }
 0x3a5   : > { %v1856_v50 = vmul.f32 0.17677669, %v1755_v49  ;;  %v3882_v51 = vpop.f32.mrb[11].mxu1  ;;  %v1863_v60 = vadd.f32 %v1855_v43, %v471_v31 }
 0x3a7   : > { %v1876_v7 = vsel %vm1869_vm2, %v1863_v60, -inf  ;;  %v1864_v62 = vadd.f32 %v1856_v50, %v472_v35 }
 0x3a8   : > { %1877 = vmax.xlane.f32.xlu0 %v1876_v7 }
 0x3a9   : > { %v1879_v44 = vsel %vm1869_vm2, %v1864_v62, -inf }
 0x3aa   : > { %v1799_v17 = vpop.f32.mrb[12].mxu1 }
 0x3ab   : > { %v1857_v1 = vmul.f32 0.17677669, %v1799_v17  ;;  %v3887_v2 = vpop.f32.mrb[13].mxu1 }
 0x3ac   : > { %1880 = vmax.xlane.f32.xlu0 %v1879_v44  ;;  %v1802_v45 = vpop.f32.mrb[14].mxu1 }
 0x3ad   : > { %v1858_v5 = vmul.f32 0.17677669, %v1802_v45  ;;  %v3888_v8 = vpop.f32.mrb[15].mxu1  ;;  %v1865_v9 = vadd.f32 %v1857_v1, %v471_v31 }
 0x3af   : > { %v1882_v46 = vsel %vm1869_vm2, %v1865_v9, -inf  ;;  %v1866_v10 = vadd.f32 %v1858_v5, %v472_v35 }
 0x3b0   : > { %1883 = vmax.xlane.f32.xlu0 %v1882_v46 }
 0x3b1   : > { %v1885_v11 = vsel %vm1869_vm2, %v1866_v10, -inf }
 0x3b2   : > { %1886 = vmax.xlane.f32.xlu1 %v1885_v11  ;;  %v1846_v47 = vpop.f32.mrb[16].mxu1 }
 0x3b3   : > { %v1859_v63 = vmul.f32 0.17677669, %v1846_v47  ;;  %v3893_v0 = vpop.f32.mrb[17].mxu1 }
 0x3b4   : > { %v1849_v6 = vpop.f32.mrb[18].mxu1 }
 0x3b5   : > { %v1860_v12 = vmul.f32 0.17677669, %v1849_v6  ;;  %v3894_v13 = vpop.f32.mrb[19].mxu1  ;;  %v1867_v14 = vadd.f32 %v1859_v63, %v471_v31 }
 0x3b7   : > { %v1888_v15 = vsel %vm1869_vm2, %v1867_v14, -inf  ;;  %v1868_v16 = vadd.f32 %v1860_v12, %v472_v35 }
 0x3b8   : > { %1889 = vmax.xlane.f32.xlu0 %v1888_v15 }
 0x3b9   : > { %v1891_v18 = vsel %vm1869_vm2, %v1868_v16, -inf }
 0x3ba   : > { %1892 = vmax.xlane.f32.xlu1 %v1891_v18 }
 0x3cb   : > { %1372 = vrot.lane.b32.xlu1 %v4572_v22, %s4179_s25 }
 0x3ce   : > { %1370 = vrot.lane.b32.xlu0 %v4577_v52, %s4179_s25 }
 0x3cf   : > { %1376 = vrot.lane.b32.xlu1 %v4577_v52, %s4180_s26 }
 0x3d2   : > { %1382 = vrot.lane.b32.xlu0 %v4577_v52, %s4181_s27 }
 0x3d3   : > { %1378 = vrot.lane.b32.xlu1 %v4572_v22, %s4180_s26 }
 0x3d7   : > { %1384 = vrot.lane.b32.xlu1 %v4572_v22, %s4181_s27 }
 0x42d   : > { %v1872_v56 = vpop.xlane.xlu0 %1871 }
 0x42e   : > { %v1894_v3 = vsub.f32 %v1861_v38, %v1872_v56 }
 0x42f   : > { %v1875_v53 = vpop.xlane.xlu1 %1874 }
 0x430   : > { %v1902_v61 = vmul.f32 1.442695, %v1894_v3  ;;  %v1895_v58 = vsub.f32 %v1862_v40, %v1875_v53 }
 0x432   : > { %4098 = vpow2.f32 %v1902_v61  ;;  %v1904_v59 = vmul.f32 1.442695, %v1895_v58 }
 0x434   : > { %4100 = vpow2.f32 %v1904_v59 }
 0x435   : > { %v1878_v23 = vpop.xlane.xlu0 %1877 }
 0x436   : > { %v1896_v24 = vsub.f32 %v1863_v60, %v1878_v23 }
 0x438   : > { %v1906_v25 = vmul.f32 1.442695, %v1896_v24 }
 0x439   : > { %v1881_v27 = vpop.xlane.xlu0 %1880 }
 0x43a   : > { %4102 = vpow2.f32 %v1906_v25  ;;  %v1897_v28 = vsub.f32 %v1864_v62, %v1881_v27 }
 0x43c   : > { %v4589_v29 = vpop.eup %4098  ;;  %v1908_v31 = vmul.f32 1.442695, %v1897_v28 }
 0x43d   : > { %v1884_v32 = vpop.xlane.xlu0 %1883  ;;  %v1918_v33 = vsel %vm1869_vm2, %v4589_v29, 0.0 }
 0x43e   : > { %v4593_v34 = vpop.eup %4100  ;;  %4104 = vpow2.f32 %v1908_v31  ;;  %v1898_v35 = vsub.f32 %v1865_v9, %v1884_v32  ;;  %1919 = vadd.xlane.f32.xlu0 %v1918_v33 }
 0x43f   : > { %v1887_v36 = vpop.xlane.xlu1 %1886  ;;  %v1921_v37 = vsel %vm1869_vm2, %v4593_v34, 0.0 }
 0x440   : > { %v1910_v38 = vmul.f32 1.442695, %v1898_v35  ;;  %v1899_v39 = vsub.f32 %v1866_v10, %v1887_v36  ;;  %1922 = vadd.xlane.f32.xlu1 %v1921_v37 }
 0x442   : > { %4106 = vpow2.f32 %v1910_v38  ;;  %v1912_v40 = vmul.f32 1.442695, %v1899_v39 }
 0x444   : > { %v4597_v41 = vpop.eup %4102  ;;  %4108 = vpow2.f32 %v1912_v40 }
 0x445   : > { %v1890_v42 = vpop.xlane.xlu0 %1889  ;;  %v1924_v43 = vsel %vm1869_vm2, %v4597_v41, 0.0 }
 0x446   : > { %v1900_v48 = vsub.f32 %v1867_v14, %v1890_v42  ;;  %1925 = vadd.xlane.f32.xlu0 %v1924_v43 }
 0x447   : > { %v1893_v49 = vpop.xlane.xlu1 %1892 }
 0x448   : > { %v4601_v50 = vpop.eup %4104  ;;  %v1914_v51 = vmul.f32 1.442695, %v1900_v48  ;;  %v1901_v60 = vsub.f32 %v1868_v16, %v1893_v49 }
 0x449   : > { %v1927_v7 = vsel %vm1869_vm2, %v4601_v50, 0.0  ;;  %v1371_v11 = vpop.permute.xlu0 %1370 }
 0x44a   : > { %4110 = vpow2.f32 %v1914_v51  ;;  %v1916_v62 = vmul.f32 1.442695, %v1901_v60  ;;  %1928 = vadd.xlane.f32.xlu0 %v1927_v7 }
 0x44b   : > { %v1373_v17 = vpop.permute.xlu1 %1372 }
 0x44c   : > { %v4605_v1 = vpop.eup %4106  ;;  %4112 = vpow2.f32 %v1916_v62 }
 0x44d   : > { %v1930_v2 = vsel %vm1869_vm2, %v4605_v1, 0.0  ;;  %v1383_v0 = vpop.permute.xlu0 %1382 }
 0x44e   : > { %v4609_v44 = vpop.eup %4108  ;;  %1931 = vadd.xlane.f32.xlu0 %v1930_v2  ;;  %v1404_v18 = vcombine.low %v1371_v11, %v1383_v0  ;;  %v1405_v21 = vcombine.high %v1371_v11, %v1383_v0 }
 0x44f   : > { %v1377_v45 = vpop.permute.xlu1 %1376  ;;  %v1933_v5 = vsel %vm1869_vm2, %v4609_v44, 0.0 }
 0x450   : > { %1934 = vadd.xlane.f32.xlu1 %v1933_v5  ;;  %v1388_v13 = vcombine.low %v4577_v52, %v1377_v45  ;;  %v1389_v14 = vcombine.high %v4577_v52, %v1377_v45  ;;  %v1412_v52 = vrot.slane %v1404_v18, %v4425_v19  ;;  %v1419_v23 = vrot.slane %v1405_v21, %v4425_v19 }
 0x452   : > { %v1396_v53 = vrot.slane %v1388_v13, %v4425_v19  ;;  %v1403_v61 = vrot.slane %v1389_v14, %v4425_v19 }
 0x453   : > { %v1379_v9 = vpop.permute.xlu1 %1378 }
 0x454   : > { %v4613_v8 = vpop.eup %4110  ;;  %v1456_v15 = vcombine.low %v4572_v22, %v1379_v9  ;;  %v1457_v16 = vcombine.high %v4572_v22, %v1379_v9  ;;  %v1420_v28 = vcombine.low %v1396_v53, %v1412_v52  ;;  %v1421_v31 = vcombine.high %v1396_v53, %v1412_v52 }
 0x455   : > { %v1936_v46 = vsel %vm1869_vm2, %v4613_v8, 0.0  ;;  %v1436_v32 = vcombine.low %v1403_v61, %v1419_v23  ;;  %v1437_v33 = vcombine.high %v1403_v61, %v1419_v23 }
 0x456   : > { %v4617_v10 = vpop.eup %4112  ;;  %1937 = vadd.xlane.f32.xlu0 %v1936_v46  ;;  %v1464_v58 = vrot.slane %v1456_v15, %v4425_v19  ;;  %v1471_v59 = vrot.slane %v1457_v16, %v4425_v19  ;;  %v1428_v39 = vrot.slane %v1420_v28, %v4428_v26  ;;  %v1435_v40 = vrot.slane %v1421_v31, %v4428_v26 }
 0x457   : > { %v1939_v47 = vsel %vm1869_vm2, %v4617_v10, 0.0  ;;  %v1385_v63 = vpop.permute.xlu1 %1384  ;;  %v1444_v42 = vrot.slane %v1436_v32, %v4428_v26  ;;  %v1451_v43 = vrot.slane %v1437_v33, %v4428_v26 }
 0x458   : > { %1940 = vadd.xlane.f32.xlu1 %v1939_v47  ;;  %v1472_v6 = vcombine.low %v1373_v17, %v1385_v63  ;;  %v1473_v12 = vcombine.high %v1373_v17, %v1385_v63  ;;  %v1524_v7 = vcombine.low %v1428_v39, %v1435_v40  ;;  %v3661_v62 = vcombine.high %v1428_v39, %v1435_v40 }
 0x459   : > { %v1540_v17 = vcombine.low %v1444_v42, %v1451_v43  ;;  %v3662_v2 = vcombine.high %v1444_v42, %v1451_v43 }
 0x45a   : > { %v1480_v56 = vrot.slane %v1472_v6, %v4425_v19  ;;  %v1487_v3 = vrot.slane %v1473_v12, %v4425_v19  ;;  %v1531_v11 = vrot.slane %v1524_v7, %v4425_v19  ;;  %v1539_v47 = vrot.slane %v3661_v62, %v4425_v19 }
 0x45b   : > { %v1547_v63 = vrot.slane %v1540_v17, %v4425_v19  ;;  %v1555_v0 = vrot.slane %v3662_v2, %v4425_v19 }
 0x45c   : > { %v1488_v24 = vcombine.low %v1464_v58, %v1480_v56  ;;  %v1489_v22 = vcombine.high %v1464_v58, %v1480_v56  ;;  %v1504_v25 = vcombine.low %v1471_v59, %v1487_v3  ;;  %v1505_v27 = vcombine.high %v1471_v59, %v1487_v3 }
 0x45d   : > { %v1556_v13 = vcombine.low %v1531_v11, %v1539_v47  ;;  %v1572_v14 = vcombine.low %v1547_v63, %v1555_v0  ;;  %v1557_v53 = vcombine.high %v1531_v11, %v1539_v47  ;;  %v1573_v61 = vcombine.high %v1547_v63, %v1555_v0 }
 0x45e   : > { %v1496_v35 = vrot.slane %v1488_v24, %v4428_v26  ;;  %v1503_v36 = vrot.slane %v1489_v22, %v4428_v26  ;;  %v1512_v37 = vrot.slane %v1504_v25, %v4428_v26  ;;  %v1519_v38 = vrot.slane %v1505_v27, %v4428_v26 }
 0x45f   : > { %v1564_v56 = vrot.slane %v1556_v13, %v4428_v26  ;;  %v1580_v3 = vrot.slane %v1572_v14, %v4428_v26  ;;  %v1571_v22 = vrot.slane %v1557_v53, %v4428_v26  ;;  %v1587_v25 = vrot.slane %v1573_v61, %v4428_v26 }
 0x460   : > { %v1592_v48 = vcombine.low %v1496_v35, %v1503_v36  ;;  %v3663_v49 = vcombine.high %v1496_v35, %v1503_v36  ;;  %v1608_v51 = vcombine.low %v1512_v37, %v1519_v38  ;;  %v3664_v60 = vcombine.high %v1512_v37, %v1519_v38 }
 0x461   : > { %v1588_v23 = vcombine.low %v1564_v56, %v1580_v3  ;;  %v1589_v28 = vcombine.high %v1564_v56, %v1580_v3  ;;  %v1590_v33 = vcombine.low %v1571_v22, %v1587_v25  ;;  %v1591_v37 = vcombine.high %v1571_v22, %v1587_v25 }
 0x462   : > { %v1599_v45 = vrot.slane %v1592_v48, %v4425_v19  ;;  %v1607_v5 = vrot.slane %v3663_v49, %v4425_v19  ;;  %v1615_v9 = vrot.slane %v1608_v51, %v4425_v19  ;;  %v1623_v46 = vrot.slane %v3664_v60, %v4425_v19 }
 0x464   : > { %v1624_v6 = vcombine.low %v1599_v45, %v1607_v5  ;;  %v1640_v12 = vcombine.low %v1615_v9, %v1623_v46  ;;  %v1625_v18 = vcombine.high %v1599_v45, %v1607_v5  ;;  %v1641_v21 = vcombine.high %v1615_v9, %v1623_v46 }
 0x466   : > { %v1632_v15 = vrot.slane %v1624_v6, %v4428_v26  ;;  %v1648_v16 = vrot.slane %v1640_v12, %v4428_v26  ;;  %v1639_v59 = vrot.slane %v1625_v18, %v4428_v26  ;;  %v1655_v52 = vrot.slane %v1641_v21, %v4428_v26 }
 0x468   : > { %v1656_v58 = vcombine.low %v1632_v15, %v1648_v16  ;;  %v1657_v24 = vcombine.high %v1632_v15, %v1648_v16  ;;  %v1658_v31 = vcombine.low %v1639_v59, %v1655_v52  ;;  %v1659_v35 = vcombine.high %v1639_v59, %v1655_v52 }
 0x46a   : > { %v1660_v27 = vpack.c.bf16 %v1656_v58, %v1588_v23  ;;  %v1661_v32 = vpack.c.bf16 %v1657_v24, %v1589_v28  ;;  %v1662_v36 = vpack.c.bf16 %v1658_v31, %v1590_v33  ;;  %v1663_v38 = vpack.c.bf16 %v1659_v35, %v1591_v37 }
 0x483   : > { %1962 = vxpose.xlu0.c.b16.start.end [1/1] (short) (narrow) %v1660_v27, 32 }
 0x485   : > { %2036 = vxpose.xlu1.c.b16.start.end [1/1] (short) (narrow) %v1661_v32, 32 }
 0x488   : > { %2110 = vxpose.xlu0.c.b16.start.end [1/1] (short) (narrow) %v1662_v36, 32 }
 0x48a   : > { %2184 = vxpose.xlu1.c.b16.start.end [1/1] (short) (narrow) %v1663_v38, 32 }
 0x4cb   : > { %v1920_v39 = vpop.xlane.xlu0 %1919 }
 0x4cc   : > { %4114 = vrcp.f32 %v1920_v39  ;;  %v4006_v39 = vld [vmem:[%s5020_s6] sm:$0xff]  }
 0x4cd   : > { %v1923_v40 = vpop.xlane.xlu1 %1922 }
 0x4ce   : > { %4116 = vrcp.f32 %v1923_v40  ;;  %v4007_v40 = vld [vmem:[%s5020_s6 + $0x8] sm:$0xff]  }
 0x4d3   : > { %v1926_v42 = vpop.xlane.xlu0 %1925 }
 0x4d4   : > { %4118 = vrcp.f32 %v1926_v42  ;;  %v4008_v42 = vld [vmem:[%s5020_s6 + $0x10] sm:$0xff]  }
 0x4d6   : > { %v4115_v43 = vpop.eup %4114 }
 0x4d7   : > { %v1929_v48 = vpop.xlane.xlu0 %1928  ;;  %v1950_v51 = vmul.f32 %v4115_v43, %v4589_v29  ;;  %v4009_v43 = vld [vmem:[%s5020_s6 + $0x18] sm:$0xff]  }
 0x4d8   : > { %v4117_v49 = vpop.eup %4116  ;;  %4120 = vrcp.f32 %v1929_v48  ;;  %v4010_v48 = vld [vmem:[%s5020_s6 + $0x20] sm:$0xff]  }
 0x4d9   : > { %v1951_v60 = vmul.f32 %v4117_v49, %v4593_v34  ;;  %v4011_v49 = vld [vmem:[%s5020_s6 + $0x28] sm:$0xff]  }
 0x4db   : > { %v1932_v7 = vpop.xlane.xlu0 %1931  ;;  %v1958_v62 = vpack.c.bf16 %v1951_v60, %v1950_v51 }
 0x4dc   : > { %4122 = vrcp.f32 %v1932_v7 }
 0x4dd   : > { %3939 = vmatprep.subr.msk.bf16.mxu0 %vm1869_vm2, %v1958_v62  ;;  %v1935_v17 = vpop.xlane.xlu1 %1934  ;;  %v1985_v2 = vsel %vm1869_vm2, %v1958_v62, 0 }
 0x4de   : > { %4124 = vrcp.f32 %v1935_v17  ;;  %3896 = vmatpush3.bf16.xpose.msra.mxu0 %v1985_v2  ;;  %v4119_v45 = vpop.eup %4118 }
 0x4df   : > { %v1952_v46 = vmul.f32 %v4119_v45, %v4597_v41 }
 0x4e2   : > { %v4121_v5 = vpop.eup %4120 }
 0x4e3   : > { %v1938_v9 = vpop.xlane.xlu0 %1937  ;;  %v1953_v11 = vmul.f32 %v4121_v5, %v4601_v50 }
 0x4e4   : > { %4126 = vrcp.f32 %v1938_v9 }
 0x4e5   : > { %v1941_v29 = vpop.xlane.xlu1 %1940  ;;  %v1959_v34 = vpack.c.bf16 %v1953_v11, %v1952_v46 }
 0x4e6   : > { %v4123_v47 = vpop.eup %4122  ;;  %4128 = vrcp.f32 %v1941_v29 }
 0x4e7   : > { %3940 = vmatprep.subr.msk.bf16.mxu1 %vm1869_vm2, %v1959_v34  ;;  %v2059_v63 = vsel %vm1869_vm2, %v1959_v34, 0  ;;  %v1954_v12 = vmul.f32 %v4123_v47, %v4605_v1 }
 0x4e8   : > { %v4125_v0 = vpop.eup %4124  ;;  %3902 = vmatpush3.bf16.xpose.msra.mxu1 %v2059_v63 }
 0x4e9   : > { %v1970_v6 = vpop.trf.xlu0  ;;  %v1955_v13 = vmul.f32 %v4125_v0, %v4609_v44 }
 0x4ea   : > { %3897 = vmatprep.mubr.msk.bf16.mxu0 %vm1869_vm2, %v1970_v6 }
 0x4eb   : > { %v2044_v41 = vpop.trf.xlu1  ;;  %v1960_v50 = vpack.c.bf16 %v1955_v13, %v1954_v12 }
 0x4ec   : > { %3903 = vmatprep.mubr.msk.bf16.mxu1 %vm1869_vm2, %v2044_v41 }
 0x4ed   : > { %v1971_v14 = vpop.trf.xlu0  ;;  %3941 = vmatprep.subr.msk.bf16.mxu0 %vm1869_vm2, %v1960_v50  ;;  %v2133_v15 = vsel %vm1869_vm2, %v1960_v50, 0 }
 0x4ee   : > { %v4127_v16 = vpop.eup %4126  ;;  %3898 = vmatmul.mubr.msk.bf16.vlgmr.msra.gmra.mrb[4].mxu0 %vm1869_vm2, %v1971_v14 }
 0x4ef   : > { %3908 = vmatpush3.bf16.xpose.msra.mxu0 %v2133_v15  ;;  %v2045_v18 = vpop.trf.xlu1  ;;  %v1956_v1 = vmul.f32 %v4127_v16, %v4613_v8 }
 0x4f0   : > { %v4129_v21 = vpop.eup %4128  ;;  %3904 = vmatmul.mubr.msk.bf16.vlgmr.msra.gmra.mrb[20].mxu1 %vm1869_vm2, %v2045_v18  ;;  %3919 = vmatprep.subr.bf16.mxu0 %v4176_v4 }
 0x4f1   : > { %v1957_v44 = vmul.f32 %v4129_v21, %v4617_v10  ;;  %v2118_v56 = vpop.trf.xlu0 }
 0x4f2   : > { %3909 = vmatprep.mubr.msk.bf16.mxu0 %vm1869_vm2, %v2118_v56 }
 0x4f3   : > { %v1961_v3 = vpack.c.bf16 %v1957_v44, %v1956_v1  ;;  %v2192_v53 = vpop.trf.xlu1 }
 0x4f4   : > { %3915 = vmatprep.mubr.msk.bf16.mxu1 %vm1869_vm2, %v2192_v53 }
 0x4f5   : > { %3942 = vmatprep.subr.msk.bf16.mxu1 %vm1869_vm2, %v1961_v3  ;;  %v2207_v61 = vsel %vm1869_vm2, %v1961_v3, 0  ;;  %v2119_v58 = vpop.trf.xlu0 }
 0x4f6   : > { %3914 = vmatpush3.bf16.xpose.msra.mxu1 %v2207_v61  ;;  %3910 = vmatmul.mubr.msk.bf16.vlgmr.msra.gmra.mrb[8].mxu0 %vm1869_vm2, %v2119_v58 }
 0x4f7   : > { %3935 = vmatprep.mubr.msk.bf16.mxu0 %vm4178_vm0, %v4176_v4  ;;  %v2193_v8 = vpop.trf.xlu1  ;;  %3920 = vmatpush3.bf16.msra.mxu0 %v4006_v39 }
 0x4f8   : > { %3921 = vmatprep.subr.bf16.mxu0 %v4176_v4 }
 0x4fb   : > { %3922 = vmatpush3.bf16.msra.mxu0 %v4007_v40 }
 0x4fc   : > { %3923 = vmatprep.subr.bf16.mxu0 %v4176_v4 }
 0x4fd   : > { %3916 = vmatmul.mubr.msk.bf16.vlgmr.msra.gmra.mrb[24].mxu1 %vm1869_vm2, %v2193_v8 }
 0x4fe   : > { %3092 = vmatprep.mubr.bf16.mxu1 %v4177_v30 }
 0x4ff   : > { %3924 = vmatpush3.bf16.msra.mxu0 %v4008_v42 }
 0x500   : > { %3925 = vmatprep.subr.bf16.mxu0 %v4176_v4 }
 0x503   : > { %3926 = vmatpush3.bf16.msra.mxu0 %v4009_v43 }
 0x504   : > { %3927 = vmatprep.subr.bf16.mxu0 %v4176_v4 }
 0x507   : > { %3928 = vmatpush3.bf16.msra.mxu0 %v4010_v48 }
 0x508   : > { %3929 = vmatprep.subr.bf16.mxu0 %v4176_v4 }
 0x50b   : > { %3930 = vmatpush3.bf16.msra.mxu0 %v4011_v49 }
 0x50c   : > { %3931 = vmatprep.subr.bf16.mxu0 %v4176_v4 }
 0x5c1   : > { %v3899_v10 = vpop.f32.mrb[4].mxu0 }
 0x5c2   : > { %v2021_v59 = vpop.f32.mrb[5].mxu0 }
 0x5c3   : > { %2258 = vxpose.xlu0.b32.start [1/4] (short) (narrow) %v2021_v59, 16  ;;  %v3900_v52 = vpop.f32.mrb[6].mxu0  ;;  %v3905_v23 = vpop.f32.mrb[20].mxu1 }
 0x5c4   : > { %v2024_v24 = vpop.f32.mrb[7].mxu0  ;;  %v2095_v22 = vpop.f32.mrb[21].mxu1 }
 0x5c5   : > { %2290 = vxpose.xlu1.b32.start [1/4] (short) (narrow) %v2095_v22, 16  ;;  %v3906_v25 = vpop.f32.mrb[22].mxu1 }
 0x5c6   : > { %v2098_v27 = vpop.f32.mrb[23].mxu1 }
 0x5c7   : > { %2259 = vxpose.xlu0.b32.cont [2/4] (short) (narrow) %v2024_v24, 16 }
 0x5c9   : > { %2291 = vxpose.xlu1.b32.cont [2/4] (short) (narrow) %v2098_v27, 16  ;;  %v3911_v28 = vpop.f32.mrb[8].mxu0 }
 0x5ca   : > { %v2169_v31 = vpop.f32.mrb[9].mxu0 }
 0x5cb   : > { %2260 = vxpose.xlu0.b32.cont [3/4] (short) (narrow) %v3899_v10, 16  ;;  %v3912_v32 = vpop.f32.mrb[10].mxu0 }
 0x5cc   : > { %v2172_v33 = vpop.f32.mrb[11].mxu0 }
 0x5cd   : > { %2292 = vxpose.xlu1.b32.cont [3/4] (short) (narrow) %v3905_v23, 16 }
 0x5cf   : > { %2261 = vxpose.xlu0.b32.end [4/4] (short) (narrow) %v3900_v52, 16 }
 0x5d0   : > { %v3917_v35 = vpop.f32.mrb[24].mxu1 }
 0x5d1   : > { %2293 = vxpose.xlu1.b32.end [4/4] (short) (narrow) %v3906_v25, 16  ;;  %v2243_v36 = vpop.f32.mrb[25].mxu1 }
 0x5d2   : > { %v3918_v37 = vpop.f32.mrb[26].mxu1 }
 0x5d3   : > { %2322 = vxpose.xlu0.b32.start [1/4] (short) (narrow) %v2169_v31, 16  ;;  %v2246_v38 = vpop.f32.mrb[27].mxu1 }
 0x5d5   : > { %2354 = vxpose.xlu1.b32.start [1/4] (short) (narrow) %v2243_v36, 16 }
 0x5d7   : > { %2323 = vxpose.xlu0.b32.cont [2/4] (short) (narrow) %v2172_v33, 16 }
 0x5d9   : > { %2355 = vxpose.xlu1.b32.cont [2/4] (short) (narrow) %v2246_v38, 16 }
 0x5db   : > { %2324 = vxpose.xlu0.b32.cont [3/4] (short) (narrow) %v3911_v28, 16 }
 0x5dd   : > { %2356 = vxpose.xlu1.b32.cont [3/4] (short) (narrow) %v3917_v35, 16 }
 0x5df   : > { %2325 = vxpose.xlu0.b32.end [4/4] (short) (narrow) %v3912_v32, 16 }
 0x5e1   : > { %2357 = vxpose.xlu1.b32.end [4/4] (short) (narrow) %v3918_v37, 16 }
 0x643   : > { %v2274_v51 = vpop.trf.xlu0 }
 0x645   : > { %v2306_v60 = vpop.trf.xlu1 }
 0x647   : > { %v2275_v7 = vpop.trf.xlu0 }
 0x649   : > { %v2307_v62 = vpop.trf.xlu1 }
 0x653   : > { %v2338_v17 = vpop.trf.xlu0 }
 0x654   : > { %v2386_v2 = vcombine.low %v2274_v51, %v2338_v17  ;;  %v2387_v45 = vcombine.high %v2274_v51, %v2338_v17 }
 0x655   : > { %v2370_v5 = vpop.trf.xlu1 }
 0x656   : > { %v2402_v9 = vcombine.low %v2306_v60, %v2370_v5  ;;  %v2403_v46 = vcombine.high %v2306_v60, %v2370_v5  ;;  %v2394_v29 = vrot.slane %v2386_v2, %v4425_v19  ;;  %v2401_v34 = vrot.slane %v2387_v45, %v4425_v19 }
 0x657   : > { %v2339_v11 = vpop.trf.xlu0 }
 0x658   : > { %v2410_v47 = vrot.slane %v2402_v9, %v4425_v19  ;;  %v2417_v63 = vrot.slane %v2403_v46, %v4425_v19  ;;  %v2454_v0 = vcombine.low %v2275_v7, %v2339_v11  ;;  %v2455_v6 = vcombine.high %v2275_v7, %v2339_v11  ;;  %v4012_v7 = vld [vmem:[%s5020_s6 + $0x30] sm:$0xff]  }
 0x659   : > { %v2371_v12 = vpop.trf.xlu1  ;;  %3932 = vmatpush3.bf16.msra.mxu0 %v4012_v7  ;;  %v4020_v7 = vld [vmem:[%s5024_s10 + $0x20] ss:$16 sps:$4 sm:$0xff]  }
 0x65a   : > { %v2418_v13 = vcombine.low %v2394_v29, %v2410_v47  ;;  %v2419_v41 = vcombine.high %v2394_v29, %v2410_v47  ;;  %v2434_v50 = vcombine.low %v2401_v34, %v2417_v63  ;;  %v2435_v14 = vcombine.high %v2401_v34, %v2417_v63  ;;  %3933 = vmatprep.subr.bf16.mxu0 %v4176_v4 }
 0x65b   : > { %v2470_v15 = vcombine.low %v2307_v62, %v2371_v12  ;;  %v2471_v16 = vcombine.high %v2307_v62, %v2371_v12  ;;  %v2462_v56 = vrot.slane %v2454_v0, %v4425_v19  ;;  %v2469_v3 = vrot.slane %v2455_v6, %v4425_v19  ;;  %v4013_v12 = vld [vmem:[%s5020_s6 + $0x38] sm:$0xff]  }
 0x65c   : > { %v2426_v18 = vrot.slane %v2418_v13, %v4428_v26  ;;  %v2433_v21 = vrot.slane %v2419_v41, %v4428_v26  ;;  %v2442_v1 = vrot.slane %v2434_v50, %v4428_v26  ;;  %v2449_v44 = vrot.slane %v2435_v14, %v4428_v26 }
 0x65d   : > { %v2478_v53 = vrot.slane %v2470_v15, %v4425_v19  ;;  %v2485_v61 = vrot.slane %v2471_v16, %v4425_v19  ;;  %3934 = vmatpush3.bf16.msra.mxu0 %v4013_v12  ;;  %v4032_v12 = vld [vmem:[%s5024_s10 + $0x60] ss:$16 sps:$4 sm:$0xff]  }
 0x65e   : > { %v2522_v58 = vcombine.low %v2426_v18, %v2433_v21  ;;  %v3677_v8 = vcombine.high %v2426_v18, %v2433_v21  ;;  %v2538_v10 = vcombine.low %v2442_v1, %v2449_v44  ;;  %v3678_v59 = vcombine.high %v2442_v1, %v2449_v44 }
 0x65f   : > { %v2486_v52 = vcombine.low %v2462_v56, %v2478_v53  ;;  %v2487_v23 = vcombine.high %v2462_v56, %v2478_v53  ;;  %v2502_v24 = vcombine.low %v2469_v3, %v2485_v61  ;;  %v2503_v22 = vcombine.high %v2469_v3, %v2485_v61 }
 0x660   : > { %v2529_v25 = vrot.slane %v2522_v58, %v4425_v19  ;;  %v2537_v27 = vrot.slane %v3677_v8, %v4425_v19  ;;  %v2545_v28 = vrot.slane %v2538_v10, %v4425_v19  ;;  %v2553_v31 = vrot.slane %v3678_v59, %v4425_v19 }
 0x661   : > { %v2494_v32 = vrot.slane %v2486_v52, %v4428_v26  ;;  %v2501_v33 = vrot.slane %v2487_v23, %v4428_v26  ;;  %v2510_v35 = vrot.slane %v2502_v24, %v4428_v26  ;;  %v2517_v36 = vrot.slane %v2503_v22, %v4428_v26 }
 0x662   : > { %v2555_v37 = vcombine.high %v2529_v25, %v2537_v27  ;;  %v2571_v38 = vcombine.high %v2545_v28, %v2553_v31  ;;  %v2554_v39 = vcombine.low %v2529_v25, %v2537_v27  ;;  %v2570_v40 = vcombine.low %v2545_v28, %v2553_v31  ;;  %v3681_v28 = vld [vmem:[%s5021_s7] ss:$0 sm:$0xff] }
 0x663   : > { %v2590_v42 = vcombine.low %v2494_v32, %v2501_v33  ;;  %v3679_v43 = vcombine.high %v2494_v32, %v2501_v33  ;;  %v2606_v48 = vcombine.low %v2510_v35, %v2517_v36  ;;  %v3680_v49 = vcombine.high %v2510_v35, %v2517_v36  ;;  %v4166_v36 = vld [vmem:[%s4275_s18] sm:$0xff] }
 0x664   : > { %v2562_v51 = vrot.slane %v2554_v39, %v4428_v26  ;;  %v2578_v60 = vrot.slane %v2570_v40, %v4428_v26  ;;  %v2569_v5 = vrot.slane %v2555_v37, %v4428_v26  ;;  %v2585_v9 = vrot.slane %v2571_v38, %v4428_v26  ;;  %v4167_v40 = vld [vmem:[%s4275_s18 + $0x8] sm:$0xff] }
 0x665   : > { %v2597_v62 = vrot.slane %v2590_v42, %v4425_v19  ;;  %v2605_v17 = vrot.slane %v3679_v43, %v4425_v19  ;;  %v2613_v2 = vrot.slane %v2606_v48, %v4425_v19  ;;  %v2621_v45 = vrot.slane %v3680_v49, %v4425_v19  ;;  %v4016_v43 = vld [vmem:[%s5024_s10 + $0x4] ss:$16 sps:$4 sm:$0xff]   ;;  %v4017_v48 = vld [vmem:[%s5024_s10 + $0x8] ss:$16 sps:$4 sm:$0xff]   ;;  %v4019_v49 = vld [vmem:[%s5024_s10 + $0xc] ss:$16 sps:$4 sm:$0xff]  }
 0x666   : > { %v2586_v46 = vcombine.low %v2562_v51, %v2578_v60  ;;  %v2588_v13 = vcombine.low %v2569_v5, %v2585_v9  ;;  %v2587_v50 = vcombine.high %v2562_v51, %v2578_v60  ;;  %v2589_v21 = vcombine.high %v2569_v5, %v2585_v9  ;;  %v4022_v51 = vld [vmem:[%s5024_s10 + $0x24] ss:$16 sps:$4 sm:$0xff]   ;;  %3060 = vmatprep.subr.bf16.mxu1 %v4016_v43  ;;  %v4025_v60 = vld [vmem:[%s5024_s10 + $0x2c] ss:$16 sps:$4 sm:$0xff]  }
 0x667   : > { %v2623_v11 = vcombine.high %v2597_v62, %v2605_v17  ;;  %v2639_v29 = vcombine.high %v2613_v2, %v2621_v45  ;;  %v2622_v34 = vcombine.low %v2597_v62, %v2605_v17  ;;  %v2638_v47 = vcombine.low %v2613_v2, %v2621_v45  ;;  %3103 = vmatprep.subr.bf16.mxu0 %v4019_v49  ;;  %v4023_v62 = vld [vmem:[%s5024_s10 + $0x28] ss:$16 sps:$4 sm:$0xff]   ;;  %v4064_v43 = vld [vmem:[%s5026_s12] sm:$0xff]  }
 0x668   : > { %v4066_v49 = vld [vmem:[%s5026_s12 + $0x48] sm:$0xff]  }
 0x669   : > { %v2637_v63 = vrot.slane %v2623_v11, %v4428_v26  ;;  %v2653_v0 = vrot.slane %v2639_v29, %v4428_v26  ;;  %v2630_v6 = vrot.slane %v2622_v34, %v4428_v26  ;;  %v2646_v19 = vrot.slane %v2638_v47, %v4428_v26  ;;  %v4028_v34 = vld [vmem:[%s5024_s10 + $0x44] ss:$16 sps:$4 sm:$0xff]   ;;  %v4031_v47 = vld [vmem:[%s5024_s10 + $0x4c] ss:$16 sps:$4 sm:$0xff]  }
 0x66b   : > { %v2656_v41 = vcombine.low %v2637_v63, %v2653_v0  ;;  %v2655_v14 = vcombine.high %v2630_v6, %v2646_v19  ;;  %v2654_v15 = vcombine.low %v2630_v6, %v2646_v19  ;;  %v2657_v18 = vcombine.high %v2637_v63, %v2653_v0  ;;  %v4026_v63 = vld [vmem:[%s5024_s10 + $0x40] ss:$16 sps:$4 sm:$0xff]   ;;  %v4029_v0 = vld [vmem:[%s5024_s10 + $0x48] ss:$16 sps:$4 sm:$0xff]   ;;  %v4034_v6 = vld [vmem:[%s5024_s10 + $0x64] ss:$16 sps:$4 sm:$0xff]  }
 0x66c   : > { %v4037_v19 = vld [vmem:[%s5024_s10 + $0x6c] ss:$16 sps:$4 sm:$0xff]  }
 0x66d   : > { %v3964_v16 = vpack.i.bf16 %v2656_v41, %v2588_v13  ;;  %v3959_v4 = vpack.i.bf16 %v2655_v14, %v2587_v50  ;;  %v3969_v1 = vpack.i.bf16 %v2657_v18, %v2589_v21  ;;  %v4035_v13 = vld [vmem:[%s5024_s10 + $0x68] ss:$16 sps:$4 sm:$0xff]   ;;  %v4040_v41 = vld [vmem:[%s5024_s10 + $0x84] ss:$16 sps:$4 sm:$0xff]   ;;  %v4043_v50 = vld [vmem:[%s5024_s10 + $0x8c] ss:$16 sps:$4 sm:$0xff]  }
 0x66e   : > { %v4038_v14 = vld [vmem:[%s5024_s10 + $0x80] ss:$16 sps:$4 sm:$0xff]   ;;  %v4047_v21 = vld [vmem:[%s5024_s10 + $0xa8] ss:$16 sps:$4 sm:$0xff]  }
 0x66f   : > { %3965 = vrot.lane.b32.xlu1 %v3964_v16, %s4180_s26  ;;  %3960 = vrot.lane.b32.xlu0 %v3959_v4, %s4181_s27  ;;  %v4046_v16 = vld [vmem:[%s5024_s10 + $0xa4] ss:$16 sps:$4 sm:$0xff]   ;;  %v4049_v4 = vld [vmem:[%s5024_s10 + $0xac] ss:$16 sps:$4 sm:$0xff]  }
 0x670   : > { %v4044_v18 = vld [vmem:[%s5024_s10 + $0xa0] ss:$16 sps:$4 sm:$0xff]  }
 0x673   : > { %3970 = vrot.lane.b32.xlu1 %v3969_v1, %s4179_s25  ;;  %v4052_v1 = vld [vmem:[%s5024_s10 + $0xc4] ss:$16 sps:$4 sm:$0xff]  }
 0x6e1   : > { %v3966_v26 = vpop.permute.xlu1 %3965  ;;  %v3961_v44 = vpop.permute.xlu0 %3960 }
 0x6e2   : > { %v3963_v56 = vunpack.i.h.bf16 %v3961_v44  ;;  %v3962_v3 = vunpack.i.l.bf16 %v3961_v44  ;;  %v3968_v53 = vunpack.i.h.bf16 %v3966_v26  ;;  %v3967_v61 = vunpack.i.l.bf16 %v3966_v26  ;;  %v4055_v26 = vld [vmem:[%s5024_s10 + $0xcc] ss:$16 sps:$4 sm:$0xff]   ;;  %v4050_v44 = vld [vmem:[%s5024_s10 + $0xc0] ss:$16 sps:$4 sm:$0xff]  }
 0x6e4   : > { %v2682_v58 = vsel %vm1664_vm1, %v2586_v46, %v3962_v3  ;;  %v2683_v8 = vsel %vm1664_vm1, %v2654_v15, %v3963_v56  ;;  %v4041_v15 = vld [vmem:[%s5024_s10 + $0x88] ss:$16 sps:$4 sm:$0xff]   ;;  %v4058_v3 = vld [vmem:[%s5024_s10 + $0xe4] ss:$16 sps:$4 sm:$0xff]  }
 0x6e5   : > { %v3971_v10 = vpop.permute.xlu1 %3970  ;;  %v2685_v23 = vsel %vm2684_vm3, %v2682_v58, %v3967_v61  ;;  %v2686_v24 = vsel %vm2684_vm3, %v2683_v8, %v3968_v53  ;;  %v4053_v56 = vld [vmem:[%s5024_s10 + $0xc8] ss:$16 sps:$4 sm:$0xff]   ;;  %v4061_v53 = vld [vmem:[%s5024_s10 + $0xec] ss:$16 sps:$4 sm:$0xff]   ;;  %v4056_v61 = vld [vmem:[%s5024_s10 + $0xe0] ss:$16 sps:$4 sm:$0xff]  }
 0x6e6   : > { %v3973_v59 = vunpack.i.h.bf16 %v3971_v10  ;;  %v3972_v52 = vunpack.i.l.bf16 %v3971_v10  ;;  %v4059_v58 = vld [vmem:[%s5024_s10 + $0xe8] ss:$16 sps:$4 sm:$0xff]  }
 0x6e8   : > { %v2688_v22 = vsel %vm2687_vm4, %v2685_v23, %v3972_v52  ;;  %v2689_v25 = vsel %vm2687_vm4, %v2686_v24, %v3973_v59 }
 0x6e9   : > { %v2690_v27 = vpack.c.bf16 %v2689_v25, %v2688_v22 }
 0x6eb   : > { %3936 = vmatmul.mubr.bf16.vlgmr.msra.gmra.mrb[12].mxu0 %v2690_v27  ;;  %v3690_v27 = vld [vmem:[%s5022_s8] ss:$0 sm:$0xff] }
 0x6ec   : > { %3135 = vmatprep.mubr.bf16.mxu0 %v4177_v30  ;;  %v4014_v30 = vld [vmem:[%s5024_s10] ss:$16 sps:$4 sm:$0xff]   ;;  %3104 = vmatpush1.bf16.msra.mxu0 %v4017_v48 }
 0x6ed   : > { %3061 = vmatpush1.bf16.msra.mxu1 %v4014_v30  ;;  %3105 = vmatprep.subr.bf16.mxu0 %v4025_v60  ;;  %v4063_v30 = vld [vmem:[%s5026_s12 + $0xc0] sm:$0xff]   ;;  %v4068_v60 = vld [vmem:[%s5026_s12 + $0x8] sm:$0xff]  }
 0x6ee   : > { %3062 = vmatprep.subr.bf16.mxu1 %v4022_v51  ;;  %v4065_v48 = vld [vmem:[%s5026_s12 + $0x80] sm:$0xff]   ;;  %v4067_v51 = vld [vmem:[%s5026_s12 + $0xc8] sm:$0xff]  }
 0x6f0   : > { %3106 = vmatpush1.bf16.msra.mxu0 %v4023_v62  ;;  %v4070_v62 = vld [vmem:[%s5026_s12 + $0x50] sm:$0xff]  }
 0x6f1   : > { %3063 = vmatpush1.bf16.msra.mxu1 %v4020_v7  ;;  %3107 = vmatprep.subr.bf16.mxu0 %v4031_v47  ;;  %v4069_v7 = vld [vmem:[%s5026_s12 + $0x88] sm:$0xff]   ;;  %v4080_v47 = vld [vmem:[%s5026_s12 + $0x20] sm:$0xff]  }
 0x6f2   : > { %3064 = vmatprep.subr.bf16.mxu1 %v4028_v34  ;;  %v4079_v34 = vld [vmem:[%s5026_s12 + $0xe0] sm:$0xff]  }
 0x6f4   : > { %3108 = vmatpush1.bf16.msra.mxu0 %v4029_v0  ;;  %v4082_v0 = vld [vmem:[%s5026_s12 + $0x68] sm:$0xff]  }
 0x6f5   : > { %3065 = vmatpush1.bf16.msra.mxu1 %v4026_v63  ;;  %3109 = vmatprep.subr.bf16.mxu0 %v4037_v19  ;;  %v4081_v63 = vld [vmem:[%s5026_s12 + $0xa0] sm:$0xff]   ;;  %v4084_v19 = vld [vmem:[%s5026_s12 + $0x28] sm:$0xff]  }
 0x6f6   : > { %3066 = vmatprep.subr.bf16.mxu1 %v4034_v6  ;;  %v4083_v6 = vld [vmem:[%s5026_s12 + $0xe8] sm:$0xff]  }
 0x6f8   : > { %3110 = vmatpush1.bf16.msra.mxu0 %v4035_v13  ;;  %v4086_v13 = vld [vmem:[%s5026_s12 + $0x70] sm:$0xff]  }
 0x6f9   : > { %3067 = vmatpush1.bf16.msra.mxu1 %v4032_v12  ;;  %3111 = vmatprep.subr.bf16.mxu0 %v4043_v50  ;;  %v4085_v12 = vld [vmem:[%s5026_s12 + $0xa8] sm:$0xff]   ;;  %v4088_v50 = vld [vmem:[%s5026_s12 + $0x30] sm:$0xff]  }
 0x6fa   : > { %3068 = vmatprep.subr.bf16.mxu1 %v4040_v41  ;;  %v4087_v41 = vld [vmem:[%s5026_s12 + $0xf0] sm:$0xff]  }
 0x6fc   : > { %3112 = vmatpush1.bf16.msra.mxu0 %v4041_v15  ;;  %v4090_v15 = vld [vmem:[%s5026_s12 + $0x78] sm:$0xff]  }
 0x6fd   : > { %3069 = vmatpush1.bf16.msra.mxu1 %v4038_v14  ;;  %3113 = vmatprep.subr.bf16.mxu0 %v4049_v4  ;;  %v4089_v14 = vld [vmem:[%s5026_s12 + $0xb0] sm:$0xff]   ;;  %v4092_v4 = vld [vmem:[%s5026_s12 + $0x38] sm:$0xff]  }
 0x6fe   : > { %3070 = vmatprep.subr.bf16.mxu1 %v4046_v16  ;;  %v4091_v16 = vld [vmem:[%s5026_s12 + $0xf8] sm:$0xff]  }
 0x700   : > { %3114 = vmatpush1.bf16.msra.mxu0 %v4047_v21  ;;  %v2878_v21 = vld [vmem:[%s5025_s11] sm:$0xf] }
 0x701   : > { %3071 = vmatpush1.bf16.msra.mxu1 %v4044_v18  ;;  %3115 = vmatprep.subr.bf16.mxu0 %v4055_v26  ;;  %v4093_v18 = vld [vmem:[%s5026_s12 + $0xb8] sm:$0xff]   ;;  %v2883_v26 = vrot.slane %v2878_v21, %v551_v55 }
 0x702   : > { %3072 = vmatprep.subr.bf16.mxu1 %v4052_v1  ;;  %v2894_v1 = vsub.s32 3, %v4381_v54 }
 0x704   : > { %3116 = vmatpush1.bf16.msra.mxu0 %v4053_v56  ;;  %v2887_v56 = vrot.slane %v2878_v21, %v555_v57 }
 0x705   : > { %3073 = vmatpush1.bf16.msra.mxu1 %v4050_v44  ;;  %3117 = vmatprep.subr.bf16.mxu0 %v4061_v53  ;;  %v2891_v44 = vrot.slane %v2878_v21, %v559_v20 }
 0x706   : > { %3074 = vmatprep.subr.bf16.mxu1 %v4058_v3  ;;  %v2895_v3 = vrot.slane %v2878_v21, %v2894_v1 }
 0x708   : > { %3118 = vmatpush1.bf16.msra.mxu0 %v4059_v58 }
 0x709   : > { %3075 = vmatpush1.bf16.msra.mxu1 %v4056_v61  ;;  %3829 = vmatprep.subr.bf16.mxu0 %v4063_v30 }
 0x7be   : > { %v2796_v31 = vpop.f32.mrb[12].mxu0 }
 0x7bf   : > { %v2797_v32 = vadd.f32 %v3681_v28, %v2796_v31  ;;  %v3937_v33 = vpop.f32.mrb[13].mxu0 }
 0x7c0   : > { %v2799_v35 = vpop.f32.mrb[14].mxu0  ;;  %v3691_v33 = vld [vmem:[%s5023_s9] ss:$0 sm:$0xff] }
 0x7c1   : > { %v4758_v37 = vadd.f32 %v4166_v36, %v2797_v32  ;;  %v2800_v38 = vadd.f32 %v3681_v28, %v2799_v35  ;;  %v3938_v39 = vpop.f32.mrb[15].mxu0 }
 0x7c3   : > { %v4761_v42 = vadd.f32 %v4167_v40, %v2800_v38  ;;  %2807 = vadd.xlane.f32.xlu1 %v4758_v37  ;;  %v4062_v40 = vld [vmem:[%s5026_s12 + $0x40] sm:$0xff]  }
 0x7c4   : > { %3807 = vmatprep.subr.bf16.mxu1 %v4062_v40 }
 0x7c5   : > { %2809 = vadd.xlane.f32.xlu0 %v4761_v42 }
 0x850   : > { %v2808_v17 = vpop.xlane.xlu1 %2807 }
 0x851   : > { %v2811_v2 = vmul.f32 0.0078125, %v2808_v17  ;;  %v4071_v17 = vld [vmem:[%s5026_s12 + $0xd0] sm:$0xff]  }
 0x852   : > { %v2810_v45 = vpop.xlane.xlu0 %2809 }
 0x853   : > { %v4790_v5 = vsub.f32 %v4758_v37, %v2811_v2  ;;  %v2812_v9 = vmul.f32 0.0078125, %v2810_v45  ;;  %v4072_v2 = vld [vmem:[%s5026_s12 + $0x10] sm:$0xff]  }
 0x854   : > { %v4073_v45 = vld [vmem:[%s5026_s12 + $0x90] sm:$0xff]  }
 0x855   : > { %v4793_v46 = vsub.f32 %v4761_v42, %v2812_v9  ;;  %v2815_v11 = vmul.f32 %v4790_v5, %v4790_v5  ;;  %v4075_v9 = vld [vmem:[%s5026_s12 + $0xd8] sm:$0xff]  }
 0x857   : > { %2817 = vadd.xlane.f32.xlu0 %v2815_v11  ;;  %v2816_v29 = vmul.f32 %v4793_v46, %v4793_v46  ;;  %v4077_v11 = vld [vmem:[%s5026_s12 + $0x98] sm:$0xff]  }
 0x85b   : > { %2819 = vadd.xlane.f32.xlu0 %v2816_v29  ;;  %v4078_v29 = vld [vmem:[%s5026_s12 + $0x60] sm:$0xff]  }
 0x8e4   : > { %v2818_v8 = vpop.xlane.xlu0 %2817 }
 0x8e5   : > { %v2821_v10 = vmul.f32 0.0078125, %v2818_v8 }
 0x8e7   : > { %v2823_v59 = vadd.f32 1e-05, %v2821_v10 }
 0x8e8   : > { %v2820_v52 = vpop.xlane.xlu0 %2819 }
 0x8e9   : > { %4130 = vrsqrt.f32 %v2823_v59  ;;  %v2822_v23 = vmul.f32 0.0078125, %v2820_v52 }
 0x8eb   : > { %v2824_v24 = vadd.f32 1e-05, %v2822_v23 }
 0x8ed   : > { %4132 = vrsqrt.f32 %v2824_v24 }
 0x8f3   : > { %v4131_v22 = vpop.eup %4130 }
 0x8f4   : > { %v2827_v25 = vmul.f32 %v4131_v22, %v4790_v5  ;;  %v4074_v5 = vld [vmem:[%s5026_s12 + $0x58] sm:$0xff]  }
 0x8f6   : > { %v2835_v32 = vmul.f32 %v3690_v27, %v2827_v25 }
 0x8f7   : > { %v4133_v28 = vpop.eup %4132 }
 0x8f8   : > { %v2828_v31 = vmul.f32 %v4133_v28, %v4793_v46  ;;  %v2843_v36 = vadd.f32 %v3691_v33, %v2835_v32  ;;  %v4076_v46 = vld [vmem:[%s5026_s12 + $0x18] sm:$0xff]  }
 0x8fa   : > { %v2836_v35 = vmul.f32 %v3690_v27, %v2828_v31 }
 0x8fc   : > { %v2844_v38 = vadd.f32 %v3691_v33, %v2836_v35 }
 0x8fe   : > { %v2845_v39 = vpack.c.bf16 %v2844_v38, %v2843_v36 }
 0x900   : > { %3093 = vmatmul.mubr.bf16.vlgmr.msra.gmra.mrb[28].mxu1 %v2845_v39  ;;  %3136 = vmatmul.mubr.bf16.vlgmr.msra.gmra.mrb[16].mxu0 %v2845_v39 }
 0x901   : > { %3808 = vmatpush3.bf16.msra.mxu1 %v4064_v43  ;;  %3830 = vmatpush3.bf16.msra.mxu0 %v4065_v48 }
 0x902   : > { %3809 = vmatprep.subr.bf16.mxu1 %v4066_v49  ;;  %3831 = vmatprep.subr.bf16.mxu0 %v4067_v51 }
 0x905   : > { %3810 = vmatpush3.bf16.msra.mxu1 %v4068_v60  ;;  %3832 = vmatpush3.bf16.msra.mxu0 %v4069_v7 }
 0x906   : > { %3811 = vmatprep.subr.bf16.mxu1 %v4070_v62  ;;  %3833 = vmatprep.subr.bf16.mxu0 %v4071_v17 }
 0x909   : > { %3812 = vmatpush3.bf16.msra.mxu1 %v4072_v2  ;;  %3834 = vmatpush3.bf16.msra.mxu0 %v4073_v45 }
 0x90a   : > { %3813 = vmatprep.subr.bf16.mxu1 %v4074_v5  ;;  %3835 = vmatprep.subr.bf16.mxu0 %v4075_v9 }
 0x90d   : > { %3814 = vmatpush3.bf16.msra.mxu1 %v4076_v46  ;;  %3836 = vmatpush3.bf16.msra.mxu0 %v4077_v11 }
 0x90e   : > { %3815 = vmatprep.subr.bf16.mxu1 %v4078_v29  ;;  %3837 = vmatprep.subr.bf16.mxu0 %v4079_v34 }
 0x911   : > { %3816 = vmatpush3.bf16.msra.mxu1 %v4080_v47  ;;  %3838 = vmatpush3.bf16.msra.mxu0 %v4081_v63 }
 0x912   : > { %3817 = vmatprep.subr.bf16.mxu1 %v4082_v0  ;;  %3839 = vmatprep.subr.bf16.mxu0 %v4083_v6 }
 0x915   : > { %3818 = vmatpush3.bf16.msra.mxu1 %v4084_v19  ;;  %3840 = vmatpush3.bf16.msra.mxu0 %v4085_v12 }
 0x916   : > { %3819 = vmatprep.subr.bf16.mxu1 %v4086_v13  ;;  %3841 = vmatprep.subr.bf16.mxu0 %v4087_v41 }
 0x919   : > { %3820 = vmatpush3.bf16.msra.mxu1 %v4088_v50  ;;  %3842 = vmatpush3.bf16.msra.mxu0 %v4089_v14 }
 0x91a   : > { %3821 = vmatprep.subr.bf16.mxu1 %v4090_v15  ;;  %3843 = vmatprep.subr.bf16.mxu0 %v4091_v16 }
 0x91d   : > { %3822 = vmatpush3.bf16.msra.mxu1 %v4092_v4  ;;  %3844 = vmatpush3.bf16.msra.mxu0 %v4093_v18 }
 0x9d3   : > { %v3094_v53 = vpop.f32.mrb[28].mxu1  ;;  %v3137_v61 = vpop.f32.mrb[16].mxu0 }
 0x9d4   : > { %v4985_v58 = vadd.f32 %v3094_v53, %v2883_v26  ;;  %v4987_v8 = vadd.f32 %v3137_v61, %v2891_v44  ;;  %v3096_v10 = vpop.f32.mrb[29].mxu1  ;;  %v3139_v59 = vpop.f32.mrb[17].mxu0 }
 0x9d5   : > { %v4989_v52 = vadd.f32 %v3096_v10, %v2887_v56  ;;  %v4991_v23 = vadd.f32 %v3139_v59, %v2895_v3  ;;  %v3098_v55 = vpop.f32.mrb[30].mxu1  ;;  %v3141_v24 = vpop.f32.mrb[18].mxu0 }
 0x9d6   : > { %v3724_v20 = vmul.f32 -1.702, %v4985_v58  ;;  %v3726_v54 = vmul.f32 -1.702, %v4987_v8  ;;  %v3099_v57 = vadd.f32 %v3098_v55, %v2883_v26  ;;  %v3142_v22 = vadd.f32 %v3141_v24, %v2891_v44  ;;  %v3100_v25 = vpop.f32.mrb[31].mxu1  ;;  %v3143_v27 = vpop.f32.mrb[19].mxu0 }
 0x9d7   : > { %v3725_v28 = vmul.f32 -1.702, %v4989_v52  ;;  %v3727_v31 = vmul.f32 -1.702, %v4991_v23  ;;  %v3101_v32 = vadd.f32 %v3100_v25, %v2887_v56  ;;  %v3144_v33 = vadd.f32 %v3143_v27, %v2895_v3 }
 0x9d8   : > { %v3162_v35 = vmul.f32 1.442695, %v3724_v20  ;;  %v3166_v36 = vmul.f32 1.442695, %v3726_v54  ;;  %v3728_v38 = vmul.f32 -1.702, %v3099_v57 }
 0x9d9   : > { %v3164_v39 = vmul.f32 1.442695, %v3725_v28  ;;  %v3168_v40 = vmul.f32 1.442695, %v3727_v31  ;;  %v3730_v30 = vmul.f32 -1.702, %v3142_v22 }
 0x9da   : > { %4134 = vpow2.f32 %v3162_v35  ;;  %v3170_v43 = vmul.f32 1.442695, %v3728_v38  ;;  %v3729_v48 = vmul.f32 -1.702, %v3101_v32  ;;  %v3731_v49 = vmul.f32 -1.702, %v3144_v33 }
 0x9db   : > { %4136 = vpow2.f32 %v3166_v36  ;;  %v3174_v51 = vmul.f32 1.442695, %v3730_v30 }
 0x9dc   : > { %4138 = vpow2.f32 %v3164_v39  ;;  %v3172_v60 = vmul.f32 1.442695, %v3729_v48  ;;  %v3176_v7 = vmul.f32 1.442695, %v3731_v49 }
 0x9dd   : > { %4140 = vpow2.f32 %v3168_v40 }
 0x9de   : > { %4142 = vpow2.f32 %v3170_v43 }
 0x9df   : > { %4144 = vpow2.f32 %v3174_v51 }
 0x9e0   : > { %4146 = vpow2.f32 %v3172_v60 }
 0x9e1   : > { %4148 = vpow2.f32 %v3176_v7 }
 0x9e4   : > { %v4135_v62 = vpop.eup %4134 }
 0x9e5   : > { %v4137_v17 = vpop.eup %4136  ;;  %v3178_v2 = vadd.f32 1.0, %v4135_v62 }
 0x9e6   : > { %v4139_v45 = vpop.eup %4138  ;;  %v3180_v5 = vadd.f32 1.0, %v4137_v17 }
 0x9e7   : > { %v4141_v9 = vpop.eup %4140  ;;  %4150 = vrcp.f32 %v3178_v2  ;;  %v3179_v46 = vadd.f32 1.0, %v4139_v45 }
 0x9e8   : > { %v4143_v11 = vpop.eup %4142  ;;  %4152 = vrcp.f32 %v3180_v5  ;;  %v3181_v29 = vadd.f32 1.0, %v4141_v9 }
 0x9e9   : > { %v4145_v34 = vpop.eup %4144  ;;  %4154 = vrcp.f32 %v3179_v46  ;;  %v3182_v47 = vadd.f32 1.0, %v4143_v11 }
 0x9ea   : > { %v4147_v63 = vpop.eup %4146  ;;  %4156 = vrcp.f32 %v3181_v29  ;;  %v3184_v0 = vadd.f32 1.0, %v4145_v34 }
 0x9eb   : > { %v4149_v6 = vpop.eup %4148  ;;  %4158 = vrcp.f32 %v3182_v47  ;;  %v3183_v19 = vadd.f32 1.0, %v4147_v63 }
 0x9ec   : > { %4160 = vrcp.f32 %v3184_v0  ;;  %v3185_v12 = vadd.f32 1.0, %v4149_v6 }
 0x9ed   : > { %4162 = vrcp.f32 %v3183_v19 }
 0x9ee   : > { %4164 = vrcp.f32 %v3185_v12 }
 0x9f1   : > { %v4151_v13 = vpop.eup %4150 }
 0x9f2   : > { %v4153_v41 = vpop.eup %4152  ;;  %v3202_v4 = vmul.f32 %v4151_v13, %v4985_v58 }
 0x9f3   : > { %v4155_v50 = vpop.eup %4154  ;;  %v3204_v1 = vmul.f32 %v4153_v41, %v4987_v8  ;;  %v3732_v8 = vld [vmem:[%s5027_s13] ss:$0 sm:$0xff] }
 0x9f4   : > { %v4157_v14 = vpop.eup %4156  ;;  %v3203_v56 = vmul.f32 %v4155_v50, %v4989_v52 }
 0x9f5   : > { %v4159_v15 = vpop.eup %4158  ;;  %v3205_v61 = vmul.f32 %v4157_v14, %v4991_v23 }
 0x9f6   : > { %v4161_v16 = vpop.eup %4160  ;;  %v3206_v18 = vmul.f32 %v4159_v15, %v3099_v57 }
 0x9f7   : > { %v4163_v21 = vpop.eup %4162  ;;  %v3208_v26 = vmul.f32 %v4161_v16, %v3142_v22 }
 0x9f8   : > { %v4165_v44 = vpop.eup %4164  ;;  %v3210_v3 = vpack.c.bf16 %v3206_v18, %v3202_v4  ;;  %v3207_v53 = vmul.f32 %v4163_v21, %v3101_v32 }
 0x9f9   : > { %v3212_v10 = vpack.c.bf16 %v3208_v26, %v3204_v1  ;;  %v3209_v59 = vmul.f32 %v4165_v44, %v3144_v33 }
 0x9fa   : > { %v3211_v55 = vpack.c.bf16 %v3207_v53, %v3203_v56 }
 0x9fb   : > { %v3213_v24 = vpack.c.bf16 %v3209_v59, %v3205_v61 }
 0x9fc   : > { %3509 = vmatprep.mubr.bf16.mxu1 %v3211_v55 }
 0x9fd   : > { %3550 = vmatprep.mubr.bf16.mxu0 %v3213_v24  ;;  %3510 = vmatmul.mubr.bf16.vlgmr.msra.gmra.mrb[32].mxu1 %v3210_v3 }
 0x9fe   : > { %3551 = vmatmul.mubr.bf16.vlgmr.msra.gmra.mrb[20].mxu0 %v3212_v10 }
 0xad0   : > { %v3823_v58 = vpop.f32.mrb[32].mxu1 }
 0xad1   : > { %v3845_v20 = vpop.f32.mrb[20].mxu0  ;;  %v3824_v52 = vpop.f32.mrb[33].mxu1 }
 0xad2   : > { %v3825_v54 = vadd.f32 %v3824_v52, %v3823_v58  ;;  %v3846_v57 = vpop.f32.mrb[21].mxu0  ;;  %v3826_v22 = vpop.f32.mrb[34].mxu1 }
 0xad3   : > { %v3847_v23 = vadd.f32 %v3846_v57, %v3845_v20  ;;  %v3848_v25 = vpop.f32.mrb[22].mxu0  ;;  %v3827_v27 = vpop.f32.mrb[35].mxu1 }
 0xad4   : > { %v3512_v28 = vadd.f32 %v3825_v54, %v3732_v8  ;;  %v3828_v31 = vadd.f32 %v3827_v27, %v3826_v22  ;;  %v3849_v32 = vpop.f32.mrb[23].mxu0 }
 0xad5   : > { %v3850_v33 = vadd.f32 %v3849_v32, %v3848_v25 }
 0xad6   : > { %v3553_v35 = vadd.f32 %v3847_v23, %v3512_v28  ;;  %v3515_v36 = vadd.f32 %v3828_v31, %v3732_v8 }
 0xad8   : > { %v3559_v38 = vadd.f32 %v3553_v35, %v4758_v37  ;;  %v3556_v39 = vadd.f32 %v3850_v33, %v3515_v36 }
 0xada   : > { %3561 = vst [vmem:[%s467_s24] sm:$0xff] %v3559_v38  ;;  %v3560_v40 = vadd.f32 %v3556_v39, %v4761_v42 }
 0xadc   : > { %3562 = vst [vmem:[%s467_s24 + $0x8] sm:$0xff] %v3560_v40 }
 0xadd PF: > { %s24_s29 = sadd.s32 1, %s4174_s29  }
 0xade   : > { %p21_p4 = scmp.ge.s32.totalorder %s24_s29, 4  }
 0xae0   :  { %23 = sbr.rel (!%p21_p4) target bundleno = 1 (0x1), region = 106 }

// kernel: transformer_forward.2
= control target key start
LH: loop header
LB: loop body
LE: loop exit
PB: predicated region body
PF: predicated region fallthrough
CT: control target
= control target key end

     0   :  { %s5073_s0 = inlined_call_operand.vmem [shape: f32[2,16,128], index: 0, kind: input, shape index: {}, may-alias: {0,14}]   ;;  %s5074_s1 = inlined_call_operand.vmem [shape: f32[16,16], index: 1, kind: input, shape index: {}]   ;;  %s5075_s2 = inlined_call_operand.vmem [shape: f32[1,128], index: 2, kind: input, shape index: {}]   ;;  %s5076_s3 = inlined_call_operand.vmem [shape: f32[1,128], index: 3, kind: input, shape index: {}]   ;;  %s5077_s4 = inlined_call_operand.hbm [shape: bf16[128,384], index: 4, kind: input, shape index: {}]   ;;  %s5078_s5 = inlined_call_operand.vmem [shape: f32[1,384], index: 5, kind: input, shape index: {}]   ;;  %s5079_s6 = inlined_call_operand.vmem [shape: bf16[128,128], index: 6, kind: input, shape index: {}]   ;;  %s5080_s7 = inlined_call_operand.vmem [shape: f32[1,128], index: 7, kind: input, shape index: {}]   ;;  %s5081_s8 = inlined_call_operand.vmem [shape: f32[1,128], index: 8, kind: input, shape index: {}]   ;;  %s5082_s9 = inlined_call_operand.vmem [shape: f32[1,128], index: 9, kind: input, shape index: {}]   ;;  %s5083_s10 = inlined_call_operand.hbm [shape: bf16[128,512], index: 10, kind: input, shape index: {}]   ;;  %s5084_s11 = inlined_call_operand.vmem [shape: f32[1,512], index: 11, kind: input, shape index: {}]   ;;  %s5085_s12 = inlined_call_operand.hbm [shape: bf16[512,128], index: 12, kind: input, shape index: {}]   ;;  %s5086_s13 = inlined_call_operand.vmem [shape: f32[1,128], index: 13, kind: input, shape index: {}]   ;;  %s5087_s14 = inlined_call_operand.vmem [shape: f32[2,16,128], index: 14, kind: output, shape index: {}, may-alias: {0,14}]  }
   0x1   :  { %5091 = sst [smem:[#allocation10_spill]] %s5086_s13 }
   0x2   :  { %5092 = sst [smem:[#allocation11_spill]] %s5087_s14 }
   0x3   :  { %19 = vsyncpa [#allocation3], 0 }
   0x4   :  { %20 = vsyncpa [#allocation5], 0  ;;  %s4478_s29 = smov 0  }
   0x5 LB: > { %5093 = sst [smem:[#allocation9_spill]] %s4384_s29  ;;  %s4386_s30 = smov [#allocation4]   ;;  %s4384_s29 = sphi %s4478_s29, %s26_s29  }
   0x6   : > { %s405_s15 = sshll.u32 %s4386_s30, 4  ;;  %s4484_s16 = sadd.s32 4294967295, %s4384_s29   ;;  %s4489_s15 = int_to_ptr.vmem [resolvable:$true] %s405_s15 }
   0x7   : > { %p3695_p0 = scmp.ge.s32.totalorder %s4384_s29, 1  ;;  %p356_p1 = scmp.lt.s32.totalorder %s4384_s29, 3 }
   0x8   : > { %p5089_p2 = scmp.eq.s32.totalorder %s4484_s16, 0  ;;  %s4387_s18 = smov [#allocation2]  }
   0x9   : > { %p4491_p3 = pnand %p3695_p0, %p356_p1  ;;  %s377_s19 = sshll.u32 %s4387_s18, 4  ;;  %s4497_s19 = int_to_ptr.vmem [resolvable:$true] %s377_s19 }
   0xa   : > { %s4388_s21 = smov [#allocation6]   ;;  %s4286_s25 = scalar_lea.hbm %s5083_s10, 4096 }
   0xb   : > { %s5094_s17 = scalar_select %p4491_p3, 1, 0 }
   0xc   : > { %p4036_p4 = pneg %p4491_p3  ;;  %s4505_s22 = sshll.u32 %s4388_s21, 4  ;;  %s422_s22 = int_to_ptr.vmem [resolvable:$true] %s4505_s22 }
   0xd   : > { %p4287_p6 = scmp.ne.s32.totalorder %s5083_s10, %s4286_s25  ;;  %p4293_p10 = scmp.lt.u32.totalorder %s4286_s25, %s5083_s10 }
   0xe   : > { %p4501_p5 = pnand %p5089_p2, %p4036_p4 }
  0x10   : > { %p4515_p7 = pneg %p4501_p5 }
  0x12   : > { %p4289_p8 = pnand %p4515_p7, %p4287_p6 }
  0x14   : > { %p4290_p9 = pneg %p4289_p8 }
  0x16   : > { %p4295_p11 = pnand %p4293_p10, %p4290_p9 }
  0x18   : > { %4298 = shalt.err (!%p4295_p11)
}
  0x19   : > { %s4299_s21 = scalar_lea.vmem %s4489_s15, 4096  ;;  %p4307_p1 = scmp.lt.s32.totalorder %s4489_s15, %s4489_s15 }
  0x1a   : > { %p4300_p12 = scmp.ne.s32.totalorder %s4489_s15, %s4299_s21  ;;  %p4308_p4 = scmp.lt.s32.totalorder %s4299_s21, %s4299_s21 }
  0x1c   : > { %p4302_p13 = pnand %p4300_p12, %p4515_p7  ;;  %p4309_p6 = por %p4308_p4, %p4307_p1 }
  0x1e   : > { %p4303_p0 = pneg %p4302_p13 }
  0x20   : > { %p4310_p8 = pnand %p4309_p6, %p4303_p0 }
  0x22   : > { %4313 = shalt.err (!%p4310_p8)
}
  0x23   : > { %s4389_s23 = smov 256   ;;  %s4390_s24 = smov 16  }
  0x24   : > { %4042 = dma.hbm_to_vmem [thread:$0]  (!%p4501_p5), %s5083_s10, 4096, %s4489_s15, [#allocation5], %s4389_s23, %s4389_s23, %s4390_s24  }
  0x25   : > { %s4314_s18 = scalar_lea.hbm %s5077_s4, 3072 }
  0x26   : > { %p4315_p9 = scmp.ne.s32.totalorder %s5077_s4, %s4314_s18  ;;  %p4321_p12 = scmp.lt.u32.totalorder %s4314_s18, %s5077_s4 }
  0x28   : > { %p4317_p10 = pnand %p4315_p9, %p4515_p7 }
  0x2a   : > { %p4318_p11 = pneg %p4317_p10 }
  0x2c   : > { %p4323_p13 = pnand %p4321_p12, %p4318_p11 }
  0x2e   : > { %4326 = shalt.err (!%p4323_p13)
}
  0x2f   : > { %s4327_s15 = scalar_lea.vmem %s4497_s19, 3072  ;;  %p4335_p6 = scmp.lt.s32.totalorder %s4497_s19, %s4497_s19 }
  0x30   : > { %p4328_p0 = scmp.ne.s32.totalorder %s4497_s19, %s4327_s15  ;;  %p4336_p8 = scmp.lt.s32.totalorder %s4327_s15, %s4327_s15 }
  0x32   : > { %p4330_p1 = pnand %p4328_p0, %p4515_p7  ;;  %p4337_p9 = por %p4336_p8, %p4335_p6 }
  0x34   : > { %p4331_p4 = pneg %p4330_p1 }
  0x36   : > { %p4338_p10 = pnand %p4337_p9, %p4331_p4 }
  0x38   : > { %4341 = shalt.err (!%p4338_p10)
}
  0x39   : > { %s4391_s14 = smov 192   ;;  %s4392_s13 = smov 12  }
  0x3a   : > { %4039 = dma.hbm_to_vmem [thread:$0]  (!%p4501_p5), %s5077_s4, 3072, %s4497_s19, [#allocation3], %s4391_s14, %s4391_s14, %s4392_s13  }
  0x3b   : > { %s4342_s26 = scalar_lea.hbm %s5085_s12, 4096 }
  0x3c   : > { %p4343_p11 = scmp.ne.s32.totalorder %s5085_s12, %s4342_s26  ;;  %p4349_p0 = scmp.lt.u32.totalorder %s4342_s26, %s5085_s12 }
  0x3e   : > { %p4345_p12 = pnand %p4343_p11, %p4515_p7 }
  0x40   : > { %p4346_p13 = pneg %p4345_p12 }
  0x42   : > { %p4351_p1 = pnand %p4349_p0, %p4346_p13 }
  0x44   : > { %4354 = shalt.err (!%p4351_p1)
}
  0x45   : > { %s4355_s15 = scalar_lea.vmem %s422_s22, 4096  ;;  %p4363_p9 = scmp.lt.s32.totalorder %s422_s22, %s422_s22 }
  0x46   : > { %p4356_p4 = scmp.ne.s32.totalorder %s422_s22, %s4355_s15  ;;  %p4364_p10 = scmp.lt.s32.totalorder %s4355_s15, %s4355_s15 }
  0x48   : > { %p4358_p6 = pnand %p4356_p4, %p4515_p7  ;;  %p4365_p2 = por %p4364_p10, %p4363_p9 }
  0x4a   : > { %p4359_p8 = pneg %p4358_p6 }
  0x4c   : > { %p4366_p3 = pnand %p4365_p2, %p4359_p8 }
  0x4e   : > { %4369 = shalt.err (!%p4366_p3)
}
  0x4f   : > { %s4393_s19 = smov 64   ;;  %s4394_s14 = smov 4  }
  0x50   : > { %4045 = dma.hbm_to_vmem [thread:$0]  (!%p4501_p5), %s5085_s12, 4096, %s422_s22, [#allocation5], %s4393_s19, %s4393_s19, %s4394_s14  }
  0x51   : > { %p5097_p11 = scmp.ne.s32.totalorder %s5094_s17, 0 }
  0x52   : > { %p5098_p12 = scmp.eq.s32.totalorder (!%p5097_p11), %s4484_s16, 0 }
  0x53   : > { %448 = sbr.rel (%p5097_p11) target bundleno = 2865 (0xb31), region = 76 }
  0x5a   : > { %4375 = dma.done.wait (%p5098_p12), [#allocation3], 3072   ;;  %p5099_p7 = pmov %p5098_p12 }
  0x5c   : > { %4377 = vsyncadd (%p5099_p7), [#allocation3], 4294964224  ;;  %p5100_p2 = pmov %p5099_p7 }
  0x5e   : > { %4379 = dma.done.wait (%p5100_p2), [#allocation5], 8192   ;;  %p5101_p3 = pmov %p5100_p2 }
  0x5f   : > { %p502_p13 = scmp.lt.s32.totalorder %s4484_s16, 1  ;;  %v4092_v2 = vld [vmem:[#allocation2 + $0x4] ss:$12 sps:$4 sm:$0xff]   ;;  %v4094_v3 = vld [vmem:[#allocation2] ss:$12 sps:$4 sm:$0xff]   ;;  %v4395_v4 = vmov 0.0   ;;  %v593_v53 = vlaneseq }
  0x60   : > { %4381 = vsyncadd (%p5101_p3), [#allocation5], 4294959104  ;;  %3932 = vmatprep.subr.bf16.mxu1 %v4395_v4  ;;  %v4095_v5 = vld [vmem:[#allocation2 + $0x8] ss:$12 sps:$4 sm:$0xff]   ;;  %736 = vmatprep.subr.bf16.mxu0 %v4092_v2  ;;  %v4098_v15 = vld [vmem:[#allocation2 + $0x18] ss:$12 sps:$4 sm:$0xff]  }
  0x61   : > { %s5106_s16 = smov (!%p502_p13, %s4484_s16), 1  ;;  %v4096_v6 = vld [vmem:[#allocation2 + $0x1c] ss:$12 sps:$4 sm:$0xff]   ;;  %737 = vmatpush1.bf16.msra.mxu0 %v4094_v3  ;;  %3933 = vmatpush3.bf16.msra.mxu1 %v4095_v5  ;;  %v4099_v16 = vld [vmem:[#allocation2 + $0x20] ss:$12 sps:$4 sm:$0xff]   ;;  %v4396_v30 = vmov 0  }
  0x62   : > { %s3848_s17 = sshll.u32 %s5106_s16, 4  ;;  %738 = vmatprep.subr.bf16.mxu0 %v4096_v6  ;;  %3934 = vmatprep.subr.bf16.mxu1 %v4395_v4  ;;  %v4100_v17 = vld [vmem:[#allocation2 + $0x34] ss:$12 sps:$4 sm:$0xff]   ;;  %v4102_v18 = vld [vmem:[#allocation2 + $0x30] ss:$12 sps:$4 sm:$0xff]   ;;  %vm4397_vm0 = vmmov 0  }
  0x63   : > { %s4598_s28 = scalar_lea.vmem %s5073_s0, %s3848_s17  ;;  %v4103_v19 = vld [vmem:[#allocation2 + $0x38] ss:$12 sps:$4 sm:$0xff]   ;;  %v4106_v21 = vld [vmem:[#allocation2 + $0x48] ss:$12 sps:$4 sm:$0xff]   ;;  %v4107_v22 = vld [vmem:[#allocation2 + $0x50] ss:$12 sps:$4 sm:$0xff]   ;;  %768 = vmatprep.mubr.bf16.mxu0 %v4396_v30  ;;  %3948 = vmatprep.mubr.msk.bf16.mxu1 %vm4397_vm0, %v4395_v4 }
  0x64   : > { %v513_v0 = vld [vmem:[%s4598_s28] sm:$0xff]  ;;  %v514_v1 = vld [vmem:[%s4598_s28 + $0x8] sm:$0xff]  ;;  %v4118_v31 = vld [vmem:[#allocation2 + $0x90] ss:$12 sps:$4 sm:$0xff]   ;;  %v4632_v54 = vshrl.u32 %v593_v53, 7  ;;  %s4398_s18 = smov 96  }
  0x65   : > { %519 = vadd.xlane.f32.xlu0 %v513_v0  ;;  %739 = vmatpush1.bf16.msra.mxu0 %v4098_v15  ;;  %v4104_v20 = vld [vmem:[#allocation2 + $0x4c] ss:$12 sps:$4 sm:$0xff]   ;;  %v4108_v23 = vld [vmem:[#allocation2 + $0x64] ss:$12 sps:$4 sm:$0xff]   ;;  %v4111_v25 = vld [vmem:[#allocation2 + $0x68] ss:$12 sps:$4 sm:$0xff]  }
  0x66   : > { %3935 = vmatpush3.bf16.msra.mxu1 %v4099_v16  ;;  %740 = vmatprep.subr.bf16.mxu0 %v4100_v17  ;;  %v4110_v24 = vld [vmem:[#allocation2 + $0x60] ss:$12 sps:$4 sm:$0xff]   ;;  %v4112_v26 = vld [vmem:[#allocation2 + $0x7c] ss:$12 sps:$4 sm:$0xff]   ;;  %v4114_v27 = vld [vmem:[#allocation2 + $0x78] ss:$12 sps:$4 sm:$0xff]  }
  0x67   : > { %3936 = vmatprep.subr.bf16.mxu1 %v4395_v4  ;;  %v4115_v28 = vld [vmem:[#allocation2 + $0x80] ss:$12 sps:$4 sm:$0xff]   ;;  %v4119_v32 = vld [vmem:[#allocation2 + $0x98] ss:$12 sps:$4 sm:$0xff]   ;;  %v4122_v34 = vld [vmem:[#allocation2 + $0xa8] ss:$12 sps:$4 sm:$0xff]  }
  0x68   : > { %v4116_v29 = vld [vmem:[#allocation2 + $0x94] ss:$12 sps:$4 sm:$0xff]   ;;  %v4120_v33 = vld [vmem:[#allocation2 + $0xac] ss:$12 sps:$4 sm:$0xff]   ;;  %v4123_v35 = vld [vmem:[#allocation2 + $0xb0] ss:$12 sps:$4 sm:$0xff]  }
  0x69   : > { %521 = vadd.xlane.f32.xlu0 %v514_v1  ;;  %741 = vmatpush1.bf16.msra.mxu0 %v4102_v18  ;;  %v3708_v44 = vld [vmem:[%s5075_s2] ss:$0 sm:$0xff]  ;;  %v595_v55 = vsub.s32 0, %v4632_v54  ;;  %v599_v57 = vsub.s32 1, %v4632_v54  ;;  %s4399_s21 = smov 64   ;;  %s4400_s15 = smov 32  }
  0x6a   : > { %3937 = vmatpush3.bf16.msra.mxu1 %v4103_v19  ;;  %742 = vmatprep.subr.bf16.mxu0 %v4104_v20  ;;  %v3709_v48 = vld [vmem:[%s5076_s3] ss:$0 sm:$0xff]  ;;  %vm1708_vm1 = vcmask 261120   ;;  %vm1913_vm2 = vcmask 130048   ;;  %vm2728_vm3 = vcmask 523264   ;;  %vm2731_vm4 = vcmask 785408  }
  0x6b   : > { %3938 = vmatprep.subr.bf16.mxu1 %v4395_v4  ;;  %v4638_v56 = vld [vmem:[%s5078_s5] sm:$0x7]  ;;  %s5102_s13 = sld [smem:[#allocation10_spill]]  ;;  %s5103_s22 = sld [smem:[#allocation11_spill]] }
  0x6c   : > { %v596_v58 = vrot.slane %v4638_v56, %v595_v55  ;;  %v600_v59 = vrot.slane %v4638_v56, %v599_v57 }
  0x6d   : > { %743 = vmatpush1.bf16.msra.mxu0 %v4106_v21 }
  0x6e   : > { %3939 = vmatpush3.bf16.msra.mxu1 %v4107_v22  ;;  %744 = vmatprep.subr.bf16.mxu0 %v4108_v23 }
  0x6f   : > { %3940 = vmatprep.subr.bf16.mxu1 %v4395_v4 }
  0x71   : > { %745 = vmatpush1.bf16.msra.mxu0 %v4110_v24  ;;  %s511_s23 = scalar_lea.vmem %s5103_s22, %s3848_s17 }
  0x72   : > { %3941 = vmatpush3.bf16.msra.mxu1 %v4111_v25  ;;  %746 = vmatprep.subr.bf16.mxu0 %v4112_v26 }
  0x73   : > { %3942 = vmatprep.subr.bf16.mxu1 %v4395_v4 }
  0x75   : > { %747 = vmatpush1.bf16.msra.mxu0 %v4114_v27 }
  0x76   : > { %3943 = vmatpush3.bf16.msra.mxu1 %v4115_v28  ;;  %748 = vmatprep.subr.bf16.mxu0 %v4116_v29 }
  0x77   : > { %3944 = vmatprep.subr.bf16.mxu1 %v4395_v4 }
  0x79   : > { %749 = vmatpush1.bf16.msra.mxu0 %v4118_v31 }
  0x7a   : > { %3945 = vmatpush3.bf16.msra.mxu1 %v4119_v32  ;;  %750 = vmatprep.subr.bf16.mxu0 %v4120_v33 }
  0x7b   : > { %3946 = vmatprep.subr.bf16.mxu1 %v4395_v4 }
  0x7d   : > { %751 = vmatpush1.bf16.msra.mxu0 %v4122_v34 }
  0x7e   : > { %3947 = vmatpush3.bf16.msra.mxu1 %v4123_v35 }
  0x7f   : > { %3952 = vmatprep.subr.bf16.mxu1 %v4395_v4 }
  0xf2   : > { %v520_v7 = vpop.xlane.xlu0 %519 }
  0xf3   : > { %v524_v8 = vmul.f32 0.0078125, %v520_v7 }
  0xf5   : > { %v4604_v9 = vsub.f32 %v513_v0, %v524_v8 }
  0xf6   : > { %v522_v10 = vpop.xlane.xlu0 %521 }
  0xf7   : > { %v525_v11 = vmul.f32 0.0078125, %v522_v10  ;;  %v528_v12 = vmul.f32 %v4604_v9, %v4604_v9 }
  0xf9   : > { %v4608_v13 = vsub.f32 %v514_v1, %v525_v11  ;;  %530 = vadd.xlane.f32.xlu1 %v528_v12 }
  0xfb   : > { %v529_v14 = vmul.f32 %v4608_v13, %v4608_v13 }
  0xfd   : > { %532 = vadd.xlane.f32.xlu1 %v529_v14 }
 0x186   : > { %v531_v36 = vpop.xlane.xlu1 %530 }
 0x187   : > { %v534_v37 = vmul.f32 0.0078125, %v531_v36 }
 0x189   : > { %v536_v38 = vadd.f32 1e-05, %v534_v37 }
 0x18a   : > { %v533_v39 = vpop.xlane.xlu1 %532 }
 0x18b   : > { %4212 = vrsqrt.f32 %v536_v38  ;;  %v535_v40 = vmul.f32 0.0078125, %v533_v39 }
 0x18d   : > { %v537_v41 = vadd.f32 1e-05, %v535_v40 }
 0x18f   : > { %4214 = vrsqrt.f32 %v537_v41 }
 0x195   : > { %v4213_v42 = vpop.eup %4212 }
 0x196   : > { %v540_v43 = vmul.f32 %v4213_v42, %v4604_v9  ;;  %v4401_v9 = vmov 1983009808  }
 0x197   : > { %v843_v10 = vunpack.c.l.s4 %v4401_v9 }
 0x198   : > { %v548_v47 = vmul.f32 %v3708_v44, %v540_v43 }
 0x199   : > { %v4215_v45 = vpop.eup %4214  ;;  %v844_v15 = vunpack.c.0.s8 %v843_v10 }
 0x19a   : > { %v541_v46 = vmul.f32 %v4215_v45, %v4608_v13  ;;  %v556_v50 = vadd.f32 %v3709_v48, %v548_v47  ;;  %v4402_v13 = vmov 1934713408  }
 0x19b   : > { %v875_v14 = vunpack.c.l.s4 %v4402_v13  ;;  %v4676_v19 = vsub.s32 %v844_v15, %v4632_v54 }
 0x19c   : > { %v549_v49 = vmul.f32 %v3708_v44, %v541_v46 }
 0x19d   : > { %v876_v18 = vunpack.c.0.s8 %v875_v14 }
 0x19e   : > { %v557_v51 = vadd.f32 %v3709_v48, %v549_v49 }
 0x19f   : > { %v4679_v26 = vsub.s32 %v876_v18, %v4632_v54 }
 0x1a0   : > { %v558_v52 = vpack.c.bf16 %v557_v51, %v556_v50 }
 0x1a2   : > { %769 = vmatmul.mubr.bf16.vlgmr.msra.gmra.mrb[0].mxu0 %v558_v52  ;;  %3949 = vmatmul.mubr.bf16.vlgmr.msra.gmra.mrb[0].mxu1 %v558_v52 }
 0x1a3   : > { %3954 = vmatprep.mubr.msk.bf16.mxu1 %vm4397_vm0, %v4395_v4 }
 0x275   : > { %v770_v60 = vpop.f32.mrb[0].mxu0  ;;  %v4647_v61 = vpop.f32.mrb[0].mxu1 }
 0x276   : > { %v4649_v62 = vadd.f32 %v770_v60, %v596_v58  ;;  %v772_v63 = vpop.f32.mrb[1].mxu0  ;;  %v3950_v0 = vpop.f32.mrb[1].mxu1 }
 0x277   : > { %v773_v1 = vadd.f32 %v772_v63, %v600_v59  ;;  %v774_v2 = vpop.f32.mrb[2].mxu0  ;;  %v4651_v3 = vpop.f32.mrb[2].mxu1 }
 0x278   : > { %v776_v5 = vpop.f32.mrb[3].mxu0  ;;  %v3951_v6 = vpop.f32.mrb[3].mxu1  ;;  %822 = vrot.lane.b32.xlu0 %v4649_v62, %s4398_s18  ;;  %v4656_v7 = vadd.f32 %v774_v2, %v596_v58 }
 0x279   : > { %1124 = vrot.lane.b32.xlu1 %v773_v1, %s4399_s21  ;;  %v777_v8 = vadd.f32 %v776_v5, %v600_v59 }
 0x27c   : > { %1118 = vrot.lane.b32.xlu0 %v773_v1, %s4398_s18 }
 0x27d   : > { %824 = vrot.lane.b32.xlu1 %v4656_v7, %s4398_s18 }
 0x280   : > { %1130 = vrot.lane.b32.xlu0 %v773_v1, %s4400_s15 }
 0x281   : > { %1120 = vrot.lane.b32.xlu1 %v777_v8, %s4398_s18 }
 0x284   : > { %828 = vrot.lane.b32.xlu0 %v4649_v62, %s4399_s21 }
 0x285   : > { %1126 = vrot.lane.b32.xlu1 %v777_v8, %s4399_s21 }
 0x288   : > { %834 = vrot.lane.b32.xlu0 %v4649_v62, %s4400_s15 }
 0x289   : > { %1132 = vrot.lane.b32.xlu1 %v777_v8, %s4400_s15 }
 0x28d   : > { %830 = vrot.lane.b32.xlu1 %v4656_v7, %s4399_s21 }
 0x291   : > { %836 = vrot.lane.b32.xlu1 %v4656_v7, %s4400_s15 }
 0x2ea   : > { %v823_v11 = vpop.permute.xlu0 %822 }
 0x2eb   : > { %v1125_v12 = vpop.permute.xlu1 %1124 }
 0x2ec   : > { %v1136_v20 = vcombine.low %v773_v1, %v1125_v12  ;;  %v1137_v21 = vcombine.high %v773_v1, %v1125_v12 }
 0x2ee   : > { %v1119_v16 = vpop.permute.xlu0 %1118  ;;  %v1144_v27 = vrot.slane %v1136_v20, %v4676_v19  ;;  %v1151_v28 = vrot.slane %v1137_v21, %v4676_v19 }
 0x2ef   : > { %v4673_v17 = vpop.permute.xlu1 %824 }
 0x2f2   : > { %v1131_v22 = vpop.permute.xlu0 %1130 }
 0x2f3   : > { %v1152_v23 = vcombine.low %v1119_v16, %v1131_v22  ;;  %v1153_v24 = vcombine.high %v1119_v16, %v1131_v22  ;;  %v1121_v25 = vpop.permute.xlu1 %1120 }
 0x2f5   : > { %v1160_v29 = vrot.slane %v1152_v23, %v4676_v19  ;;  %v1167_v31 = vrot.slane %v1153_v24, %v4676_v19 }
 0x2f6   : > { %v829_v32 = vpop.permute.xlu0 %828 }
 0x2f7   : > { %v1168_v33 = vcombine.low %v1144_v27, %v1160_v29  ;;  %v1169_v34 = vcombine.high %v1144_v27, %v1160_v29  ;;  %v1184_v35 = vcombine.low %v1151_v28, %v1167_v31  ;;  %v1185_v36 = vcombine.high %v1151_v28, %v1167_v31  ;;  %v1127_v37 = vpop.permute.xlu1 %1126 }
 0x2f8   : > { %v840_v38 = vcombine.low %v4649_v62, %v829_v32  ;;  %v841_v39 = vcombine.high %v4649_v62, %v829_v32  ;;  %v1204_v40 = vcombine.low %v777_v8, %v1127_v37  ;;  %v1205_v41 = vcombine.high %v777_v8, %v1127_v37 }
 0x2f9   : > { %v1176_v42 = vrot.slane %v1168_v33, %v4679_v26  ;;  %v1183_v43 = vrot.slane %v1169_v34, %v4679_v26  ;;  %v1192_v44 = vrot.slane %v1184_v35, %v4679_v26  ;;  %v1199_v45 = vrot.slane %v1185_v36, %v4679_v26 }
 0x2fa   : > { %v835_v46 = vpop.permute.xlu0 %834  ;;  %v848_v60 = vrot.slane %v840_v38, %v4676_v19  ;;  %v855_v62 = vrot.slane %v841_v39, %v4676_v19  ;;  %v1212_v63 = vrot.slane %v1204_v40, %v4676_v19  ;;  %v1219_v0 = vrot.slane %v1205_v41, %v4676_v19 }
 0x2fb   : > { %v1272_v47 = vcombine.low %v1176_v42, %v1183_v43  ;;  %v3738_v48 = vcombine.high %v1176_v42, %v1183_v43  ;;  %v1288_v49 = vcombine.low %v1192_v44, %v1199_v45  ;;  %v3739_v50 = vcombine.high %v1192_v44, %v1199_v45  ;;  %v1133_v51 = vpop.permute.xlu1 %1132 }
 0x2fc   : > { %v856_v52 = vcombine.low %v823_v11, %v835_v46  ;;  %v857_v53 = vcombine.high %v823_v11, %v835_v46  ;;  %v1220_v58 = vcombine.low %v1121_v25, %v1133_v51  ;;  %v1221_v59 = vcombine.high %v1121_v25, %v1133_v51 }
 0x2fd   : > { %v4700_v8 = vrot.slane %v1272_v47, %v4676_v19  ;;  %v4703_v9 = vrot.slane %v3738_v48, %v4676_v19  ;;  %v4706_v10 = vrot.slane %v1288_v49, %v4676_v19  ;;  %v4709_v11 = vrot.slane %v3739_v50, %v4676_v19 }
 0x2fe   : > { %v864_v1 = vrot.slane %v856_v52, %v4676_v19  ;;  %v871_v2 = vrot.slane %v857_v53, %v4676_v19  ;;  %v1228_v5 = vrot.slane %v1220_v58, %v4676_v19  ;;  %v1235_v6 = vrot.slane %v1221_v59, %v4676_v19 }
 0x2ff   : > { %v831_v16 = vpop.permute.xlu1 %830  ;;  %v1304_v42 = vcombine.low %v4700_v8, %v4703_v9  ;;  %v1320_v43 = vcombine.low %v4706_v10, %v4709_v11 }
 0x300   : > { %v872_v12 = vcombine.low %v848_v60, %v864_v1  ;;  %v873_v13 = vcombine.high %v848_v60, %v864_v1  ;;  %v888_v14 = vcombine.low %v855_v62, %v871_v2  ;;  %v889_v15 = vcombine.high %v855_v62, %v871_v2 }
 0x301   : > { %v1236_v18 = vcombine.low %v1212_v63, %v1228_v5  ;;  %v1237_v20 = vcombine.high %v1212_v63, %v1228_v5  ;;  %v1252_v21 = vcombine.low %v1219_v0, %v1235_v6  ;;  %v1253_v22 = vcombine.high %v1219_v0, %v1235_v6 }
 0x302   : > { %v880_v23 = vrot.slane %v872_v12, %v4679_v26  ;;  %v887_v24 = vrot.slane %v873_v13, %v4679_v26  ;;  %v896_v25 = vrot.slane %v888_v14, %v4679_v26  ;;  %v903_v27 = vrot.slane %v889_v15, %v4679_v26 }
 0x303   : > { %v1244_v28 = vrot.slane %v1236_v18, %v4679_v26  ;;  %v1251_v29 = vrot.slane %v1237_v20, %v4679_v26  ;;  %v1260_v31 = vrot.slane %v1252_v21, %v4679_v26  ;;  %v1267_v32 = vrot.slane %v1253_v22, %v4679_v26  ;;  %v837_v41 = vpop.permute.xlu1 %836 }
 0x304   : > { %v976_v37 = vcombine.low %v880_v23, %v887_v24  ;;  %v3734_v38 = vcombine.high %v880_v23, %v887_v24  ;;  %v992_v39 = vcombine.low %v896_v25, %v903_v27  ;;  %v3735_v40 = vcombine.high %v896_v25, %v903_v27 }
 0x305   : > { %v1340_v33 = vcombine.low %v1244_v28, %v1251_v29  ;;  %v3740_v34 = vcombine.high %v1244_v28, %v1251_v29  ;;  %v1356_v35 = vcombine.low %v1260_v31, %v1267_v32  ;;  %v3741_v36 = vcombine.high %v1260_v31, %v1267_v32 }
 0x306   : > { %v908_v48 = vcombine.low %v4656_v7, %v831_v16  ;;  %v909_v49 = vcombine.high %v4656_v7, %v831_v16  ;;  %v924_v50 = vcombine.low %v4673_v17, %v837_v41  ;;  %v925_v51 = vcombine.high %v4673_v17, %v837_v41 }
 0x307   : > { %v4724_v44 = vrot.slane %v1340_v33, %v4676_v19  ;;  %v1355_v45 = vrot.slane %v3740_v34, %v4676_v19  ;;  %v1363_v46 = vrot.slane %v1356_v35, %v4676_v19  ;;  %v1371_v47 = vrot.slane %v3741_v36, %v4676_v19 }
 0x308   : > { %v4734_v52 = vrot.slane %v976_v37, %v4676_v19  ;;  %v4737_v53 = vrot.slane %v3734_v38, %v4676_v19  ;;  %v4740_v58 = vrot.slane %v992_v39, %v4676_v19  ;;  %v4743_v59 = vrot.slane %v3735_v40, %v4676_v19 }
 0x309   : > { %v916_v60 = vrot.slane %v908_v48, %v4676_v19  ;;  %v923_v7 = vrot.slane %v909_v49, %v4676_v19  ;;  %v932_v62 = vrot.slane %v924_v50, %v4676_v19  ;;  %v939_v17 = vrot.slane %v925_v51, %v4676_v19 }
 0x30a   : > { %v1312_v63 = vrot.slane %v1304_v42, %v4679_v26  ;;  %v1328_v0 = vrot.slane %v1320_v43, %v4679_v26  ;;  %v1372_v1 = vcombine.low %v4724_v44, %v1355_v45  ;;  %v1388_v2 = vcombine.low %v1363_v46, %v1371_v47 }
 0x30b   : > { %v940_v5 = vcombine.low %v916_v60, %v932_v62  ;;  %v941_v6 = vcombine.high %v916_v60, %v932_v62  ;;  %v956_v12 = vcombine.low %v923_v7, %v939_v17  ;;  %v957_v13 = vcombine.high %v923_v7, %v939_v17 }
 0x30c   : > { %v1380_v14 = vrot.slane %v1372_v1, %v4679_v26  ;;  %v1396_v15 = vrot.slane %v1388_v2, %v4679_v26  ;;  %v1008_v22 = vcombine.low %v4734_v52, %v4737_v53  ;;  %v1024_v23 = vcombine.low %v4740_v58, %v4743_v59 }
 0x30d   : > { %v948_v16 = vrot.slane %v940_v5, %v4679_v26  ;;  %v955_v18 = vrot.slane %v941_v6, %v4679_v26  ;;  %v964_v20 = vrot.slane %v956_v12, %v4679_v26  ;;  %v971_v21 = vrot.slane %v957_v13, %v4679_v26 }
 0x30e   : > { %v1336_v24 = vcombine.low %v1312_v63, %v1328_v0  ;;  %v1404_v25 = vcombine.low %v1380_v14, %v1396_v15  ;;  %v1016_v37 = vrot.slane %v1008_v22, %v4679_v26  ;;  %v1032_v38 = vrot.slane %v1024_v23, %v4679_v26 }
 0x30f   : > { %v1044_v27 = vcombine.low %v948_v16, %v955_v18  ;;  %v3736_v28 = vcombine.high %v948_v16, %v955_v18  ;;  %v1060_v29 = vcombine.low %v964_v20, %v971_v21  ;;  %v3737_v31 = vcombine.high %v964_v20, %v971_v21 }
 0x310   : > { %v1408_v32 = vpack.c.bf16 %v1404_v25, %v1336_v24  ;;  %v1405_v42 = vcombine.high %v1380_v14, %v1396_v15  ;;  %v1373_v43 = vcombine.high %v4724_v44, %v1355_v45  ;;  %v1305_v48 = vcombine.high %v4700_v8, %v4703_v9 }
 0x311   : > { %v1051_v33 = vrot.slane %v1044_v27, %v4676_v19  ;;  %v1059_v34 = vrot.slane %v3736_v28, %v4676_v19  ;;  %v1067_v35 = vrot.slane %v1060_v29, %v4676_v19  ;;  %v1075_v36 = vrot.slane %v3737_v31, %v4676_v19  ;;  %v515_v31 = vld [vmem:[%s5074_s1] sm:$0xff] }
 0x312   : > { %v1713_v39 = vsel %vm1708_vm1, %v1408_v32, 0  ;;  %v1389_v49 = vcombine.high %v1363_v46, %v1371_v47  ;;  %v1337_v60 = vcombine.high %v1312_v63, %v1328_v0  ;;  %v1321_v7 = vcombine.high %v4706_v10, %v4709_v11 }
 0x313   : > { %v1076_v40 = vcombine.low %v1051_v33, %v1059_v34  ;;  %v1092_v41 = vcombine.low %v1067_v35, %v1075_v36  ;;  %3953 = vmatpush3.bf16.xpose.msra.mxu1 %v1713_v39  ;;  %v1040_v62 = vcombine.low %v1016_v37, %v1032_v38  ;;  %v1387_v2 = vrot.slane %v1373_v43, %v4679_v26 }
 0x314   : > { %3958 = vmatprep.subr.bf16.mxu1 %v4395_v4  ;;  %v1409_v1 = vpack.c.bf16 %v1405_v42, %v1337_v60  ;;  %v1403_v44 = vrot.slane %v1389_v49, %v4679_v26  ;;  %v1319_v5 = vrot.slane %v1305_v48, %v4679_v26  ;;  %v1335_v8 = vrot.slane %v1321_v7, %v4679_v26 }
 0x315   : > { %v1084_v50 = vrot.slane %v1076_v40, %v4679_v26  ;;  %v1100_v51 = vrot.slane %v1092_v41, %v4679_v26  ;;  %v1077_v10 = vcombine.high %v1051_v33, %v1059_v34  ;;  %v1093_v11 = vcombine.high %v1067_v35, %v1075_v36  ;;  %v516_v35 = vld [vmem:[%s5074_s1 + $0x8] sm:$0xff] }
 0x316   : > { %v1760_v9 = vsel %vm1708_vm1, %v1409_v1, 0  ;;  %v1406_v46 = vcombine.low %v1387_v2, %v1403_v44  ;;  %v1338_v63 = vcombine.low %v1319_v5, %v1335_v8  ;;  %v1009_v0 = vcombine.high %v4734_v52, %v4737_v53 }
 0x317   : > { %v1108_v17 = vcombine.low %v1084_v50, %v1100_v51  ;;  %v1109_v47 = vcombine.high %v1084_v50, %v1100_v51  ;;  %v1025_v6 = vcombine.high %v4740_v58, %v4743_v59  ;;  %v1041_v12 = vcombine.high %v1016_v37, %v1032_v38 }
 0x318   : > { %v1410_v13 = vpack.c.bf16 %v1406_v46, %v1338_v63  ;;  %v1091_v14 = vrot.slane %v1077_v10, %v4679_v26  ;;  %v1107_v15 = vrot.slane %v1093_v11, %v4679_v26  ;;  %v1023_v18 = vrot.slane %v1009_v0, %v4679_v26 }
 0x319   : > { %v1112_v45 = vpack.c.bf16 %v1108_v17, %v1040_v62  ;;  %v1113_v16 = vpack.c.bf16 %v1109_v47, %v1041_v12  ;;  %v1039_v20 = vrot.slane %v1025_v6, %v4679_v26  ;;  %v1407_v22 = vcombine.high %v1387_v2, %v1403_v44 }
 0x31a   : > { %v1807_v21 = vsel %vm1708_vm1, %v1410_v13, 0  ;;  %v1110_v52 = vcombine.low %v1091_v14, %v1107_v15  ;;  %v1339_v53 = vcombine.high %v1319_v5, %v1335_v8  ;;  %v1111_v25 = vcombine.high %v1091_v14, %v1107_v15 }
 0x31b   : > { %3955 = vmatmul.mubr.msk.bf16.vlgmr.msra.gmra.mrb[4].mxu1 %vm1708_vm1, %v1112_v45  ;;  %v1042_v58 = vcombine.low %v1023_v18, %v1039_v20  ;;  %v1043_v27 = vcombine.high %v1023_v18, %v1039_v20  ;;  %v603_v20 = vsub.s32 2, %v4632_v54 }
 0x31c   : > { %3959 = vmatpush3.bf16.xpose.msra.mxu1 %v1760_v9  ;;  %3960 = vmatprep.mubr.msk.bf16.mxu1 %vm4397_vm0, %v4395_v4  ;;  %v1411_v59 = vpack.c.bf16 %v1407_v22, %v1339_v53 }
 0x31d   : > { %3964 = vmatprep.subr.bf16.mxu1 %v4395_v4  ;;  %v1114_v23 = vpack.c.bf16 %v1110_v52, %v1042_v58  ;;  %v1115_v28 = vpack.c.bf16 %v1111_v25, %v1043_v27 }
 0x31e   : > { %v1854_v24 = vsel %vm1708_vm1, %v1411_v59, 0 }
 0x323   : > { %3961 = vmatmul.mubr.msk.bf16.vlgmr.msra.gmra.mrb[8].mxu1 %vm1708_vm1, %v1113_v16 }
 0x324   : > { %3965 = vmatpush3.bf16.xpose.msra.mxu1 %v1807_v21  ;;  %3966 = vmatprep.mubr.msk.bf16.mxu1 %vm4397_vm0, %v4395_v4  ;;  %v604_v21 = vrot.slane %v4638_v56, %v603_v20 }
 0x325   : > { %3970 = vmatprep.subr.bf16.mxu1 %v4395_v4 }
 0x326   : > { %v4823_v22 = vadd.f32 %v4651_v3, %v604_v21  ;;  %v4828_v52 = vadd.f32 %v4647_v61, %v604_v21 }
 0x32b   : > { %3967 = vmatmul.mubr.msk.bf16.vlgmr.msra.gmra.mrb[12].mxu1 %vm1708_vm1, %v1114_v23 }
 0x32c   : > { %3971 = vmatpush3.bf16.xpose.msra.mxu1 %v1854_v24  ;;  %3972 = vmatprep.mubr.msk.bf16.mxu1 %vm4397_vm0, %v4395_v4 }
 0x333   : > { %3973 = vmatmul.mubr.msk.bf16.vlgmr.msra.gmra.mrb[16].mxu1 %vm1708_vm1, %v1115_v28 }
 0x3ee   : > { %v1749_v29 = vpop.f32.mrb[4].mxu1 }
 0x3ef   : > { %v1897_v32 = vmul.f32 0.17677669, %v1749_v29  ;;  %v3956_v33 = vpop.f32.mrb[5].mxu1 }
 0x3f0   : > { %v1752_v34 = vpop.f32.mrb[6].mxu1 }
 0x3f1   : > { %v1898_v36 = vmul.f32 0.17677669, %v1752_v34  ;;  %v3957_v37 = vpop.f32.mrb[7].mxu1  ;;  %v1905_v38 = vadd.f32 %v1897_v32, %v515_v31 }
 0x3f3   : > { %v1914_v39 = vsel %vm1913_vm2, %v1905_v38, -inf  ;;  %v1906_v40 = vadd.f32 %v1898_v36, %v516_v35 }
 0x3f4   : > { %1915 = vmax.xlane.f32.xlu0 %v1914_v39 }
 0x3f5   : > { %v1917_v41 = vsel %vm1913_vm2, %v1906_v40, -inf }
 0x3f6   : > { %1918 = vmax.xlane.f32.xlu1 %v1917_v41  ;;  %v1796_v42 = vpop.f32.mrb[8].mxu1 }
 0x3f7   : > { %v1899_v43 = vmul.f32 0.17677669, %v1796_v42  ;;  %v3962_v48 = vpop.f32.mrb[9].mxu1 }
 0x3f8   : > { %v1799_v49 = vpop.f32.mrb[10].mxu1 }
 0x3f9   : > { %v1900_v50 = vmul.f32 0.17677669, %v1799_v49  ;;  %v3963_v51 = vpop.f32.mrb[11].mxu1  ;;  %v1907_v60 = vadd.f32 %v1899_v43, %v515_v31 }
 0x3fb   : > { %v1920_v7 = vsel %vm1913_vm2, %v1907_v60, -inf  ;;  %v1908_v62 = vadd.f32 %v1900_v50, %v516_v35 }
 0x3fc   : > { %1921 = vmax.xlane.f32.xlu0 %v1920_v7 }
 0x3fd   : > { %v1923_v44 = vsel %vm1913_vm2, %v1908_v62, -inf }
 0x3fe   : > { %v1843_v17 = vpop.f32.mrb[12].mxu1 }
 0x3ff   : > { %v1901_v1 = vmul.f32 0.17677669, %v1843_v17  ;;  %v3968_v2 = vpop.f32.mrb[13].mxu1 }
 0x400   : > { %1924 = vmax.xlane.f32.xlu0 %v1923_v44  ;;  %v1846_v45 = vpop.f32.mrb[14].mxu1 }
 0x401   : > { %v1902_v5 = vmul.f32 0.17677669, %v1846_v45  ;;  %v3969_v8 = vpop.f32.mrb[15].mxu1  ;;  %v1909_v9 = vadd.f32 %v1901_v1, %v515_v31 }
 0x403   : > { %v1926_v46 = vsel %vm1913_vm2, %v1909_v9, -inf  ;;  %v1910_v10 = vadd.f32 %v1902_v5, %v516_v35 }
 0x404   : > { %1927 = vmax.xlane.f32.xlu0 %v1926_v46 }
 0x405   : > { %v1929_v11 = vsel %vm1913_vm2, %v1910_v10, -inf }
 0x406   : > { %1930 = vmax.xlane.f32.xlu1 %v1929_v11  ;;  %v1890_v47 = vpop.f32.mrb[16].mxu1 }
 0x407   : > { %v1903_v63 = vmul.f32 0.17677669, %v1890_v47  ;;  %v3974_v0 = vpop.f32.mrb[17].mxu1 }
 0x408   : > { %v1893_v6 = vpop.f32.mrb[18].mxu1 }
 0x409   : > { %v1904_v12 = vmul.f32 0.17677669, %v1893_v6  ;;  %v3975_v13 = vpop.f32.mrb[19].mxu1  ;;  %v1911_v14 = vadd.f32 %v1903_v63, %v515_v31 }
 0x40b   : > { %v1932_v15 = vsel %vm1913_vm2, %v1911_v14, -inf  ;;  %v1912_v16 = vadd.f32 %v1904_v12, %v516_v35 }
 0x40c   : > { %1933 = vmax.xlane.f32.xlu0 %v1932_v15 }
 0x40d   : > { %v1935_v18 = vsel %vm1913_vm2, %v1912_v16, -inf }
 0x40e   : > { %1936 = vmax.xlane.f32.xlu1 %v1935_v18 }
 0x41f   : > { %1416 = vrot.lane.b32.xlu1 %v4823_v22, %s4398_s18 }
 0x422   : > { %1414 = vrot.lane.b32.xlu0 %v4828_v52, %s4398_s18 }
 0x423   : > { %1420 = vrot.lane.b32.xlu1 %v4828_v52, %s4399_s21 }
 0x426   : > { %1426 = vrot.lane.b32.xlu0 %v4828_v52, %s4400_s15 }
 0x427   : > { %1422 = vrot.lane.b32.xlu1 %v4823_v22, %s4399_s21 }
 0x42b   : > { %1428 = vrot.lane.b32.xlu1 %v4823_v22, %s4400_s15 }
 0x481   : > { %v1916_v56 = vpop.xlane.xlu0 %1915 }
 0x482   : > { %v1938_v3 = vsub.f32 %v1905_v38, %v1916_v56 }
 0x483   : > { %v1919_v53 = vpop.xlane.xlu1 %1918 }
 0x484   : > { %v1946_v61 = vmul.f32 1.442695, %v1938_v3  ;;  %v1939_v58 = vsub.f32 %v1906_v40, %v1919_v53 }
 0x486   : > { %4216 = vpow2.f32 %v1946_v61  ;;  %v1948_v59 = vmul.f32 1.442695, %v1939_v58 }
 0x488   : > { %4218 = vpow2.f32 %v1948_v59 }
 0x489   : > { %v1922_v23 = vpop.xlane.xlu0 %1921 }
 0x48a   : > { %v1940_v24 = vsub.f32 %v1907_v60, %v1922_v23 }
 0x48c   : > { %v1950_v25 = vmul.f32 1.442695, %v1940_v24 }
 0x48d   : > { %v1925_v27 = vpop.xlane.xlu0 %1924 }
 0x48e   : > { %4220 = vpow2.f32 %v1950_v25  ;;  %v1941_v28 = vsub.f32 %v1908_v62, %v1925_v27 }
 0x490   : > { %v4840_v29 = vpop.eup %4216  ;;  %v1952_v31 = vmul.f32 1.442695, %v1941_v28 }
 0x491   : > { %v1928_v32 = vpop.xlane.xlu0 %1927  ;;  %v1962_v33 = vsel %vm1913_vm2, %v4840_v29, 0.0 }
 0x492   : > { %v4844_v34 = vpop.eup %4218  ;;  %4222 = vpow2.f32 %v1952_v31  ;;  %v1942_v35 = vsub.f32 %v1909_v9, %v1928_v32  ;;  %1963 = vadd.xlane.f32.xlu0 %v1962_v33 }
 0x493   : > { %v1931_v36 = vpop.xlane.xlu1 %1930  ;;  %v1965_v37 = vsel %vm1913_vm2, %v4844_v34, 0.0 }
 0x494   : > { %v1954_v38 = vmul.f32 1.442695, %v1942_v35  ;;  %v1943_v39 = vsub.f32 %v1910_v10, %v1931_v36  ;;  %1966 = vadd.xlane.f32.xlu1 %v1965_v37 }
 0x496   : > { %4224 = vpow2.f32 %v1954_v38  ;;  %v1956_v40 = vmul.f32 1.442695, %v1943_v39 }
 0x498   : > { %v4848_v41 = vpop.eup %4220  ;;  %4226 = vpow2.f32 %v1956_v40 }
 0x499   : > { %v1934_v42 = vpop.xlane.xlu0 %1933  ;;  %v1968_v43 = vsel %vm1913_vm2, %v4848_v41, 0.0 }
 0x49a   : > { %v1944_v48 = vsub.f32 %v1911_v14, %v1934_v42  ;;  %1969 = vadd.xlane.f32.xlu0 %v1968_v43 }
 0x49b   : > { %v1937_v49 = vpop.xlane.xlu1 %1936 }
 0x49c   : > { %v4852_v50 = vpop.eup %4222  ;;  %v1958_v51 = vmul.f32 1.442695, %v1944_v48  ;;  %v1945_v60 = vsub.f32 %v1912_v16, %v1937_v49 }
 0x49d   : > { %v1971_v7 = vsel %vm1913_vm2, %v4852_v50, 0.0  ;;  %v1415_v11 = vpop.permute.xlu0 %1414 }
 0x49e   : > { %4228 = vpow2.f32 %v1958_v51  ;;  %v1960_v62 = vmul.f32 1.442695, %v1945_v60  ;;  %1972 = vadd.xlane.f32.xlu0 %v1971_v7 }
 0x49f   : > { %v1417_v17 = vpop.permute.xlu1 %1416 }
 0x4a0   : > { %v4856_v1 = vpop.eup %4224  ;;  %4230 = vpow2.f32 %v1960_v62 }
 0x4a1   : > { %v1974_v2 = vsel %vm1913_vm2, %v4856_v1, 0.0  ;;  %v1427_v0 = vpop.permute.xlu0 %1426 }
 0x4a2   : > { %v4860_v44 = vpop.eup %4226  ;;  %1975 = vadd.xlane.f32.xlu0 %v1974_v2  ;;  %v1448_v18 = vcombine.low %v1415_v11, %v1427_v0  ;;  %v1449_v21 = vcombine.high %v1415_v11, %v1427_v0 }
 0x4a3   : > { %v1421_v45 = vpop.permute.xlu1 %1420  ;;  %v1977_v5 = vsel %vm1913_vm2, %v4860_v44, 0.0 }
 0x4a4   : > { %1978 = vadd.xlane.f32.xlu1 %v1977_v5  ;;  %v1432_v13 = vcombine.low %v4828_v52, %v1421_v45  ;;  %v1433_v14 = vcombine.high %v4828_v52, %v1421_v45  ;;  %v1456_v52 = vrot.slane %v1448_v18, %v4676_v19  ;;  %v1463_v23 = vrot.slane %v1449_v21, %v4676_v19 }
 0x4a6   : > { %v1440_v53 = vrot.slane %v1432_v13, %v4676_v19  ;;  %v1447_v61 = vrot.slane %v1433_v14, %v4676_v19 }
 0x4a7   : > { %v1423_v9 = vpop.permute.xlu1 %1422 }
 0x4a8   : > { %v4864_v8 = vpop.eup %4228  ;;  %v1500_v15 = vcombine.low %v4823_v22, %v1423_v9  ;;  %v1501_v16 = vcombine.high %v4823_v22, %v1423_v9  ;;  %v1464_v28 = vcombine.low %v1440_v53, %v1456_v52  ;;  %v1465_v31 = vcombine.high %v1440_v53, %v1456_v52 }
 0x4a9   : > { %v1980_v46 = vsel %vm1913_vm2, %v4864_v8, 0.0  ;;  %v1480_v32 = vcombine.low %v1447_v61, %v1463_v23  ;;  %v1481_v33 = vcombine.high %v1447_v61, %v1463_v23 }
 0x4aa   : > { %v4868_v10 = vpop.eup %4230  ;;  %1981 = vadd.xlane.f32.xlu0 %v1980_v46  ;;  %v1508_v58 = vrot.slane %v1500_v15, %v4676_v19  ;;  %v1515_v59 = vrot.slane %v1501_v16, %v4676_v19  ;;  %v1472_v39 = vrot.slane %v1464_v28, %v4679_v26  ;;  %v1479_v40 = vrot.slane %v1465_v31, %v4679_v26 }
 0x4ab   : > { %v1983_v47 = vsel %vm1913_vm2, %v4868_v10, 0.0  ;;  %v1429_v63 = vpop.permute.xlu1 %1428  ;;  %v1488_v42 = vrot.slane %v1480_v32, %v4679_v26  ;;  %v1495_v43 = vrot.slane %v1481_v33, %v4679_v26 }
 0x4ac   : > { %1984 = vadd.xlane.f32.xlu1 %v1983_v47  ;;  %v1516_v6 = vcombine.low %v1417_v17, %v1429_v63  ;;  %v1517_v12 = vcombine.high %v1417_v17, %v1429_v63  ;;  %v1568_v7 = vcombine.low %v1472_v39, %v1479_v40  ;;  %v3742_v62 = vcombine.high %v1472_v39, %v1479_v40 }
 0x4ad   : > { %v1584_v17 = vcombine.low %v1488_v42, %v1495_v43  ;;  %v3743_v2 = vcombine.high %v1488_v42, %v1495_v43 }
 0x4ae   : > { %v1524_v56 = vrot.slane %v1516_v6, %v4676_v19  ;;  %v1531_v3 = vrot.slane %v1517_v12, %v4676_v19  ;;  %v1575_v11 = vrot.slane %v1568_v7, %v4676_v19  ;;  %v1583_v47 = vrot.slane %v3742_v62, %v4676_v19 }
 0x4af   : > { %v1591_v63 = vrot.slane %v1584_v17, %v4676_v19  ;;  %v1599_v0 = vrot.slane %v3743_v2, %v4676_v19 }
 0x4b0   : > { %v1532_v24 = vcombine.low %v1508_v58, %v1524_v56  ;;  %v1533_v22 = vcombine.high %v1508_v58, %v1524_v56  ;;  %v1548_v25 = vcombine.low %v1515_v59, %v1531_v3  ;;  %v1549_v27 = vcombine.high %v1515_v59, %v1531_v3 }
 0x4b1   : > { %v1600_v13 = vcombine.low %v1575_v11, %v1583_v47  ;;  %v1616_v14 = vcombine.low %v1591_v63, %v1599_v0  ;;  %v1601_v53 = vcombine.high %v1575_v11, %v1583_v47  ;;  %v1617_v61 = vcombine.high %v1591_v63, %v1599_v0 }
 0x4b2   : > { %v1540_v35 = vrot.slane %v1532_v24, %v4679_v26  ;;  %v1547_v36 = vrot.slane %v1533_v22, %v4679_v26  ;;  %v1556_v37 = vrot.slane %v1548_v25, %v4679_v26  ;;  %v1563_v38 = vrot.slane %v1549_v27, %v4679_v26 }
 0x4b3   : > { %v1608_v56 = vrot.slane %v1600_v13, %v4679_v26  ;;  %v1624_v3 = vrot.slane %v1616_v14, %v4679_v26  ;;  %v1615_v22 = vrot.slane %v1601_v53, %v4679_v26  ;;  %v1631_v25 = vrot.slane %v1617_v61, %v4679_v26 }
 0x4b4   : > { %v1636_v48 = vcombine.low %v1540_v35, %v1547_v36  ;;  %v3744_v49 = vcombine.high %v1540_v35, %v1547_v36  ;;  %v1652_v51 = vcombine.low %v1556_v37, %v1563_v38  ;;  %v3745_v60 = vcombine.high %v1556_v37, %v1563_v38 }
 0x4b5   : > { %v1632_v23 = vcombine.low %v1608_v56, %v1624_v3  ;;  %v1633_v28 = vcombine.high %v1608_v56, %v1624_v3  ;;  %v1634_v33 = vcombine.low %v1615_v22, %v1631_v25  ;;  %v1635_v37 = vcombine.high %v1615_v22, %v1631_v25 }
 0x4b6   : > { %v1643_v45 = vrot.slane %v1636_v48, %v4676_v19  ;;  %v1651_v5 = vrot.slane %v3744_v49, %v4676_v19  ;;  %v1659_v9 = vrot.slane %v1652_v51, %v4676_v19  ;;  %v1667_v46 = vrot.slane %v3745_v60, %v4676_v19 }
 0x4b8   : > { %v1668_v6 = vcombine.low %v1643_v45, %v1651_v5  ;;  %v1684_v12 = vcombine.low %v1659_v9, %v1667_v46  ;;  %v1669_v18 = vcombine.high %v1643_v45, %v1651_v5  ;;  %v1685_v21 = vcombine.high %v1659_v9, %v1667_v46 }
 0x4ba   : > { %v1676_v15 = vrot.slane %v1668_v6, %v4679_v26  ;;  %v1692_v16 = vrot.slane %v1684_v12, %v4679_v26  ;;  %v1683_v59 = vrot.slane %v1669_v18, %v4679_v26  ;;  %v1699_v52 = vrot.slane %v1685_v21, %v4679_v26 }
 0x4bc   : > { %v1700_v58 = vcombine.low %v1676_v15, %v1692_v16  ;;  %v1701_v24 = vcombine.high %v1676_v15, %v1692_v16  ;;  %v1702_v31 = vcombine.low %v1683_v59, %v1699_v52  ;;  %v1703_v35 = vcombine.high %v1683_v59, %v1699_v52 }
 0x4be   : > { %v1704_v27 = vpack.c.bf16 %v1700_v58, %v1632_v23  ;;  %v1705_v32 = vpack.c.bf16 %v1701_v24, %v1633_v28  ;;  %v1706_v36 = vpack.c.bf16 %v1702_v31, %v1634_v33  ;;  %v1707_v38 = vpack.c.bf16 %v1703_v35, %v1635_v37 }
 0x4d7   : > { %2006 = vxpose.xlu0.c.b16.start.end [1/1] (short) (narrow) %v1704_v27, 32 }
 0x4d9   : > { %2080 = vxpose.xlu1.c.b16.start.end [1/1] (short) (narrow) %v1705_v32, 32 }
 0x4dc   : > { %2154 = vxpose.xlu0.c.b16.start.end [1/1] (short) (narrow) %v1706_v36, 32 }
 0x4de   : > { %2228 = vxpose.xlu1.c.b16.start.end [1/1] (short) (narrow) %v1707_v38, 32 }
 0x51f   : > { %v1964_v39 = vpop.xlane.xlu0 %1963 }
 0x520   : > { %4232 = vrcp.f32 %v1964_v39  ;;  %v4124_v39 = vld [vmem:[%s5079_s6] sm:$0xff]  }
 0x521   : > { %v1967_v40 = vpop.xlane.xlu1 %1966 }
 0x522   : > { %4234 = vrcp.f32 %v1967_v40  ;;  %v4125_v40 = vld [vmem:[%s5079_s6 + $0x8] sm:$0xff]  }
 0x527   : > { %v1970_v42 = vpop.xlane.xlu0 %1969 }
 0x528   : > { %4236 = vrcp.f32 %v1970_v42  ;;  %v4126_v42 = vld [vmem:[%s5079_s6 + $0x10] sm:$0xff]  }
 0x52a   : > { %v4233_v43 = vpop.eup %4232 }
 0x52b   : > { %v1973_v48 = vpop.xlane.xlu0 %1972  ;;  %v1994_v51 = vmul.f32 %v4233_v43, %v4840_v29  ;;  %v4127_v43 = vld [vmem:[%s5079_s6 + $0x18] sm:$0xff]  }
 0x52c   : > { %v4235_v49 = vpop.eup %4234  ;;  %4238 = vrcp.f32 %v1973_v48  ;;  %v4128_v48 = vld [vmem:[%s5079_s6 + $0x20] sm:$0xff]  }
 0x52d   : > { %v1995_v60 = vmul.f32 %v4235_v49, %v4844_v34  ;;  %v4129_v49 = vld [vmem:[%s5079_s6 + $0x28] sm:$0xff]  }
 0x52f   : > { %v1976_v7 = vpop.xlane.xlu0 %1975  ;;  %v2002_v62 = vpack.c.bf16 %v1995_v60, %v1994_v51 }
 0x530   : > { %4240 = vrcp.f32 %v1976_v7 }
 0x531   : > { %4020 = vmatprep.subr.msk.bf16.mxu0 %vm1913_vm2, %v2002_v62  ;;  %v1979_v17 = vpop.xlane.xlu1 %1978  ;;  %v2029_v2 = vsel %vm1913_vm2, %v2002_v62, 0 }
 0x532   : > { %4242 = vrcp.f32 %v1979_v17  ;;  %3977 = vmatpush3.bf16.xpose.msra.mxu0 %v2029_v2  ;;  %v4237_v45 = vpop.eup %4236 }
 0x533   : > { %v1996_v46 = vmul.f32 %v4237_v45, %v4848_v41 }
 0x536   : > { %v4239_v5 = vpop.eup %4238 }
 0x537   : > { %v1982_v9 = vpop.xlane.xlu0 %1981  ;;  %v1997_v11 = vmul.f32 %v4239_v5, %v4852_v50 }
 0x538   : > { %4244 = vrcp.f32 %v1982_v9 }
 0x539   : > { %v1985_v29 = vpop.xlane.xlu1 %1984  ;;  %v2003_v34 = vpack.c.bf16 %v1997_v11, %v1996_v46 }
 0x53a   : > { %v4241_v47 = vpop.eup %4240  ;;  %4246 = vrcp.f32 %v1985_v29 }
 0x53b   : > { %4021 = vmatprep.subr.msk.bf16.mxu1 %vm1913_vm2, %v2003_v34  ;;  %v2103_v63 = vsel %vm1913_vm2, %v2003_v34, 0  ;;  %v1998_v12 = vmul.f32 %v4241_v47, %v4856_v1 }
 0x53c   : > { %v4243_v0 = vpop.eup %4242  ;;  %3983 = vmatpush3.bf16.xpose.msra.mxu1 %v2103_v63 }
 0x53d   : > { %v2014_v6 = vpop.trf.xlu0  ;;  %v1999_v13 = vmul.f32 %v4243_v0, %v4860_v44 }
 0x53e   : > { %3978 = vmatprep.mubr.msk.bf16.mxu0 %vm1913_vm2, %v2014_v6 }
 0x53f   : > { %v2088_v41 = vpop.trf.xlu1  ;;  %v2004_v50 = vpack.c.bf16 %v1999_v13, %v1998_v12 }
 0x540   : > { %3984 = vmatprep.mubr.msk.bf16.mxu1 %vm1913_vm2, %v2088_v41 }
 0x541   : > { %v2015_v14 = vpop.trf.xlu0  ;;  %4022 = vmatprep.subr.msk.bf16.mxu0 %vm1913_vm2, %v2004_v50  ;;  %v2177_v15 = vsel %vm1913_vm2, %v2004_v50, 0 }
 0x542   : > { %v4245_v16 = vpop.eup %4244  ;;  %3979 = vmatmul.mubr.msk.bf16.vlgmr.msra.gmra.mrb[4].mxu0 %vm1913_vm2, %v2015_v14 }
 0x543   : > { %3989 = vmatpush3.bf16.xpose.msra.mxu0 %v2177_v15  ;;  %v2089_v18 = vpop.trf.xlu1  ;;  %v2000_v1 = vmul.f32 %v4245_v16, %v4864_v8 }
 0x544   : > { %v4247_v21 = vpop.eup %4246  ;;  %3985 = vmatmul.mubr.msk.bf16.vlgmr.msra.gmra.mrb[20].mxu1 %vm1913_vm2, %v2089_v18  ;;  %4000 = vmatprep.subr.bf16.mxu0 %v4395_v4 }
 0x545   : > { %v2001_v44 = vmul.f32 %v4247_v21, %v4868_v10  ;;  %v2162_v56 = vpop.trf.xlu0 }
 0x546   : > { %3990 = vmatprep.mubr.msk.bf16.mxu0 %vm1913_vm2, %v2162_v56 }
 0x547   : > { %v2005_v3 = vpack.c.bf16 %v2001_v44, %v2000_v1  ;;  %v2236_v53 = vpop.trf.xlu1 }
 0x548   : > { %3996 = vmatprep.mubr.msk.bf16.mxu1 %vm1913_vm2, %v2236_v53 }
 0x549   : > { %4023 = vmatprep.subr.msk.bf16.mxu1 %vm1913_vm2, %v2005_v3  ;;  %v2251_v61 = vsel %vm1913_vm2, %v2005_v3, 0  ;;  %v2163_v58 = vpop.trf.xlu0 }
 0x54a   : > { %3995 = vmatpush3.bf16.xpose.msra.mxu1 %v2251_v61  ;;  %3991 = vmatmul.mubr.msk.bf16.vlgmr.msra.gmra.mrb[8].mxu0 %vm1913_vm2, %v2163_v58 }
 0x54b   : > { %4016 = vmatprep.mubr.msk.bf16.mxu0 %vm4397_vm0, %v4395_v4  ;;  %v2237_v8 = vpop.trf.xlu1  ;;  %4001 = vmatpush3.bf16.msra.mxu0 %v4124_v39 }
 0x54c   : > { %4002 = vmatprep.subr.bf16.mxu0 %v4395_v4 }
 0x54f   : > { %4003 = vmatpush3.bf16.msra.mxu0 %v4125_v40 }
 0x550   : > { %4004 = vmatprep.subr.bf16.mxu0 %v4395_v4 }
 0x551   : > { %3997 = vmatmul.mubr.msk.bf16.vlgmr.msra.gmra.mrb[24].mxu1 %vm1913_vm2, %v2237_v8 }
 0x552   : > { %3136 = vmatprep.mubr.bf16.mxu1 %v4396_v30 }
 0x553   : > { %4005 = vmatpush3.bf16.msra.mxu0 %v4126_v42 }
 0x554   : > { %4006 = vmatprep.subr.bf16.mxu0 %v4395_v4 }
 0x557   : > { %4007 = vmatpush3.bf16.msra.mxu0 %v4127_v43 }
 0x558   : > { %4008 = vmatprep.subr.bf16.mxu0 %v4395_v4 }
 0x55b   : > { %4009 = vmatpush3.bf16.msra.mxu0 %v4128_v48 }
 0x55c   : > { %4010 = vmatprep.subr.bf16.mxu0 %v4395_v4 }
 0x55f   : > { %4011 = vmatpush3.bf16.msra.mxu0 %v4129_v49 }
 0x560   : > { %4012 = vmatprep.subr.bf16.mxu0 %v4395_v4 }
 0x615   : > { %v3980_v10 = vpop.f32.mrb[4].mxu0 }
 0x616   : > { %v2065_v59 = vpop.f32.mrb[5].mxu0 }
 0x617   : > { %2302 = vxpose.xlu0.b32.start [1/4] (short) (narrow) %v2065_v59, 16  ;;  %v3981_v52 = vpop.f32.mrb[6].mxu0  ;;  %v3986_v23 = vpop.f32.mrb[20].mxu1 }
 0x618   : > { %v2068_v24 = vpop.f32.mrb[7].mxu0  ;;  %v2139_v22 = vpop.f32.mrb[21].mxu1 }
 0x619   : > { %2334 = vxpose.xlu1.b32.start [1/4] (short) (narrow) %v2139_v22, 16  ;;  %v3987_v25 = vpop.f32.mrb[22].mxu1 }
 0x61a   : > { %v2142_v27 = vpop.f32.mrb[23].mxu1 }
 0x61b   : > { %2303 = vxpose.xlu0.b32.cont [2/4] (short) (narrow) %v2068_v24, 16 }
 0x61d   : > { %2335 = vxpose.xlu1.b32.cont [2/4] (short) (narrow) %v2142_v27, 16  ;;  %v3992_v28 = vpop.f32.mrb[8].mxu0 }
 0x61e   : > { %v2213_v31 = vpop.f32.mrb[9].mxu0 }
 0x61f   : > { %2304 = vxpose.xlu0.b32.cont [3/4] (short) (narrow) %v3980_v10, 16  ;;  %v3993_v32 = vpop.f32.mrb[10].mxu0 }
 0x620   : > { %v2216_v33 = vpop.f32.mrb[11].mxu0 }
 0x621   : > { %2336 = vxpose.xlu1.b32.cont [3/4] (short) (narrow) %v3986_v23, 16 }
 0x623   : > { %2305 = vxpose.xlu0.b32.end [4/4] (short) (narrow) %v3981_v52, 16 }
 0x624   : > { %v3998_v35 = vpop.f32.mrb[24].mxu1 }
 0x625   : > { %2337 = vxpose.xlu1.b32.end [4/4] (short) (narrow) %v3987_v25, 16  ;;  %v2287_v36 = vpop.f32.mrb[25].mxu1 }
 0x626   : > { %v3999_v37 = vpop.f32.mrb[26].mxu1 }
 0x627   : > { %2366 = vxpose.xlu0.b32.start [1/4] (short) (narrow) %v2213_v31, 16  ;;  %v2290_v38 = vpop.f32.mrb[27].mxu1 }
 0x629   : > { %2398 = vxpose.xlu1.b32.start [1/4] (short) (narrow) %v2287_v36, 16 }
 0x62b   : > { %2367 = vxpose.xlu0.b32.cont [2/4] (short) (narrow) %v2216_v33, 16 }
 0x62d   : > { %2399 = vxpose.xlu1.b32.cont [2/4] (short) (narrow) %v2290_v38, 16 }
 0x62f   : > { %2368 = vxpose.xlu0.b32.cont [3/4] (short) (narrow) %v3992_v28, 16 }
 0x631   : > { %2400 = vxpose.xlu1.b32.cont [3/4] (short) (narrow) %v3998_v35, 16 }
 0x633   : > { %2369 = vxpose.xlu0.b32.end [4/4] (short) (narrow) %v3993_v32, 16 }
 0x635   : > { %2401 = vxpose.xlu1.b32.end [4/4] (short) (narrow) %v3999_v37, 16 }
 0x697   : > { %v2318_v51 = vpop.trf.xlu0 }
 0x699   : > { %v2350_v60 = vpop.trf.xlu1 }
 0x69b   : > { %v2319_v7 = vpop.trf.xlu0 }
 0x69d   : > { %v2351_v62 = vpop.trf.xlu1 }
 0x6a7   : > { %v2382_v17 = vpop.trf.xlu0 }
 0x6a8   : > { %v2430_v2 = vcombine.low %v2318_v51, %v2382_v17  ;;  %v2431_v45 = vcombine.high %v2318_v51, %v2382_v17 }
 0x6a9   : > { %v2414_v5 = vpop.trf.xlu1 }
 0x6aa   : > { %v2446_v9 = vcombine.low %v2350_v60, %v2414_v5  ;;  %v2447_v46 = vcombine.high %v2350_v60, %v2414_v5  ;;  %v2438_v29 = vrot.slane %v2430_v2, %v4676_v19  ;;  %v2445_v34 = vrot.slane %v2431_v45, %v4676_v19 }
 0x6ab   : > { %v2383_v11 = vpop.trf.xlu0 }
 0x6ac   : > { %v2454_v47 = vrot.slane %v2446_v9, %v4676_v19  ;;  %v2461_v63 = vrot.slane %v2447_v46, %v4676_v19  ;;  %v2498_v0 = vcombine.low %v2319_v7, %v2383_v11  ;;  %v2499_v6 = vcombine.high %v2319_v7, %v2383_v11  ;;  %v4130_v7 = vld [vmem:[%s5079_s6 + $0x30] sm:$0xff]  }
 0x6ad   : > { %v2415_v12 = vpop.trf.xlu1  ;;  %4013 = vmatpush3.bf16.msra.mxu0 %v4130_v7  ;;  %v4138_v7 = vld [vmem:[#allocation4 + $0x20] ss:$16 sps:$4 sm:$0xff]  }
 0x6ae   : > { %v2462_v13 = vcombine.low %v2438_v29, %v2454_v47  ;;  %v2463_v41 = vcombine.high %v2438_v29, %v2454_v47  ;;  %v2478_v50 = vcombine.low %v2445_v34, %v2461_v63  ;;  %v2479_v14 = vcombine.high %v2445_v34, %v2461_v63  ;;  %4014 = vmatprep.subr.bf16.mxu0 %v4395_v4 }
 0x6af   : > { %v2514_v15 = vcombine.low %v2351_v62, %v2415_v12  ;;  %v2515_v16 = vcombine.high %v2351_v62, %v2415_v12  ;;  %v2506_v56 = vrot.slane %v2498_v0, %v4676_v19  ;;  %v2513_v3 = vrot.slane %v2499_v6, %v4676_v19  ;;  %v4131_v12 = vld [vmem:[%s5079_s6 + $0x38] sm:$0xff]  }
 0x6b0   : > { %v2470_v18 = vrot.slane %v2462_v13, %v4679_v26  ;;  %v2477_v21 = vrot.slane %v2463_v41, %v4679_v26  ;;  %v2486_v1 = vrot.slane %v2478_v50, %v4679_v26  ;;  %v2493_v44 = vrot.slane %v2479_v14, %v4679_v26 }
 0x6b1   : > { %v2522_v53 = vrot.slane %v2514_v15, %v4676_v19  ;;  %v2529_v61 = vrot.slane %v2515_v16, %v4676_v19  ;;  %4015 = vmatpush3.bf16.msra.mxu0 %v4131_v12  ;;  %v4150_v12 = vld [vmem:[#allocation4 + $0x60] ss:$16 sps:$4 sm:$0xff]  }
 0x6b2   : > { %v2566_v58 = vcombine.low %v2470_v18, %v2477_v21  ;;  %v3758_v8 = vcombine.high %v2470_v18, %v2477_v21  ;;  %v2582_v10 = vcombine.low %v2486_v1, %v2493_v44  ;;  %v3759_v59 = vcombine.high %v2486_v1, %v2493_v44 }
 0x6b3   : > { %v2530_v52 = vcombine.low %v2506_v56, %v2522_v53  ;;  %v2531_v23 = vcombine.high %v2506_v56, %v2522_v53  ;;  %v2546_v24 = vcombine.low %v2513_v3, %v2529_v61  ;;  %v2547_v22 = vcombine.high %v2513_v3, %v2529_v61 }
 0x6b4   : > { %v2573_v25 = vrot.slane %v2566_v58, %v4676_v19  ;;  %v2581_v27 = vrot.slane %v3758_v8, %v4676_v19  ;;  %v2589_v28 = vrot.slane %v2582_v10, %v4676_v19  ;;  %v2597_v31 = vrot.slane %v3759_v59, %v4676_v19 }
 0x6b5   : > { %v2538_v32 = vrot.slane %v2530_v52, %v4679_v26  ;;  %v2545_v33 = vrot.slane %v2531_v23, %v4679_v26  ;;  %v2554_v35 = vrot.slane %v2546_v24, %v4679_v26  ;;  %v2561_v36 = vrot.slane %v2547_v22, %v4679_v26 }
 0x6b6   : > { %v2599_v37 = vcombine.high %v2573_v25, %v2581_v27  ;;  %v2615_v38 = vcombine.high %v2589_v28, %v2597_v31  ;;  %v2598_v39 = vcombine.low %v2573_v25, %v2581_v27  ;;  %v2614_v40 = vcombine.low %v2589_v28, %v2597_v31  ;;  %v3762_v28 = vld [vmem:[%s5080_s7] ss:$0 sm:$0xff] }
 0x6b7   : > { %v2634_v42 = vcombine.low %v2538_v32, %v2545_v33  ;;  %v3760_v43 = vcombine.high %v2538_v32, %v2545_v33  ;;  %v2650_v48 = vcombine.low %v2554_v35, %v2561_v36  ;;  %v3761_v49 = vcombine.high %v2554_v35, %v2561_v36  ;;  %v4284_v36 = vld [vmem:[%s4598_s28] sm:$0xff] }
 0x6b8   : > { %v2606_v51 = vrot.slane %v2598_v39, %v4679_v26  ;;  %v2622_v60 = vrot.slane %v2614_v40, %v4679_v26  ;;  %v2613_v5 = vrot.slane %v2599_v37, %v4679_v26  ;;  %v2629_v9 = vrot.slane %v2615_v38, %v4679_v26  ;;  %v4285_v40 = vld [vmem:[%s4598_s28 + $0x8] sm:$0xff] }
 0x6b9   : > { %v2641_v62 = vrot.slane %v2634_v42, %v4676_v19  ;;  %v2649_v17 = vrot.slane %v3760_v43, %v4676_v19  ;;  %v2657_v2 = vrot.slane %v2650_v48, %v4676_v19  ;;  %v2665_v45 = vrot.slane %v3761_v49, %v4676_v19  ;;  %v4134_v43 = vld [vmem:[#allocation4 + $0x4] ss:$16 sps:$4 sm:$0xff]   ;;  %v4135_v48 = vld [vmem:[#allocation4 + $0x8] ss:$16 sps:$4 sm:$0xff]   ;;  %v4137_v49 = vld [vmem:[#allocation4 + $0xc] ss:$16 sps:$4 sm:$0xff]  }
 0x6ba   : > { %v2630_v46 = vcombine.low %v2606_v51, %v2622_v60  ;;  %v2632_v13 = vcombine.low %v2613_v5, %v2629_v9  ;;  %v2631_v50 = vcombine.high %v2606_v51, %v2622_v60  ;;  %v2633_v21 = vcombine.high %v2613_v5, %v2629_v9  ;;  %v4140_v51 = vld [vmem:[#allocation4 + $0x24] ss:$16 sps:$4 sm:$0xff]   ;;  %3104 = vmatprep.subr.bf16.mxu1 %v4134_v43  ;;  %v4143_v60 = vld [vmem:[#allocation4 + $0x2c] ss:$16 sps:$4 sm:$0xff]  }
 0x6bb   : > { %v2667_v11 = vcombine.high %v2641_v62, %v2649_v17  ;;  %v2683_v29 = vcombine.high %v2657_v2, %v2665_v45  ;;  %v2666_v34 = vcombine.low %v2641_v62, %v2649_v17  ;;  %v2682_v47 = vcombine.low %v2657_v2, %v2665_v45  ;;  %3147 = vmatprep.subr.bf16.mxu0 %v4137_v49  ;;  %v4141_v62 = vld [vmem:[#allocation4 + $0x28] ss:$16 sps:$4 sm:$0xff]   ;;  %v4182_v43 = vld [vmem:[#allocation6] sm:$0xff]  }
 0x6bc   : > { %v4184_v49 = vld [vmem:[#allocation6 + $0x48] sm:$0xff]  }
 0x6bd   : > { %v2681_v63 = vrot.slane %v2667_v11, %v4679_v26  ;;  %v2697_v0 = vrot.slane %v2683_v29, %v4679_v26  ;;  %v2674_v6 = vrot.slane %v2666_v34, %v4679_v26  ;;  %v2690_v19 = vrot.slane %v2682_v47, %v4679_v26  ;;  %v4146_v34 = vld [vmem:[#allocation4 + $0x44] ss:$16 sps:$4 sm:$0xff]   ;;  %v4149_v47 = vld [vmem:[#allocation4 + $0x4c] ss:$16 sps:$4 sm:$0xff]  }
 0x6bf   : > { %v2700_v41 = vcombine.low %v2681_v63, %v2697_v0  ;;  %v2699_v14 = vcombine.high %v2674_v6, %v2690_v19  ;;  %v2698_v15 = vcombine.low %v2674_v6, %v2690_v19  ;;  %v2701_v18 = vcombine.high %v2681_v63, %v2697_v0  ;;  %v4144_v63 = vld [vmem:[#allocation4 + $0x40] ss:$16 sps:$4 sm:$0xff]   ;;  %v4147_v0 = vld [vmem:[#allocation4 + $0x48] ss:$16 sps:$4 sm:$0xff]   ;;  %v4152_v6 = vld [vmem:[#allocation4 + $0x64] ss:$16 sps:$4 sm:$0xff]  }
 0x6c0   : > { %v4155_v19 = vld [vmem:[#allocation4 + $0x6c] ss:$16 sps:$4 sm:$0xff]  }
 0x6c1   : > { %v4082_v16 = vpack.i.bf16 %v2700_v41, %v2632_v13  ;;  %v4077_v4 = vpack.i.bf16 %v2699_v14, %v2631_v50  ;;  %v4087_v1 = vpack.i.bf16 %v2701_v18, %v2633_v21  ;;  %v4153_v13 = vld [vmem:[#allocation4 + $0x68] ss:$16 sps:$4 sm:$0xff]   ;;  %v4158_v41 = vld [vmem:[#allocation4 + $0x84] ss:$16 sps:$4 sm:$0xff]   ;;  %v4161_v50 = vld [vmem:[#allocation4 + $0x8c] ss:$16 sps:$4 sm:$0xff]  }
 0x6c2   : > { %v4156_v14 = vld [vmem:[#allocation4 + $0x80] ss:$16 sps:$4 sm:$0xff]   ;;  %v4165_v21 = vld [vmem:[#allocation4 + $0xa8] ss:$16 sps:$4 sm:$0xff]  }
 0x6c3   : > { %4083 = vrot.lane.b32.xlu1 %v4082_v16, %s4399_s21  ;;  %4078 = vrot.lane.b32.xlu0 %v4077_v4, %s4400_s15  ;;  %v4164_v16 = vld [vmem:[#allocation4 + $0xa4] ss:$16 sps:$4 sm:$0xff]   ;;  %v4167_v4 = vld [vmem:[#allocation4 + $0xac] ss:$16 sps:$4 sm:$0xff]   ;;  %v4162_v18 = vld [vmem:[#allocation4 + $0xa0] ss:$16 sps:$4 sm:$0xff]  }
 0x6c7   : > { %4088 = vrot.lane.b32.xlu1 %v4087_v1, %s4398_s18  ;;  %v4170_v1 = vld [vmem:[#allocation4 + $0xc4] ss:$16 sps:$4 sm:$0xff]  }
 0x735   : > { %v4084_v26 = vpop.permute.xlu1 %4083  ;;  %v4079_v44 = vpop.permute.xlu0 %4078 }
 0x736   : > { %v4081_v56 = vunpack.i.h.bf16 %v4079_v44  ;;  %v4080_v3 = vunpack.i.l.bf16 %v4079_v44  ;;  %v4086_v53 = vunpack.i.h.bf16 %v4084_v26  ;;  %v4085_v61 = vunpack.i.l.bf16 %v4084_v26  ;;  %v4173_v26 = vld [vmem:[#allocation4 + $0xcc] ss:$16 sps:$4 sm:$0xff]   ;;  %v4168_v44 = vld [vmem:[#allocation4 + $0xc0] ss:$16 sps:$4 sm:$0xff]  }
 0x738   : > { %v2726_v58 = vsel %vm1708_vm1, %v2630_v46, %v4080_v3  ;;  %v2727_v8 = vsel %vm1708_vm1, %v2698_v15, %v4081_v56  ;;  %v4159_v15 = vld [vmem:[#allocation4 + $0x88] ss:$16 sps:$4 sm:$0xff]   ;;  %v4176_v3 = vld [vmem:[#allocation4 + $0xe4] ss:$16 sps:$4 sm:$0xff]  }
 0x739   : > { %v4089_v10 = vpop.permute.xlu1 %4088  ;;  %v2729_v23 = vsel %vm2728_vm3, %v2726_v58, %v4085_v61  ;;  %v2730_v24 = vsel %vm2728_vm3, %v2727_v8, %v4086_v53  ;;  %v4171_v56 = vld [vmem:[#allocation4 + $0xc8] ss:$16 sps:$4 sm:$0xff]   ;;  %v4179_v53 = vld [vmem:[#allocation4 + $0xec] ss:$16 sps:$4 sm:$0xff]   ;;  %v4174_v61 = vld [vmem:[#allocation4 + $0xe0] ss:$16 sps:$4 sm:$0xff]  }
 0x73a   : > { %v4091_v59 = vunpack.i.h.bf16 %v4089_v10  ;;  %v4090_v52 = vunpack.i.l.bf16 %v4089_v10  ;;  %v4177_v58 = vld [vmem:[#allocation4 + $0xe8] ss:$16 sps:$4 sm:$0xff]  }
 0x73c   : > { %v2732_v22 = vsel %vm2731_vm4, %v2729_v23, %v4090_v52  ;;  %v2733_v25 = vsel %vm2731_vm4, %v2730_v24, %v4091_v59 }
 0x73d   : > { %v2734_v27 = vpack.c.bf16 %v2733_v25, %v2732_v22 }
 0x73f   : > { %4017 = vmatmul.mubr.bf16.vlgmr.msra.gmra.mrb[12].mxu0 %v2734_v27  ;;  %v3771_v27 = vld [vmem:[%s5081_s8] ss:$0 sm:$0xff] }
 0x740   : > { %3179 = vmatprep.mubr.bf16.mxu0 %v4396_v30  ;;  %v4132_v30 = vld [vmem:[#allocation4] ss:$16 sps:$4 sm:$0xff]   ;;  %3148 = vmatpush1.bf16.msra.mxu0 %v4135_v48 }
 0x741   : > { %3105 = vmatpush1.bf16.msra.mxu1 %v4132_v30  ;;  %3149 = vmatprep.subr.bf16.mxu0 %v4143_v60  ;;  %v4181_v30 = vld [vmem:[#allocation6 + $0xc0] sm:$0xff]   ;;  %v4186_v60 = vld [vmem:[#allocation6 + $0x8] sm:$0xff]  }
 0x742   : > { %3106 = vmatprep.subr.bf16.mxu1 %v4140_v51  ;;  %v4183_v48 = vld [vmem:[#allocation6 + $0x80] sm:$0xff]   ;;  %v4185_v51 = vld [vmem:[#allocation6 + $0xc8] sm:$0xff]  }
 0x744   : > { %3150 = vmatpush1.bf16.msra.mxu0 %v4141_v62  ;;  %v4188_v62 = vld [vmem:[#allocation6 + $0x50] sm:$0xff]  }
 0x745   : > { %3107 = vmatpush1.bf16.msra.mxu1 %v4138_v7  ;;  %3151 = vmatprep.subr.bf16.mxu0 %v4149_v47  ;;  %v4187_v7 = vld [vmem:[#allocation6 + $0x88] sm:$0xff]   ;;  %v4198_v47 = vld [vmem:[#allocation6 + $0x20] sm:$0xff]  }
 0x746   : > { %3108 = vmatprep.subr.bf16.mxu1 %v4146_v34  ;;  %v4197_v34 = vld [vmem:[#allocation6 + $0xe0] sm:$0xff]  }
 0x748   : > { %3152 = vmatpush1.bf16.msra.mxu0 %v4147_v0  ;;  %v4200_v0 = vld [vmem:[#allocation6 + $0x68] sm:$0xff]  }
 0x749   : > { %3109 = vmatpush1.bf16.msra.mxu1 %v4144_v63  ;;  %3153 = vmatprep.subr.bf16.mxu0 %v4155_v19  ;;  %v4199_v63 = vld [vmem:[#allocation6 + $0xa0] sm:$0xff]   ;;  %v4202_v19 = vld [vmem:[#allocation6 + $0x28] sm:$0xff]  }
 0x74a   : > { %3110 = vmatprep.subr.bf16.mxu1 %v4152_v6  ;;  %v4201_v6 = vld [vmem:[#allocation6 + $0xe8] sm:$0xff]  }
 0x74c   : > { %3154 = vmatpush1.bf16.msra.mxu0 %v4153_v13  ;;  %v4204_v13 = vld [vmem:[#allocation6 + $0x70] sm:$0xff]  }
 0x74d   : > { %3111 = vmatpush1.bf16.msra.mxu1 %v4150_v12  ;;  %3155 = vmatprep.subr.bf16.mxu0 %v4161_v50  ;;  %v4203_v12 = vld [vmem:[#allocation6 + $0xa8] sm:$0xff]   ;;  %v4206_v50 = vld [vmem:[#allocation6 + $0x30] sm:$0xff]  }
 0x74e   : > { %3112 = vmatprep.subr.bf16.mxu1 %v4158_v41  ;;  %v4205_v41 = vld [vmem:[#allocation6 + $0xf0] sm:$0xff]  }
 0x750   : > { %3156 = vmatpush1.bf16.msra.mxu0 %v4159_v15  ;;  %v4208_v15 = vld [vmem:[#allocation6 + $0x78] sm:$0xff]  }
 0x751   : > { %3113 = vmatpush1.bf16.msra.mxu1 %v4156_v14  ;;  %3157 = vmatprep.subr.bf16.mxu0 %v4167_v4  ;;  %v4207_v14 = vld [vmem:[#allocation6 + $0xb0] sm:$0xff]   ;;  %v4210_v4 = vld [vmem:[#allocation6 + $0x38] sm:$0xff]  }
 0x752   : > { %3114 = vmatprep.subr.bf16.mxu1 %v4164_v16  ;;  %v4209_v16 = vld [vmem:[#allocation6 + $0xf8] sm:$0xff]  }
 0x754   : > { %3158 = vmatpush1.bf16.msra.mxu0 %v4165_v21  ;;  %v2922_v21 = vld [vmem:[%s5084_s11] sm:$0xf] }
 0x755   : > { %3115 = vmatpush1.bf16.msra.mxu1 %v4162_v18  ;;  %3159 = vmatprep.subr.bf16.mxu0 %v4173_v26  ;;  %v4211_v18 = vld [vmem:[#allocation6 + $0xb8] sm:$0xff]   ;;  %v2927_v26 = vrot.slane %v2922_v21, %v595_v55 }
 0x756   : > { %3116 = vmatprep.subr.bf16.mxu1 %v4170_v1  ;;  %v2938_v1 = vsub.s32 3, %v4632_v54 }
 0x758   : > { %3160 = vmatpush1.bf16.msra.mxu0 %v4171_v56  ;;  %v2931_v56 = vrot.slane %v2922_v21, %v599_v57 }
 0x759   : > { %3117 = vmatpush1.bf16.msra.mxu1 %v4168_v44  ;;  %3161 = vmatprep.subr.bf16.mxu0 %v4179_v53  ;;  %v2935_v44 = vrot.slane %v2922_v21, %v603_v20 }
 0x75a   : > { %3118 = vmatprep.subr.bf16.mxu1 %v4176_v3  ;;  %v2939_v3 = vrot.slane %v2922_v21, %v2938_v1 }
 0x75c   : > { %3162 = vmatpush1.bf16.msra.mxu0 %v4177_v58 }
 0x75d   : > { %3119 = vmatpush1.bf16.msra.mxu1 %v4174_v61  ;;  %3910 = vmatprep.subr.bf16.mxu0 %v4181_v30 }
 0x812   : > { %v2840_v31 = vpop.f32.mrb[12].mxu0 }
 0x813   : > { %v2841_v32 = vadd.f32 %v3762_v28, %v2840_v31  ;;  %v4018_v33 = vpop.f32.mrb[13].mxu0 }
 0x814   : > { %v2843_v35 = vpop.f32.mrb[14].mxu0  ;;  %v3772_v33 = vld [vmem:[%s5082_s9] ss:$0 sm:$0xff] }
 0x815   : > { %v5009_v37 = vadd.f32 %v4284_v36, %v2841_v32  ;;  %v2844_v38 = vadd.f32 %v3762_v28, %v2843_v35  ;;  %v4019_v39 = vpop.f32.mrb[15].mxu0 }
 0x817   : > { %v5012_v42 = vadd.f32 %v4285_v40, %v2844_v38  ;;  %2851 = vadd.xlane.f32.xlu1 %v5009_v37  ;;  %v4180_v40 = vld [vmem:[#allocation6 + $0x40] sm:$0xff]  }
 0x818   : > { %3888 = vmatprep.subr.bf16.mxu1 %v4180_v40 }
 0x819   : > { %2853 = vadd.xlane.f32.xlu0 %v5012_v42 }
 0x8a4   : > { %v2852_v17 = vpop.xlane.xlu1 %2851 }
 0x8a5   : > { %v2855_v2 = vmul.f32 0.0078125, %v2852_v17  ;;  %v4189_v17 = vld [vmem:[#allocation6 + $0xd0] sm:$0xff]  }
 0x8a6   : > { %v2854_v45 = vpop.xlane.xlu0 %2853 }
 0x8a7   : > { %v5017_v5 = vsub.f32 %v5009_v37, %v2855_v2  ;;  %v2856_v9 = vmul.f32 0.0078125, %v2854_v45  ;;  %v4190_v2 = vld [vmem:[#allocation6 + $0x10] sm:$0xff]  }
 0x8a8   : > { %v4191_v45 = vld [vmem:[#allocation6 + $0x90] sm:$0xff]  }
 0x8a9   : > { %v5020_v46 = vsub.f32 %v5012_v42, %v2856_v9  ;;  %v2859_v11 = vmul.f32 %v5017_v5, %v5017_v5  ;;  %v4193_v9 = vld [vmem:[#allocation6 + $0xd8] sm:$0xff]  }
 0x8ab   : > { %2861 = vadd.xlane.f32.xlu0 %v2859_v11  ;;  %v2860_v29 = vmul.f32 %v5020_v46, %v5020_v46  ;;  %v4195_v11 = vld [vmem:[#allocation6 + $0x98] sm:$0xff]  }
 0x8af   : > { %2863 = vadd.xlane.f32.xlu0 %v2860_v29  ;;  %v4196_v29 = vld [vmem:[#allocation6 + $0x60] sm:$0xff]  }
 0x938   : > { %v2862_v8 = vpop.xlane.xlu0 %2861 }
 0x939   : > { %v2865_v10 = vmul.f32 0.0078125, %v2862_v8 }
 0x93b   : > { %v2867_v59 = vadd.f32 1e-05, %v2865_v10 }
 0x93c   : > { %v2864_v52 = vpop.xlane.xlu0 %2863 }
 0x93d   : > { %4248 = vrsqrt.f32 %v2867_v59  ;;  %v2866_v23 = vmul.f32 0.0078125, %v2864_v52 }
 0x93f   : > { %v2868_v24 = vadd.f32 1e-05, %v2866_v23 }
 0x941   : > { %4250 = vrsqrt.f32 %v2868_v24 }
 0x947   : > { %v4249_v22 = vpop.eup %4248 }
 0x948   : > { %v2871_v25 = vmul.f32 %v4249_v22, %v5017_v5  ;;  %v4192_v5 = vld [vmem:[#allocation6 + $0x58] sm:$0xff]  }
 0x94a   : > { %v2879_v32 = vmul.f32 %v3771_v27, %v2871_v25 }
 0x94b   : > { %v4251_v28 = vpop.eup %4250 }
 0x94c   : > { %v2872_v31 = vmul.f32 %v4251_v28, %v5020_v46  ;;  %v2887_v36 = vadd.f32 %v3772_v33, %v2879_v32  ;;  %v4194_v46 = vld [vmem:[#allocation6 + $0x18] sm:$0xff]  }
 0x94e   : > { %v2880_v35 = vmul.f32 %v3771_v27, %v2872_v31 }
 0x950   : > { %v2888_v38 = vadd.f32 %v3772_v33, %v2880_v35 }
 0x952   : > { %v2889_v39 = vpack.c.bf16 %v2888_v38, %v2887_v36 }
 0x954   : > { %3137 = vmatmul.mubr.bf16.vlgmr.msra.gmra.mrb[28].mxu1 %v2889_v39  ;;  %3180 = vmatmul.mubr.bf16.vlgmr.msra.gmra.mrb[16].mxu0 %v2889_v39 }
 0x955   : > { %3889 = vmatpush3.bf16.msra.mxu1 %v4182_v43  ;;  %3911 = vmatpush3.bf16.msra.mxu0 %v4183_v48 }
 0x956   : > { %3890 = vmatprep.subr.bf16.mxu1 %v4184_v49  ;;  %3912 = vmatprep.subr.bf16.mxu0 %v4185_v51 }
 0x959   : > { %3891 = vmatpush3.bf16.msra.mxu1 %v4186_v60  ;;  %3913 = vmatpush3.bf16.msra.mxu0 %v4187_v7 }
 0x95a   : > { %3892 = vmatprep.subr.bf16.mxu1 %v4188_v62  ;;  %3914 = vmatprep.subr.bf16.mxu0 %v4189_v17 }
 0x95d   : > { %3893 = vmatpush3.bf16.msra.mxu1 %v4190_v2  ;;  %3915 = vmatpush3.bf16.msra.mxu0 %v4191_v45 }
 0x95e   : > { %3894 = vmatprep.subr.bf16.mxu1 %v4192_v5  ;;  %3916 = vmatprep.subr.bf16.mxu0 %v4193_v9 }
 0x961   : > { %3895 = vmatpush3.bf16.msra.mxu1 %v4194_v46  ;;  %3917 = vmatpush3.bf16.msra.mxu0 %v4195_v11 }
 0x962   : > { %3896 = vmatprep.subr.bf16.mxu1 %v4196_v29  ;;  %3918 = vmatprep.subr.bf16.mxu0 %v4197_v34 }
 0x965   : > { %3897 = vmatpush3.bf16.msra.mxu1 %v4198_v47  ;;  %3919 = vmatpush3.bf16.msra.mxu0 %v4199_v63 }
 0x966   : > { %3898 = vmatprep.subr.bf16.mxu1 %v4200_v0  ;;  %3920 = vmatprep.subr.bf16.mxu0 %v4201_v6 }
 0x969   : > { %3899 = vmatpush3.bf16.msra.mxu1 %v4202_v19  ;;  %3921 = vmatpush3.bf16.msra.mxu0 %v4203_v12 }
 0x96a   : > { %3900 = vmatprep.subr.bf16.mxu1 %v4204_v13  ;;  %3922 = vmatprep.subr.bf16.mxu0 %v4205_v41 }
 0x96d   : > { %3901 = vmatpush3.bf16.msra.mxu1 %v4206_v50  ;;  %3923 = vmatpush3.bf16.msra.mxu0 %v4207_v14 }
 0x96e   : > { %3902 = vmatprep.subr.bf16.mxu1 %v4208_v15  ;;  %3924 = vmatprep.subr.bf16.mxu0 %v4209_v16 }
 0x971   : > { %3903 = vmatpush3.bf16.msra.mxu1 %v4210_v4  ;;  %3925 = vmatpush3.bf16.msra.mxu0 %v4211_v18 }
 0xa27   : > { %v3138_v53 = vpop.f32.mrb[28].mxu1  ;;  %v3181_v61 = vpop.f32.mrb[16].mxu0 }
 0xa28   : > { %v5044_v58 = vadd.f32 %v3138_v53, %v2927_v26  ;;  %v5046_v8 = vadd.f32 %v3181_v61, %v2935_v44  ;;  %v3140_v10 = vpop.f32.mrb[29].mxu1  ;;  %v3183_v59 = vpop.f32.mrb[17].mxu0 }
 0xa29   : > { %v5048_v52 = vadd.f32 %v3140_v10, %v2931_v56  ;;  %v5050_v23 = vadd.f32 %v3183_v59, %v2939_v3  ;;  %v3142_v55 = vpop.f32.mrb[30].mxu1  ;;  %v3185_v24 = vpop.f32.mrb[18].mxu0 }
 0xa2a   : > { %v3805_v20 = vmul.f32 -1.702, %v5044_v58  ;;  %v3807_v54 = vmul.f32 -1.702, %v5046_v8  ;;  %v3143_v57 = vadd.f32 %v3142_v55, %v2927_v26  ;;  %v3186_v22 = vadd.f32 %v3185_v24, %v2935_v44  ;;  %v3144_v25 = vpop.f32.mrb[31].mxu1  ;;  %v3187_v27 = vpop.f32.mrb[19].mxu0 }
 0xa2b   : > { %v3806_v28 = vmul.f32 -1.702, %v5048_v52  ;;  %v3808_v31 = vmul.f32 -1.702, %v5050_v23  ;;  %v3145_v32 = vadd.f32 %v3144_v25, %v2931_v56  ;;  %v3188_v33 = vadd.f32 %v3187_v27, %v2939_v3 }
 0xa2c   : > { %v3206_v35 = vmul.f32 1.442695, %v3805_v20  ;;  %v3210_v36 = vmul.f32 1.442695, %v3807_v54  ;;  %v3809_v38 = vmul.f32 -1.702, %v3143_v57 }
 0xa2d   : > { %v3208_v39 = vmul.f32 1.442695, %v3806_v28  ;;  %v3212_v40 = vmul.f32 1.442695, %v3808_v31  ;;  %v3811_v30 = vmul.f32 -1.702, %v3186_v22 }
 0xa2e   : > { %4252 = vpow2.f32 %v3206_v35  ;;  %v3214_v43 = vmul.f32 1.442695, %v3809_v38  ;;  %v3810_v48 = vmul.f32 -1.702, %v3145_v32  ;;  %v3812_v49 = vmul.f32 -1.702, %v3188_v33 }
 0xa2f   : > { %4254 = vpow2.f32 %v3210_v36  ;;  %v3218_v51 = vmul.f32 1.442695, %v3811_v30 }
 0xa30   : > { %4256 = vpow2.f32 %v3208_v39  ;;  %v3216_v60 = vmul.f32 1.442695, %v3810_v48  ;;  %v3220_v7 = vmul.f32 1.442695, %v3812_v49 }
 0xa31   : > { %4258 = vpow2.f32 %v3212_v40 }
 0xa32   : > { %4260 = vpow2.f32 %v3214_v43 }
 0xa33   : > { %4262 = vpow2.f32 %v3218_v51 }
 0xa34   : > { %4264 = vpow2.f32 %v3216_v60 }
 0xa35   : > { %4266 = vpow2.f32 %v3220_v7 }
 0xa38   : > { %v4253_v62 = vpop.eup %4252 }
 0xa39   : > { %v4255_v17 = vpop.eup %4254  ;;  %v3222_v2 = vadd.f32 1.0, %v4253_v62 }
 0xa3a   : > { %v4257_v45 = vpop.eup %4256  ;;  %v3224_v5 = vadd.f32 1.0, %v4255_v17 }
 0xa3b   : > { %v4259_v9 = vpop.eup %4258  ;;  %4268 = vrcp.f32 %v3222_v2  ;;  %v3223_v46 = vadd.f32 1.0, %v4257_v45 }
 0xa3c   : > { %v4261_v11 = vpop.eup %4260  ;;  %4270 = vrcp.f32 %v3224_v5  ;;  %v3225_v29 = vadd.f32 1.0, %v4259_v9 }
 0xa3d   : > { %v4263_v34 = vpop.eup %4262  ;;  %4272 = vrcp.f32 %v3223_v46  ;;  %v3226_v47 = vadd.f32 1.0, %v4261_v11 }
 0xa3e   : > { %v4265_v63 = vpop.eup %4264  ;;  %4274 = vrcp.f32 %v3225_v29  ;;  %v3228_v0 = vadd.f32 1.0, %v4263_v34 }
 0xa3f   : > { %v4267_v6 = vpop.eup %4266  ;;  %4276 = vrcp.f32 %v3226_v47  ;;  %v3227_v19 = vadd.f32 1.0, %v4265_v63 }
 0xa40   : > { %4278 = vrcp.f32 %v3228_v0  ;;  %v3229_v12 = vadd.f32 1.0, %v4267_v6 }
 0xa41   : > { %4280 = vrcp.f32 %v3227_v19 }
 0xa42   : > { %4282 = vrcp.f32 %v3229_v12 }
 0xa45   : > { %v4269_v13 = vpop.eup %4268 }
 0xa46   : > { %v4271_v41 = vpop.eup %4270  ;;  %v3246_v4 = vmul.f32 %v4269_v13, %v5044_v58 }
 0xa47   : > { %v4273_v50 = vpop.eup %4272  ;;  %v3248_v1 = vmul.f32 %v4271_v41, %v5046_v8  ;;  %v3813_v8 = vld [vmem:[%s5102_s13] ss:$0 sm:$0xff] }
 0xa48   : > { %v4275_v14 = vpop.eup %4274  ;;  %v3247_v56 = vmul.f32 %v4273_v50, %v5048_v52 }
 0xa49   : > { %v4277_v15 = vpop.eup %4276  ;;  %v3249_v61 = vmul.f32 %v4275_v14, %v5050_v23 }
 0xa4a   : > { %v4279_v16 = vpop.eup %4278  ;;  %v3250_v18 = vmul.f32 %v4277_v15, %v3143_v57 }
 0xa4b   : > { %v4281_v21 = vpop.eup %4280  ;;  %v3252_v26 = vmul.f32 %v4279_v16, %v3186_v22 }
 0xa4c   : > { %v4283_v44 = vpop.eup %4282  ;;  %v3254_v3 = vpack.c.bf16 %v3250_v18, %v3246_v4  ;;  %v3251_v53 = vmul.f32 %v4281_v21, %v3145_v32 }
 0xa4d   : > { %v3256_v10 = vpack.c.bf16 %v3252_v26, %v3248_v1  ;;  %v3253_v59 = vmul.f32 %v4283_v44, %v3188_v33 }
 0xa4e   : > { %v3255_v55 = vpack.c.bf16 %v3251_v53, %v3247_v56 }
 0xa4f   : > { %v3257_v24 = vpack.c.bf16 %v3253_v59, %v3249_v61 }
 0xa50   : > { %3553 = vmatprep.mubr.bf16.mxu1 %v3255_v55 }
 0xa51   : > { %3594 = vmatprep.mubr.bf16.mxu0 %v3257_v24  ;;  %3554 = vmatmul.mubr.bf16.vlgmr.msra.gmra.mrb[32].mxu1 %v3254_v3 }
 0xa52   : > { %3595 = vmatmul.mubr.bf16.vlgmr.msra.gmra.mrb[20].mxu0 %v3256_v10 }
 0xb24   : > { %v3904_v58 = vpop.f32.mrb[32].mxu1 }
 0xb25   : > { %v3926_v20 = vpop.f32.mrb[20].mxu0  ;;  %v3905_v52 = vpop.f32.mrb[33].mxu1 }
 0xb26   : > { %v3906_v54 = vadd.f32 %v3905_v52, %v3904_v58  ;;  %v3927_v57 = vpop.f32.mrb[21].mxu0  ;;  %v3907_v22 = vpop.f32.mrb[34].mxu1 }
 0xb27   : > { %v3928_v23 = vadd.f32 %v3927_v57, %v3926_v20  ;;  %v3929_v25 = vpop.f32.mrb[22].mxu0  ;;  %v3908_v27 = vpop.f32.mrb[35].mxu1 }
 0xb28   : > { %v3556_v28 = vadd.f32 %v3906_v54, %v3813_v8  ;;  %v3909_v31 = vadd.f32 %v3908_v27, %v3907_v22  ;;  %v3930_v32 = vpop.f32.mrb[23].mxu0 }
 0xb29   : > { %v3931_v33 = vadd.f32 %v3930_v32, %v3929_v25 }
 0xb2a   : > { %v3597_v35 = vadd.f32 %v3928_v23, %v3556_v28  ;;  %v3559_v36 = vadd.f32 %v3909_v31, %v3813_v8 }
 0xb2c   : > { %v3603_v38 = vadd.f32 %v3597_v35, %v5009_v37  ;;  %v3600_v39 = vadd.f32 %v3931_v33, %v3559_v36 }
 0xb2e   : > { %3605 = vst [vmem:[%s511_s23] sm:$0xff] %v3603_v38  ;;  %v3604_v40 = vadd.f32 %v3600_v39, %v5012_v42 }
 0xb30   : > { %3606 = vst [vmem:[%s511_s23 + $0x8] sm:$0xff] %v3604_v40 }
 0xb31 PF: > { %s5104_s24 = sld [smem:[#allocation9_spill]] }
 0xb37   : > { %s26_s29 = sadd.s32 1, %s5104_s24  }
 0xb38   : > { %p23_p5 = scmp.ge.s32.totalorder %s26_s29, 4  }
 0xb3a   :  { %25 = sbr.rel (!%p23_p5) target bundleno = 5 (0x5), region = 119 }
 0xb41   :  { %3628 = vsyncpa [#allocation3], 1 }
 0xb42   :  { %3630 = vsyncpa [#allocation3 + $0x1], 1 }
 0xb43   :  { %3631 = vsyncpa [#allocation5], 1 }

</bundles_post_ra>
